<compile_context>
chip_gen: v7x
topology: tpu7x:2x2x1
jax: 0.10.0
libtpu: 0.0.40
codegen_flags: <defaults>
</compile_context>

<pallas_src>
import functools

import jax
import jax.numpy as jnp
from jax import lax
from jax.experimental import pallas as pl
from jax.experimental.pallas import tpu as pltpu

EPS = 1e-8


# ----------------------------- shared math helpers -----------------------------

def _glob_ln(y, gamma, beta):
    """Global LayerNorm over one (C, T) slab; two-pass mean/var; gamma/beta (C,1)."""
    n = float(y.size)
    mean = jnp.sum(y) * (1.0 / n)
    d = y - mean
    var = jnp.sum(d * d) * (1.0 / n)
    return d * lax.rsqrt(var + EPS) * gamma + beta


def _prelu(y, alpha):
    return jnp.where(y >= 0.0, y, alpha * y)


def _downsample_mat(t_in):
    """(t_in, t_in//2) 0/1 matrix D with D[i, j] = 1 iff i == 2j  (x @ D == x[:, ::2])."""
    i = lax.broadcasted_iota(jnp.int32, (t_in, t_in // 2), 0)
    j = lax.broadcasted_iota(jnp.int32, (t_in, t_in // 2), 1)
    return (i == 2 * j).astype(jnp.float32)


def _upsample_mat(t_in):
    """(t_in, 2*t_in) 0/1 matrix U with U[m, i] = 1 iff i in {2m, 2m+1} (nearest x2)."""
    m = lax.broadcasted_iota(jnp.int32, (t_in, 2 * t_in), 0)
    i = lax.broadcasted_iota(jnp.int32, (t_in, 2 * t_in), 1)
    return jnp.logical_or(i == 2 * m, i == 2 * m + 1).astype(jnp.float32)


# ------------------------------ fused full-stack kernel -------------------------

def make_sudormrf_kernel(depth, n_layers, T):
    """Fused kernel: all `n_layers` UConvBlocks for one batch element (NCW layout)."""
    t_lvl = [T // (2 ** k) for k in range(depth)]

    def kernel(x_ref, alpha_ref,
               pw_ref, pb_ref, pg_ref, pbt_ref,
               dww_ref, dwb_ref, dwg_ref, dwbt_ref,
               fg_ref, fbt_ref, rw_ref, rb_ref,
               o_ref):
        # stride-2 subsample / nearest-x2 upsample matrices, shared by all layers
        # (hoisted out of the layer loop; tiny iota/compare work on the VPU).
        dmats = [_downsample_mat(t_lvl[lvl - 1]) for lvl in range(1, depth)]
        umats = [_upsample_mat(t_lvl[lvl]) for lvl in range(1, depth)]

        # (O, T): channels on sublanes, time on lanes (lane-dense).
        act = x_ref[0].astype(jnp.float32)

        for l in range(n_layers):                       # fused layer loop (static)
            # ---- proj_1x1: 1x1 conv + GlobLN + PReLU ----------------------------
            y = jnp.dot(pw_ref[l], act, preferred_element_type=jnp.float32)   # (I, T)
            y = y + pb_ref[l]
            y = _glob_ln(y, pg_ref[l], pbt_ref[l])
            y = _prelu(y, alpha_ref[l, 0])

            # ---- spp_dw: depthwise k=5 convs (stride 1 then stride 2) + GlobLN --
            outs = []
            cur = y
            for lvl in range(depth):
                tk = cur.shape[1]
                zpad = jnp.zeros((cur.shape[0], 2), jnp.float32)
                padded = jnp.concatenate([zpad, cur, zpad], axis=1)       # (I, tk+4)
                acc = None
                for t in range(5):                                        # static K=5
                    tap = padded[:, t:t + tk]                             # lane shift
                    term = tap * dww_ref[l, lvl, t]                       # (I,1) bcast
                    acc = term if acc is None else acc + term
                if lvl > 0:
                    # stride-2 conv == dense stride-1 conv then even subsample.
                    acc = jnp.dot(acc, dmats[lvl - 1],
                                  preferred_element_type=jnp.float32)
                acc = acc + dwb_ref[l, lvl]
                yk = _glob_ln(acc, dwg_ref[l, lvl], dwbt_ref[l, lvl])
                outs.append(yk)
                cur = yk

            # ---- U-Net gather: nearest-x2 upsample + add (deep -> shallow) ------
            for lvl in range(depth - 1, 0, -1):
                up = jnp.dot(outs[lvl], umats[lvl - 1],
                             preferred_element_type=jnp.float32)
                outs[lvl - 1] = outs[lvl - 1] + up

            # ---- final NormAct + res_conv (1x1) + residual -----------------------
            y = _glob_ln(outs[0], fg_ref[l], fbt_ref[l])
            y = _prelu(y, alpha_ref[l, 1])
            out = jnp.dot(rw_ref[l], y, preferred_element_type=jnp.float32)  # (O, T)
            out = out + rb_ref[l]
            act = out + act                                   # residual

        o_ref[0] = act.astype(o_ref.dtype)                    # full-lane store

    return kernel


# ------------------------------ pallas_call plumbing ----------------------------

def _const_map(b, *, ndim):
    return (0,) * ndim


def sudormrf_wrapper_forward(x, params, depth):
    """SudoRMRF_Wrapper.forward: x (B, out_channels, T) NCW -> same shape."""
    B, O, T = x.shape
    L = params["alphas"].shape[0]
    assert T % (2 ** (depth - 1)) == 0, "T must divide by 2**(upsampling_depth-1)"

    args = [x, params["alphas"],
            params["proj_w"], params["proj_b"], params["proj_g"], params["proj_bt"],
            params["dw_w"], params["dw_b"], params["dw_g"], params["dw_bt"],
            params["final_g"], params["final_bt"], params["res_w"], params["res_b"]]

    in_specs = [
        pl.BlockSpec((1, O, T), lambda b: (b, 0, 0)),              # x (NCW block)
        pl.BlockSpec(memory_space=pltpu.MemorySpace.SMEM),         # PReLU alphas
    ]
    in_specs += [pl.BlockSpec(a.shape, functools.partial(_const_map, ndim=a.ndim))
                 for a in args[2:]]

    return pl.pallas_call(
        make_sudormrf_kernel(depth, L, T),
        out_shape=jax.ShapeDtypeStruct((B, O, T), x.dtype),
        grid=(B,),
        in_specs=in_specs,
        out_specs=pl.BlockSpec((1, O, T), lambda b: (b, 0, 0)),
        compiler_params=pltpu.CompilerParams(dimension_semantics=("parallel",)),
    )(*args)


# ------------------------------ pure-JAX reference ------------------------------

def _glob_ln_ref(y, gamma, beta):
    mean = jnp.mean(y)
    d = y - mean
    var = jnp.mean(d * d)
    return d * lax.rsqrt(var + EPS) * gamma + beta


def uconv_block_ref(xb, p, l, depth):
    """One UConvBlock on one (out_channels, T) slab, pure JAX (no Pallas)."""
    y = p["proj_w"][l] @ xb + p["proj_b"][l]
    y = _glob_ln_ref(y, p["proj_g"][l], p["proj_bt"][l])
    y = jnp.where(y >= 0.0, y, p["alphas"][l, 0] * y)
    outs, cur = [], y
    for lvl in range(depth):
        stride = 1 if lvl == 0 else 2
        t_in = cur.shape[1]
        t_out = t_in if stride == 1 else t_in // 2
        pad = jnp.pad(cur, ((0, 0), (2, 2)))
        acc = 0.0
        for t in range(5):
            acc = acc + pad[:, t:t + stride * (t_out - 1) + 1:stride] * p["dw_w"][l, lvl, t]
        acc = acc + p["dw_b"][l, lvl]
        yk = _glob_ln_ref(acc, p["dw_g"][l, lvl], p["dw_bt"][l, lvl])
        outs.append(yk)
        cur = yk
    for lvl in range(depth - 1, 0, -1):
        outs[lvl - 1] = outs[lvl - 1] + jnp.repeat(outs[lvl], 2, axis=1)
    y = _glob_ln_ref(outs[0], p["final_g"][l], p["final_bt"][l])
    y = jnp.where(y >= 0.0, y, p["alphas"][l, 1] * y)
    return p["res_w"][l] @ y + p["res_b"][l] + xb


def sudormrf_ref(x, params, depth):
    L = params["alphas"].shape[0]

    def per_batch(xb):
        for l in range(L):
            xb = uconv_block_ref(xb, params, l, depth)
        return xb

    return jax.vmap(per_batch)(x)


# ------------------------------ parameter init ----------------------------------

def init_params(key, out_channels, in_channels, depth, layers):
    """All layers' parameters stacked along a leading L axis, NCW-friendly layouts."""
    O, I, L = out_channels, in_channels, layers
    ks = jax.random.split(key, 6)
    return {
        # Conv1d(out_ch -> in_ch, k=1): weight (I, O)
        "proj_w": 0.1 * jax.random.normal(ks[0], (L, I, O), jnp.float32),
        "proj_b": 0.1 * jax.random.normal(ks[1], (L, I, 1), jnp.float32),
        "proj_g": jnp.ones((L, I, 1), jnp.float32),
        "proj_bt": jnp.zeros((L, I, 1), jnp.float32),
        # depthwise Conv1d(I, I, k=5, groups=I) per level: tap weights as (I, 1)
        # columns so they broadcast along lanes (time) inside the kernel.
        "dw_w": 0.1 * jax.random.normal(ks[2], (L, depth, 5, I, 1), jnp.float32),
        "dw_b": 0.1 * jax.random.normal(ks[3], (L, depth, I, 1), jnp.float32),
        "dw_g": jnp.ones((L, depth, I, 1), jnp.float32),
        "dw_bt": jnp.zeros((L, depth, I, 1), jnp.float32),
        "final_g": jnp.ones((L, I, 1), jnp.float32),
        "final_bt": jnp.zeros((L, I, 1), jnp.float32),
        # Conv1d(in_ch -> out_ch, k=1): weight (O, I)
        "res_w": 0.1 * jax.random.normal(ks[4], (L, O, I), jnp.float32),
        "res_b": 0.1 * jax.random.normal(ks[5], (L, O, 1), jnp.float32),
        # PReLU alphas (proj act, final act) per layer -> SMEM scalars
        "alphas": jnp.full((L, 2), 0.25, jnp.float32),
    }


# ----------------------------------- main ----------------------------------------

if __name__ == "__main__":
    # SudoRMRF_Wrapper(out_channels=16, in_channels=32, upsampling_depth=3,
    #                  layer=2, module='SudoRMRF')
    B, OUT_CH, IN_CH, DEPTH, LAYERS, T = 2, 16, 32, 3, 2, 128
    assert T % (2 ** (DEPTH - 1)) == 0

    key = jax.random.PRNGKey(0)
    kx, kp = jax.random.split(key)
    x = jax.random.normal(kx, (B, OUT_CH, T), jnp.float32)   # NCW layout
    params = init_params(kp, OUT_CH, IN_CH, DEPTH, LAYERS)

    fwd = jax.jit(functools.partial(sudormrf_wrapper_forward, depth=DEPTH))
    out = fwd(x, params)
    jax.block_until_ready(out)

    assert out.shape == (B, OUT_CH, T)
    assert bool(jnp.all(jnp.isfinite(out)))

    # cross-check the fused kernel against a pure-JAX reference (loose tolerance
    # for MXU vs XLA matmul precision differences).
    ref = jax.jit(functools.partial(sudormrf_ref, depth=DEPTH))(x, params)
    err = float(jnp.max(jnp.abs(out - ref)))
    assert err < 2e-2, f"mismatch vs pure-JAX reference: {err}"

    print("KERNEL_OK")
</pallas_src>

<mosaic_0001>
module attributes {stable_mosaic.version = 11 : i64} {
  func.func @kernel(%arg0: i32, %arg1: memref<1x16x128xf32, #tpu.memory_space<vmem>>, %arg2: memref<2x2xf32, #tpu.memory_space<smem>>, %arg3: memref<2x32x16xf32, #tpu.memory_space<vmem>>, %arg4: memref<2x32x1xf32, #tpu.memory_space<vmem>>, %arg5: memref<2x32x1xf32, #tpu.memory_space<vmem>>, %arg6: memref<2x32x1xf32, #tpu.memory_space<vmem>>, %arg7: memref<2x3x5x32x1xf32, #tpu.memory_space<vmem>>, %arg8: memref<2x3x32x1xf32, #tpu.memory_space<vmem>>, %arg9: memref<2x3x32x1xf32, #tpu.memory_space<vmem>>, %arg10: memref<2x3x32x1xf32, #tpu.memory_space<vmem>>, %arg11: memref<2x32x1xf32, #tpu.memory_space<vmem>>, %arg12: memref<2x32x1xf32, #tpu.memory_space<vmem>>, %arg13: memref<2x16x32xf32, #tpu.memory_space<vmem>>, %arg14: memref<2x16x1xf32, #tpu.memory_space<vmem>>, %arg15: memref<1x16x128xf32, #tpu.memory_space<vmem>>) attributes {dimension_semantics = [#tpu.dimension_semantics<parallel>], iteration_bounds = array<i64: 2>, scalar_prefetch = 0 : i64, scratch_operands = 0 : i64, tpu.core_type = #tpu.core_type<tc>, window_params = [{transform_indices = @transform_0, window_bounds = array<i64: 1, 16, 128>}, {transform_indices = @transform_1, window_bounds = array<i64: 2, 2>}, {pipeline_mode = #tpu.pipeline_mode<synchronous>, transform_indices = @transform_2, window_bounds = array<i64: 2, 32, 16>}, {pipeline_mode = #tpu.pipeline_mode<synchronous>, transform_indices = @transform_3, window_bounds = array<i64: 2, 32, 1>}, {pipeline_mode = #tpu.pipeline_mode<synchronous>, transform_indices = @transform_4, window_bounds = array<i64: 2, 32, 1>}, {pipeline_mode = #tpu.pipeline_mode<synchronous>, transform_indices = @transform_5, window_bounds = array<i64: 2, 32, 1>}, {pipeline_mode = #tpu.pipeline_mode<synchronous>, transform_indices = @transform_6, window_bounds = array<i64: 2, 3, 5, 32, 1>}, {pipeline_mode = #tpu.pipeline_mode<synchronous>, transform_indices = @transform_7, window_bounds = array<i64: 2, 3, 32, 1>}, {pipeline_mode = #tpu.pipeline_mode<synchronous>, transform_indices = @transform_8, window_bounds = array<i64: 2, 3, 32, 1>}, {pipeline_mode = #tpu.pipeline_mode<synchronous>, transform_indices = @transform_9, window_bounds = array<i64: 2, 3, 32, 1>}, {pipeline_mode = #tpu.pipeline_mode<synchronous>, transform_indices = @transform_10, window_bounds = array<i64: 2, 32, 1>}, {pipeline_mode = #tpu.pipeline_mode<synchronous>, transform_indices = @transform_11, window_bounds = array<i64: 2, 32, 1>}, {pipeline_mode = #tpu.pipeline_mode<synchronous>, transform_indices = @transform_12, window_bounds = array<i64: 2, 16, 32>}, {pipeline_mode = #tpu.pipeline_mode<synchronous>, transform_indices = @transform_13, window_bounds = array<i64: 2, 16, 1>}, {transform_indices = @transform_14, window_bounds = array<i64: 1, 16, 128>}]} {
    %0 = tpu.iota {dimensions = array<i32: 0>} : vector<128x64xi32>
    %1 = tpu.iota {dimensions = array<i32: 1>} : vector<128x64xi32>
    %c2_i32 = arith.constant 2 : i32
    %2 = vector.broadcast %c2_i32 : i32 to vector<128x64xi32>
    %3 = arith.muli %2, %1 : vector<128x64xi32>
    %4 = arith.cmpi eq, %0, %3 : vector<128x64xi32>
    %5 = arith.extui %4 : vector<128x64xi1> to vector<128x64xi32>
    %6 = arith.sitofp %5 : vector<128x64xi32> to vector<128x64xf32>
    %7 = tpu.iota {dimensions = array<i32: 0>} : vector<64x32xi32>
    %8 = tpu.iota {dimensions = array<i32: 1>} : vector<64x32xi32>
    %c2_i32_0 = arith.constant 2 : i32
    %9 = vector.broadcast %c2_i32_0 : i32 to vector<64x32xi32>
    %10 = arith.muli %9, %8 : vector<64x32xi32>
    %11 = arith.cmpi eq, %7, %10 : vector<64x32xi32>
    %12 = arith.extui %11 : vector<64x32xi1> to vector<64x32xi32>
    %13 = arith.sitofp %12 : vector<64x32xi32> to vector<64x32xf32>
    %14 = tpu.iota {dimensions = array<i32: 0>} : vector<64x128xi32>
    %15 = tpu.iota {dimensions = array<i32: 1>} : vector<64x128xi32>
    %c2_i32_1 = arith.constant 2 : i32
    %16 = vector.broadcast %c2_i32_1 : i32 to vector<64x128xi32>
    %17 = arith.muli %16, %14 : vector<64x128xi32>
    %18 = arith.cmpi eq, %15, %17 : vector<64x128xi32>
    %c2_i32_2 = arith.constant 2 : i32
    %19 = vector.broadcast %c2_i32_2 : i32 to vector<64x128xi32>
    %20 = arith.muli %19, %14 : vector<64x128xi32>
    %c1_i32 = arith.constant 1 : i32
    %21 = vector.broadcast %c1_i32 : i32 to vector<64x128xi32>
    %22 = arith.addi %20, %21 : vector<64x128xi32>
    %23 = arith.cmpi eq, %15, %22 : vector<64x128xi32>
    %24 = arith.ori %18, %23 : vector<64x128xi1>
    %25 = arith.extui %24 : vector<64x128xi1> to vector<64x128xi32>
    %26 = arith.sitofp %25 : vector<64x128xi32> to vector<64x128xf32>
    %27 = tpu.iota {dimensions = array<i32: 0>} : vector<32x64xi32>
    %28 = tpu.iota {dimensions = array<i32: 1>} : vector<32x64xi32>
    %c2_i32_3 = arith.constant 2 : i32
    %29 = vector.broadcast %c2_i32_3 : i32 to vector<32x64xi32>
    %30 = arith.muli %29, %27 : vector<32x64xi32>
    %31 = arith.cmpi eq, %28, %30 : vector<32x64xi32>
    %c2_i32_4 = arith.constant 2 : i32
    %32 = vector.broadcast %c2_i32_4 : i32 to vector<32x64xi32>
    %33 = arith.muli %32, %27 : vector<32x64xi32>
    %c1_i32_5 = arith.constant 1 : i32
    %34 = vector.broadcast %c1_i32_5 : i32 to vector<32x64xi32>
    %35 = arith.addi %33, %34 : vector<32x64xi32>
    %36 = arith.cmpi eq, %28, %35 : vector<32x64xi32>
    %37 = arith.ori %31, %36 : vector<32x64xi1>
    %38 = arith.extui %37 : vector<32x64xi1> to vector<32x64xi32>
    %39 = arith.sitofp %38 : vector<32x64xi32> to vector<32x64xf32>
    %c0 = arith.constant 0 : index
    %c0_6 = arith.constant 0 : index
    %c0_7 = arith.constant 0 : index
    %40 = vector.load %arg1[%c0, %c0_6, %c0_7] : memref<1x16x128xf32, #tpu.memory_space<vmem>>, vector<1x16x128xf32>
    %41 = vector.shape_cast %40 : vector<1x16x128xf32> to vector<16x128xf32>
    %c0_8 = arith.constant 0 : index
    %c0_9 = arith.constant 0 : index
    %c0_10 = arith.constant 0 : index
    %42 = vector.load %arg3[%c0_8, %c0_9, %c0_10] : memref<2x32x16xf32, #tpu.memory_space<vmem>>, vector<1x32x16xf32>
    %43 = vector.shape_cast %42 : vector<1x32x16xf32> to vector<32x16xf32>
    %cst = arith.constant dense<0.000000e+00> : vector<32x128xf32>
    %44 = tpu.matmul %43, %41, %cst {dimension_numbers = #tpu.dot_dimension_numbers<[1], [0], [0], [1], [0, 0, 1, 1], [], []>} : vector<32x16xf32>, vector<16x128xf32>, vector<32x128xf32> -> vector<32x128xf32>
    %c0_11 = arith.constant 0 : index
    %c0_12 = arith.constant 0 : index
    %c0_13 = arith.constant 0 : index
    %45 = vector.load %arg4[%c0_11, %c0_12, %c0_13] : memref<2x32x1xf32, #tpu.memory_space<vmem>>, vector<1x32x1xf32>
    %46 = vector.shape_cast %45 : vector<1x32x1xf32> to vector<32x1xf32>
    %47 = vector.broadcast %46 : vector<32x1xf32> to vector<32x128xf32>
    %48 = arith.addf %44, %47 : vector<32x128xf32>
    %c0_14 = arith.constant 0 : index
    %c0_15 = arith.constant 0 : index
    %c0_16 = arith.constant 0 : index
    %49 = vector.load %arg5[%c0_14, %c0_15, %c0_16] : memref<2x32x1xf32, #tpu.memory_space<vmem>>, vector<1x32x1xf32>
    %50 = vector.shape_cast %49 : vector<1x32x1xf32> to vector<32x1xf32>
    %c0_17 = arith.constant 0 : index
    %c0_18 = arith.constant 0 : index
    %c0_19 = arith.constant 0 : index
    %51 = vector.load %arg6[%c0_17, %c0_18, %c0_19] : memref<2x32x1xf32, #tpu.memory_space<vmem>>, vector<1x32x1xf32>
    %52 = vector.shape_cast %51 : vector<1x32x1xf32> to vector<32x1xf32>
    %53 = vector.shape_cast %48 : vector<32x128xf32> to vector<1x32x128xf32>
    %cst_20 = arith.constant dense<0.000000e+00> : vector<1xf32>
    %54 = vector.multi_reduction <add>, %53, %cst_20 [1, 2] : vector<1x32x128xf32> to vector<1xf32>
    %55 = vector.shape_cast %54 : vector<1xf32> to vector<1x1x1xf32>
    %56 = vector.extract %55[0, 0, 0] : f32 from vector<1x1x1xf32>
    %cst_21 = arith.constant 2.44140625E-4 : f32
    %57 = arith.mulf %56, %cst_21 : f32
    %58 = vector.broadcast %57 : f32 to vector<32x128xf32>
    %59 = arith.subf %48, %58 : vector<32x128xf32>
    %60 = arith.mulf %59, %59 : vector<32x128xf32>
    %61 = vector.shape_cast %60 : vector<32x128xf32> to vector<1x32x128xf32>
    %cst_22 = arith.constant dense<0.000000e+00> : vector<1xf32>
    %62 = vector.multi_reduction <add>, %61, %cst_22 [1, 2] : vector<1x32x128xf32> to vector<1xf32>
    %63 = vector.shape_cast %62 : vector<1xf32> to vector<1x1x1xf32>
    %64 = vector.extract %63[0, 0, 0] : f32 from vector<1x1x1xf32>
    %cst_23 = arith.constant 2.44140625E-4 : f32
    %65 = arith.mulf %64, %cst_23 : f32
    %cst_24 = arith.constant 9.99999993E-9 : f32
    %66 = arith.addf %65, %cst_24 : f32
    %67 = math.rsqrt %66 : f32
    %68 = vector.broadcast %67 : f32 to vector<32x128xf32>
    %69 = arith.mulf %59, %68 : vector<32x128xf32>
    %70 = vector.broadcast %50 : vector<32x1xf32> to vector<32x128xf32>
    %71 = arith.mulf %69, %70 : vector<32x128xf32>
    %72 = vector.broadcast %52 : vector<32x1xf32> to vector<32x128xf32>
    %73 = arith.addf %71, %72 : vector<32x128xf32>
    %c0_25 = arith.constant 0 : index
    %c0_26 = arith.constant 0 : index
    %74 = memref.load %arg2[%c0_25, %c0_26] : memref<2x2xf32, #tpu.memory_space<smem>>
    %cst_27 = arith.constant 0.000000e+00 : f32
    %75 = vector.broadcast %cst_27 : f32 to vector<32x128xf32>
    %76 = arith.cmpf oge, %73, %75 : vector<32x128xf32>
    %77 = vector.broadcast %74 : f32 to vector<32x128xf32>
    %78 = arith.mulf %77, %73 : vector<32x128xf32>
    %79 = arith.select %76, %73, %78 : vector<32x128xi1>, vector<32x128xf32>
    %cst_28 = arith.constant 0.000000e+00 : f32
    %80 = vector.broadcast %cst_28 : f32 to vector<32x2xf32>
    %81 = tpu.concatenate %80, %79, %80 in 1 : vector<32x2xf32>, vector<32x128xf32>, vector<32x2xf32> -> vector<32x132xf32>
    %82 = vector.extract_strided_slice %81 {offsets = [0, 0], sizes = [32, 128], strides = [1, 1]} : vector<32x132xf32> to vector<32x128xf32>
    %c0_29 = arith.constant 0 : index
    %c0_30 = arith.constant 0 : index
    %c0_31 = arith.constant 0 : index
    %c0_32 = arith.constant 0 : index
    %c0_33 = arith.constant 0 : index
    %83 = vector.load %arg7[%c0_29, %c0_30, %c0_31, %c0_32, %c0_33] : memref<2x3x5x32x1xf32, #tpu.memory_space<vmem>>, vector<1x1x1x32x1xf32>
    %84 = vector.shape_cast %83 : vector<1x1x1x32x1xf32> to vector<32x1xf32>
    %85 = vector.broadcast %84 : vector<32x1xf32> to vector<32x128xf32>
    %86 = arith.mulf %82, %85 : vector<32x128xf32>
    %87 = vector.extract_strided_slice %81 {offsets = [0, 1], sizes = [32, 128], strides = [1, 1]} : vector<32x132xf32> to vector<32x128xf32>
    %c0_34 = arith.constant 0 : index
    %c0_35 = arith.constant 0 : index
    %c1 = arith.constant 1 : index
    %c0_36 = arith.constant 0 : index
    %c0_37 = arith.constant 0 : index
    %88 = vector.load %arg7[%c0_34, %c0_35, %c1, %c0_36, %c0_37] : memref<2x3x5x32x1xf32, #tpu.memory_space<vmem>>, vector<1x1x1x32x1xf32>
    %89 = vector.shape_cast %88 : vector<1x1x1x32x1xf32> to vector<32x1xf32>
    %90 = vector.broadcast %89 : vector<32x1xf32> to vector<32x128xf32>
    %91 = arith.mulf %87, %90 : vector<32x128xf32>
    %92 = arith.addf %86, %91 : vector<32x128xf32>
    %93 = vector.extract_strided_slice %81 {offsets = [0, 2], sizes = [32, 128], strides = [1, 1]} : vector<32x132xf32> to vector<32x128xf32>
    %c0_38 = arith.constant 0 : index
    %c0_39 = arith.constant 0 : index
    %c2 = arith.constant 2 : index
    %c0_40 = arith.constant 0 : index
    %c0_41 = arith.constant 0 : index
    %94 = vector.load %arg7[%c0_38, %c0_39, %c2, %c0_40, %c0_41] : memref<2x3x5x32x1xf32, #tpu.memory_space<vmem>>, vector<1x1x1x32x1xf32>
    %95 = vector.shape_cast %94 : vector<1x1x1x32x1xf32> to vector<32x1xf32>
    %96 = vector.broadcast %95 : vector<32x1xf32> to vector<32x128xf32>
    %97 = arith.mulf %93, %96 : vector<32x128xf32>
    %98 = arith.addf %92, %97 : vector<32x128xf32>
    %99 = vector.extract_strided_slice %81 {offsets = [0, 3], sizes = [32, 128], strides = [1, 1]} : vector<32x132xf32> to vector<32x128xf32>
    %c0_42 = arith.constant 0 : index
    %c0_43 = arith.constant 0 : index
    %c3 = arith.constant 3 : index
    %c0_44 = arith.constant 0 : index
    %c0_45 = arith.constant 0 : index
    %100 = vector.load %arg7[%c0_42, %c0_43, %c3, %c0_44, %c0_45] : memref<2x3x5x32x1xf32, #tpu.memory_space<vmem>>, vector<1x1x1x32x1xf32>
    %101 = vector.shape_cast %100 : vector<1x1x1x32x1xf32> to vector<32x1xf32>
    %102 = vector.broadcast %101 : vector<32x1xf32> to vector<32x128xf32>
    %103 = arith.mulf %99, %102 : vector<32x128xf32>
    %104 = arith.addf %98, %103 : vector<32x128xf32>
    %105 = vector.extract_strided_slice %81 {offsets = [0, 4], sizes = [32, 128], strides = [1, 1]} : vector<32x132xf32> to vector<32x128xf32>
    %c0_46 = arith.constant 0 : index
    %c0_47 = arith.constant 0 : index
    %c4 = arith.constant 4 : index
    %c0_48 = arith.constant 0 : index
    %c0_49 = arith.constant 0 : index
    %106 = vector.load %arg7[%c0_46, %c0_47, %c4, %c0_48, %c0_49] : memref<2x3x5x32x1xf32, #tpu.memory_space<vmem>>, vector<1x1x1x32x1xf32>
    %107 = vector.shape_cast %106 : vector<1x1x1x32x1xf32> to vector<32x1xf32>
    %108 = vector.broadcast %107 : vector<32x1xf32> to vector<32x128xf32>
    %109 = arith.mulf %105, %108 : vector<32x128xf32>
    %110 = arith.addf %104, %109 : vector<32x128xf32>
    %c0_50 = arith.constant 0 : index
    %c0_51 = arith.constant 0 : index
    %c0_52 = arith.constant 0 : index
    %c0_53 = arith.constant 0 : index
    %111 = vector.load %arg8[%c0_50, %c0_51, %c0_52, %c0_53] : memref<2x3x32x1xf32, #tpu.memory_space<vmem>>, vector<1x1x32x1xf32>
    %112 = vector.shape_cast %111 : vector<1x1x32x1xf32> to vector<32x1xf32>
    %113 = vector.broadcast %112 : vector<32x1xf32> to vector<32x128xf32>
    %114 = arith.addf %110, %113 : vector<32x128xf32>
    %c0_54 = arith.constant 0 : index
    %c0_55 = arith.constant 0 : index
    %c0_56 = arith.constant 0 : index
    %c0_57 = arith.constant 0 : index
    %115 = vector.load %arg9[%c0_54, %c0_55, %c0_56, %c0_57] : memref<2x3x32x1xf32, #tpu.memory_space<vmem>>, vector<1x1x32x1xf32>
    %116 = vector.shape_cast %115 : vector<1x1x32x1xf32> to vector<32x1xf32>
    %c0_58 = arith.constant 0 : index
    %c0_59 = arith.constant 0 : index
    %c0_60 = arith.constant 0 : index
    %c0_61 = arith.constant 0 : index
    %117 = vector.load %arg10[%c0_58, %c0_59, %c0_60, %c0_61] : memref<2x3x32x1xf32, #tpu.memory_space<vmem>>, vector<1x1x32x1xf32>
    %118 = vector.shape_cast %117 : vector<1x1x32x1xf32> to vector<32x1xf32>
    %119 = vector.shape_cast %114 : vector<32x128xf32> to vector<1x32x128xf32>
    %cst_62 = arith.constant dense<0.000000e+00> : vector<1xf32>
    %120 = vector.multi_reduction <add>, %119, %cst_62 [1, 2] : vector<1x32x128xf32> to vector<1xf32>
    %121 = vector.shape_cast %120 : vector<1xf32> to vector<1x1x1xf32>
    %122 = vector.extract %121[0, 0, 0] : f32 from vector<1x1x1xf32>
    %cst_63 = arith.constant 2.44140625E-4 : f32
    %123 = arith.mulf %122, %cst_63 : f32
    %124 = vector.broadcast %123 : f32 to vector<32x128xf32>
    %125 = arith.subf %114, %124 : vector<32x128xf32>
    %126 = arith.mulf %125, %125 : vector<32x128xf32>
    %127 = vector.shape_cast %126 : vector<32x128xf32> to vector<1x32x128xf32>
    %cst_64 = arith.constant dense<0.000000e+00> : vector<1xf32>
    %128 = vector.multi_reduction <add>, %127, %cst_64 [1, 2] : vector<1x32x128xf32> to vector<1xf32>
    %129 = vector.shape_cast %128 : vector<1xf32> to vector<1x1x1xf32>
    %130 = vector.extract %129[0, 0, 0] : f32 from vector<1x1x1xf32>
    %cst_65 = arith.constant 2.44140625E-4 : f32
    %131 = arith.mulf %130, %cst_65 : f32
    %cst_66 = arith.constant 9.99999993E-9 : f32
    %132 = arith.addf %131, %cst_66 : f32
    %133 = math.rsqrt %132 : f32
    %134 = vector.broadcast %133 : f32 to vector<32x128xf32>
    %135 = arith.mulf %125, %134 : vector<32x128xf32>
    %136 = vector.broadcast %116 : vector<32x1xf32> to vector<32x128xf32>
    %137 = arith.mulf %135, %136 : vector<32x128xf32>
    %138 = vector.broadcast %118 : vector<32x1xf32> to vector<32x128xf32>
    %139 = arith.addf %137, %138 : vector<32x128xf32>
    %cst_67 = arith.constant 0.000000e+00 : f32
    %140 = vector.broadcast %cst_67 : f32 to vector<32x2xf32>
    %141 = tpu.concatenate %140, %139, %140 in 1 : vector<32x2xf32>, vector<32x128xf32>, vector<32x2xf32> -> vector<32x132xf32>
    %142 = vector.extract_strided_slice %141 {offsets = [0, 0], sizes = [32, 128], strides = [1, 1]} : vector<32x132xf32> to vector<32x128xf32>
    %c0_68 = arith.constant 0 : index
    %c1_69 = arith.constant 1 : index
    %c0_70 = arith.constant 0 : index
    %c0_71 = arith.constant 0 : index
    %c0_72 = arith.constant 0 : index
    %143 = vector.load %arg7[%c0_68, %c1_69, %c0_70, %c0_71, %c0_72] : memref<2x3x5x32x1xf32, #tpu.memory_space<vmem>>, vector<1x1x1x32x1xf32>
    %144 = vector.shape_cast %143 : vector<1x1x1x32x1xf32> to vector<32x1xf32>
    %145 = vector.broadcast %144 : vector<32x1xf32> to vector<32x128xf32>
    %146 = arith.mulf %142, %145 : vector<32x128xf32>
    %147 = vector.extract_strided_slice %141 {offsets = [0, 1], sizes = [32, 128], strides = [1, 1]} : vector<32x132xf32> to vector<32x128xf32>
    %c0_73 = arith.constant 0 : index
    %c1_74 = arith.constant 1 : index
    %c1_75 = arith.constant 1 : index
    %c0_76 = arith.constant 0 : index
    %c0_77 = arith.constant 0 : index
    %148 = vector.load %arg7[%c0_73, %c1_74, %c1_75, %c0_76, %c0_77] : memref<2x3x5x32x1xf32, #tpu.memory_space<vmem>>, vector<1x1x1x32x1xf32>
    %149 = vector.shape_cast %148 : vector<1x1x1x32x1xf32> to vector<32x1xf32>
    %150 = vector.broadcast %149 : vector<32x1xf32> to vector<32x128xf32>
    %151 = arith.mulf %147, %150 : vector<32x128xf32>
    %152 = arith.addf %146, %151 : vector<32x128xf32>
    %153 = vector.extract_strided_slice %141 {offsets = [0, 2], sizes = [32, 128], strides = [1, 1]} : vector<32x132xf32> to vector<32x128xf32>
    %c0_78 = arith.constant 0 : index
    %c1_79 = arith.constant 1 : index
    %c2_80 = arith.constant 2 : index
    %c0_81 = arith.constant 0 : index
    %c0_82 = arith.constant 0 : index
    %154 = vector.load %arg7[%c0_78, %c1_79, %c2_80, %c0_81, %c0_82] : memref<2x3x5x32x1xf32, #tpu.memory_space<vmem>>, vector<1x1x1x32x1xf32>
    %155 = vector.shape_cast %154 : vector<1x1x1x32x1xf32> to vector<32x1xf32>
    %156 = vector.broadcast %155 : vector<32x1xf32> to vector<32x128xf32>
    %157 = arith.mulf %153, %156 : vector<32x128xf32>
    %158 = arith.addf %152, %157 : vector<32x128xf32>
    %159 = vector.extract_strided_slice %141 {offsets = [0, 3], sizes = [32, 128], strides = [1, 1]} : vector<32x132xf32> to vector<32x128xf32>
    %c0_83 = arith.constant 0 : index
    %c1_84 = arith.constant 1 : index
    %c3_85 = arith.constant 3 : index
    %c0_86 = arith.constant 0 : index
    %c0_87 = arith.constant 0 : index
    %160 = vector.load %arg7[%c0_83, %c1_84, %c3_85, %c0_86, %c0_87] : memref<2x3x5x32x1xf32, #tpu.memory_space<vmem>>, vector<1x1x1x32x1xf32>
    %161 = vector.shape_cast %160 : vector<1x1x1x32x1xf32> to vector<32x1xf32>
    %162 = vector.broadcast %161 : vector<32x1xf32> to vector<32x128xf32>
    %163 = arith.mulf %159, %162 : vector<32x128xf32>
    %164 = arith.addf %158, %163 : vector<32x128xf32>
    %165 = vector.extract_strided_slice %141 {offsets = [0, 4], sizes = [32, 128], strides = [1, 1]} : vector<32x132xf32> to vector<32x128xf32>
    %c0_88 = arith.constant 0 : index
    %c1_89 = arith.constant 1 : index
    %c4_90 = arith.constant 4 : index
    %c0_91 = arith.constant 0 : index
    %c0_92 = arith.constant 0 : index
    %166 = vector.load %arg7[%c0_88, %c1_89, %c4_90, %c0_91, %c0_92] : memref<2x3x5x32x1xf32, #tpu.memory_space<vmem>>, vector<1x1x1x32x1xf32>
    %167 = vector.shape_cast %166 : vector<1x1x1x32x1xf32> to vector<32x1xf32>
    %168 = vector.broadcast %167 : vector<32x1xf32> to vector<32x128xf32>
    %169 = arith.mulf %165, %168 : vector<32x128xf32>
    %170 = arith.addf %164, %169 : vector<32x128xf32>
    %cst_93 = arith.constant dense<0.000000e+00> : vector<32x64xf32>
    %171 = tpu.matmul %170, %6, %cst_93 {dimension_numbers = #tpu.dot_dimension_numbers<[1], [0], [0], [1], [0, 0, 1, 1], [], []>} : vector<32x128xf32>, vector<128x64xf32>, vector<32x64xf32> -> vector<32x64xf32>
    %c0_94 = arith.constant 0 : index
    %c1_95 = arith.constant 1 : index
    %c0_96 = arith.constant 0 : index
    %c0_97 = arith.constant 0 : index
    %172 = vector.load %arg8[%c0_94, %c1_95, %c0_96, %c0_97] : memref<2x3x32x1xf32, #tpu.memory_space<vmem>>, vector<1x1x32x1xf32>
    %173 = vector.shape_cast %172 : vector<1x1x32x1xf32> to vector<32x1xf32>
    %174 = vector.broadcast %173 : vector<32x1xf32> to vector<32x64xf32>
    %175 = arith.addf %171, %174 : vector<32x64xf32>
    %c0_98 = arith.constant 0 : index
    %c1_99 = arith.constant 1 : index
    %c0_100 = arith.constant 0 : index
    %c0_101 = arith.constant 0 : index
    %176 = vector.load %arg9[%c0_98, %c1_99, %c0_100, %c0_101] : memref<2x3x32x1xf32, #tpu.memory_space<vmem>>, vector<1x1x32x1xf32>
    %177 = vector.shape_cast %176 : vector<1x1x32x1xf32> to vector<32x1xf32>
    %c0_102 = arith.constant 0 : index
    %c1_103 = arith.constant 1 : index
    %c0_104 = arith.constant 0 : index
    %c0_105 = arith.constant 0 : index
    %178 = vector.load %arg10[%c0_102, %c1_103, %c0_104, %c0_105] : memref<2x3x32x1xf32, #tpu.memory_space<vmem>>, vector<1x1x32x1xf32>
    %179 = vector.shape_cast %178 : vector<1x1x32x1xf32> to vector<32x1xf32>
    %180 = vector.shape_cast %175 : vector<32x64xf32> to vector<1x32x64xf32>
    %cst_106 = arith.constant dense<0.000000e+00> : vector<1xf32>
    %181 = vector.multi_reduction <add>, %180, %cst_106 [1, 2] : vector<1x32x64xf32> to vector<1xf32>
    %182 = vector.shape_cast %181 : vector<1xf32> to vector<1x1x1xf32>
    %183 = vector.extract %182[0, 0, 0] : f32 from vector<1x1x1xf32>
    %cst_107 = arith.constant 4.8828125E-4 : f32
    %184 = arith.mulf %183, %cst_107 : f32
    %185 = vector.broadcast %184 : f32 to vector<32x64xf32>
    %186 = arith.subf %175, %185 : vector<32x64xf32>
    %187 = arith.mulf %186, %186 : vector<32x64xf32>
    %188 = vector.shape_cast %187 : vector<32x64xf32> to vector<1x32x64xf32>
    %cst_108 = arith.constant dense<0.000000e+00> : vector<1xf32>
    %189 = vector.multi_reduction <add>, %188, %cst_108 [1, 2] : vector<1x32x64xf32> to vector<1xf32>
    %190 = vector.shape_cast %189 : vector<1xf32> to vector<1x1x1xf32>
    %191 = vector.extract %190[0, 0, 0] : f32 from vector<1x1x1xf32>
    %cst_109 = arith.constant 4.8828125E-4 : f32
    %192 = arith.mulf %191, %cst_109 : f32
    %cst_110 = arith.constant 9.99999993E-9 : f32
    %193 = arith.addf %192, %cst_110 : f32
    %194 = math.rsqrt %193 : f32
    %195 = vector.broadcast %194 : f32 to vector<32x64xf32>
    %196 = arith.mulf %186, %195 : vector<32x64xf32>
    %197 = vector.broadcast %177 : vector<32x1xf32> to vector<32x64xf32>
    %198 = arith.mulf %196, %197 : vector<32x64xf32>
    %199 = vector.broadcast %179 : vector<32x1xf32> to vector<32x64xf32>
    %200 = arith.addf %198, %199 : vector<32x64xf32>
    %cst_111 = arith.constant 0.000000e+00 : f32
    %201 = vector.broadcast %cst_111 : f32 to vector<32x2xf32>
    %202 = tpu.concatenate %201, %200, %201 in 1 : vector<32x2xf32>, vector<32x64xf32>, vector<32x2xf32> -> vector<32x68xf32>
    %203 = vector.extract_strided_slice %202 {offsets = [0, 0], sizes = [32, 64], strides = [1, 1]} : vector<32x68xf32> to vector<32x64xf32>
    %c0_112 = arith.constant 0 : index
    %c2_113 = arith.constant 2 : index
    %c0_114 = arith.constant 0 : index
    %c0_115 = arith.constant 0 : index
    %c0_116 = arith.constant 0 : index
    %204 = vector.load %arg7[%c0_112, %c2_113, %c0_114, %c0_115, %c0_116] : memref<2x3x5x32x1xf32, #tpu.memory_space<vmem>>, vector<1x1x1x32x1xf32>
    %205 = vector.shape_cast %204 : vector<1x1x1x32x1xf32> to vector<32x1xf32>
    %206 = vector.broadcast %205 : vector<32x1xf32> to vector<32x64xf32>
    %207 = arith.mulf %203, %206 : vector<32x64xf32>
    %208 = vector.extract_strided_slice %202 {offsets = [0, 1], sizes = [32, 64], strides = [1, 1]} : vector<32x68xf32> to vector<32x64xf32>
    %c0_117 = arith.constant 0 : index
    %c2_118 = arith.constant 2 : index
    %c1_119 = arith.constant 1 : index
    %c0_120 = arith.constant 0 : index
    %c0_121 = arith.constant 0 : index
    %209 = vector.load %arg7[%c0_117, %c2_118, %c1_119, %c0_120, %c0_121] : memref<2x3x5x32x1xf32, #tpu.memory_space<vmem>>, vector<1x1x1x32x1xf32>
    %210 = vector.shape_cast %209 : vector<1x1x1x32x1xf32> to vector<32x1xf32>
    %211 = vector.broadcast %210 : vector<32x1xf32> to vector<32x64xf32>
    %212 = arith.mulf %208, %211 : vector<32x64xf32>
    %213 = arith.addf %207, %212 : vector<32x64xf32>
    %214 = vector.extract_strided_slice %202 {offsets = [0, 2], sizes = [32, 64], strides = [1, 1]} : vector<32x68xf32> to vector<32x64xf32>
    %c0_122 = arith.constant 0 : index
    %c2_123 = arith.constant 2 : index
    %c2_124 = arith.constant 2 : index
    %c0_125 = arith.constant 0 : index
    %c0_126 = arith.constant 0 : index
    %215 = vector.load %arg7[%c0_122, %c2_123, %c2_124, %c0_125, %c0_126] : memref<2x3x5x32x1xf32, #tpu.memory_space<vmem>>, vector<1x1x1x32x1xf32>
    %216 = vector.shape_cast %215 : vector<1x1x1x32x1xf32> to vector<32x1xf32>
    %217 = vector.broadcast %216 : vector<32x1xf32> to vector<32x64xf32>
    %218 = arith.mulf %214, %217 : vector<32x64xf32>
    %219 = arith.addf %213, %218 : vector<32x64xf32>
    %220 = vector.extract_strided_slice %202 {offsets = [0, 3], sizes = [32, 64], strides = [1, 1]} : vector<32x68xf32> to vector<32x64xf32>
    %c0_127 = arith.constant 0 : index
    %c2_128 = arith.constant 2 : index
    %c3_129 = arith.constant 3 : index
    %c0_130 = arith.constant 0 : index
    %c0_131 = arith.constant 0 : index
    %221 = vector.load %arg7[%c0_127, %c2_128, %c3_129, %c0_130, %c0_131] : memref<2x3x5x32x1xf32, #tpu.memory_space<vmem>>, vector<1x1x1x32x1xf32>
    %222 = vector.shape_cast %221 : vector<1x1x1x32x1xf32> to vector<32x1xf32>
    %223 = vector.broadcast %222 : vector<32x1xf32> to vector<32x64xf32>
    %224 = arith.mulf %220, %223 : vector<32x64xf32>
    %225 = arith.addf %219, %224 : vector<32x64xf32>
    %226 = vector.extract_strided_slice %202 {offsets = [0, 4], sizes = [32, 64], strides = [1, 1]} : vector<32x68xf32> to vector<32x64xf32>
    %c0_132 = arith.constant 0 : index
    %c2_133 = arith.constant 2 : index
    %c4_134 = arith.constant 4 : index
    %c0_135 = arith.constant 0 : index
    %c0_136 = arith.constant 0 : index
    %227 = vector.load %arg7[%c0_132, %c2_133, %c4_134, %c0_135, %c0_136] : memref<2x3x5x32x1xf32, #tpu.memory_space<vmem>>, vector<1x1x1x32x1xf32>
    %228 = vector.shape_cast %227 : vector<1x1x1x32x1xf32> to vector<32x1xf32>
    %229 = vector.broadcast %228 : vector<32x1xf32> to vector<32x64xf32>
    %230 = arith.mulf %226, %229 : vector<32x64xf32>
    %231 = arith.addf %225, %230 : vector<32x64xf32>
    %cst_137 = arith.constant dense<0.000000e+00> : vector<32x32xf32>
    %232 = tpu.matmul %231, %13, %cst_137 {dimension_numbers = #tpu.dot_dimension_numbers<[1], [0], [0], [1], [0, 0, 1, 1], [], []>} : vector<32x64xf32>, vector<64x32xf32>, vector<32x32xf32> -> vector<32x32xf32>
    %c0_138 = arith.constant 0 : index
    %c2_139 = arith.constant 2 : index
    %c0_140 = arith.constant 0 : index
    %c0_141 = arith.constant 0 : index
    %233 = vector.load %arg8[%c0_138, %c2_139, %c0_140, %c0_141] : memref<2x3x32x1xf32, #tpu.memory_space<vmem>>, vector<1x1x32x1xf32>
    %234 = vector.shape_cast %233 : vector<1x1x32x1xf32> to vector<32x1xf32>
    %235 = vector.broadcast %234 : vector<32x1xf32> to vector<32x32xf32>
    %236 = arith.addf %232, %235 : vector<32x32xf32>
    %c0_142 = arith.constant 0 : index
    %c2_143 = arith.constant 2 : index
    %c0_144 = arith.constant 0 : index
    %c0_145 = arith.constant 0 : index
    %237 = vector.load %arg9[%c0_142, %c2_143, %c0_144, %c0_145] : memref<2x3x32x1xf32, #tpu.memory_space<vmem>>, vector<1x1x32x1xf32>
    %238 = vector.shape_cast %237 : vector<1x1x32x1xf32> to vector<32x1xf32>
    %c0_146 = arith.constant 0 : index
    %c2_147 = arith.constant 2 : index
    %c0_148 = arith.constant 0 : index
    %c0_149 = arith.constant 0 : index
    %239 = vector.load %arg10[%c0_146, %c2_147, %c0_148, %c0_149] : memref<2x3x32x1xf32, #tpu.memory_space<vmem>>, vector<1x1x32x1xf32>
    %240 = vector.shape_cast %239 : vector<1x1x32x1xf32> to vector<32x1xf32>
    %241 = vector.shape_cast %236 : vector<32x32xf32> to vector<1x32x32xf32>
    %cst_150 = arith.constant dense<0.000000e+00> : vector<1xf32>
    %242 = vector.multi_reduction <add>, %241, %cst_150 [1, 2] : vector<1x32x32xf32> to vector<1xf32>
    %243 = vector.shape_cast %242 : vector<1xf32> to vector<1x1x1xf32>
    %244 = vector.extract %243[0, 0, 0] : f32 from vector<1x1x1xf32>
    %cst_151 = arith.constant 9.765625E-4 : f32
    %245 = arith.mulf %244, %cst_151 : f32
    %246 = vector.broadcast %245 : f32 to vector<32x32xf32>
    %247 = arith.subf %236, %246 : vector<32x32xf32>
    %248 = arith.mulf %247, %247 : vector<32x32xf32>
    %249 = vector.shape_cast %248 : vector<32x32xf32> to vector<1x32x32xf32>
    %cst_152 = arith.constant dense<0.000000e+00> : vector<1xf32>
    %250 = vector.multi_reduction <add>, %249, %cst_152 [1, 2] : vector<1x32x32xf32> to vector<1xf32>
    %251 = vector.shape_cast %250 : vector<1xf32> to vector<1x1x1xf32>
    %252 = vector.extract %251[0, 0, 0] : f32 from vector<1x1x1xf32>
    %cst_153 = arith.constant 9.765625E-4 : f32
    %253 = arith.mulf %252, %cst_153 : f32
    %cst_154 = arith.constant 9.99999993E-9 : f32
    %254 = arith.addf %253, %cst_154 : f32
    %255 = math.rsqrt %254 : f32
    %256 = vector.broadcast %255 : f32 to vector<32x32xf32>
    %257 = arith.mulf %247, %256 : vector<32x32xf32>
    %258 = vector.broadcast %238 : vector<32x1xf32> to vector<32x32xf32>
    %259 = arith.mulf %257, %258 : vector<32x32xf32>
    %260 = vector.broadcast %240 : vector<32x1xf32> to vector<32x32xf32>
    %261 = arith.addf %259, %260 : vector<32x32xf32>
    %cst_155 = arith.constant dense<0.000000e+00> : vector<32x64xf32>
    %262 = tpu.matmul %261, %39, %cst_155 {dimension_numbers = #tpu.dot_dimension_numbers<[1], [0], [0], [1], [0, 0, 1, 1], [], []>} : vector<32x32xf32>, vector<32x64xf32>, vector<32x64xf32> -> vector<32x64xf32>
    %263 = arith.addf %200, %262 : vector<32x64xf32>
    %cst_156 = arith.constant dense<0.000000e+00> : vector<32x128xf32>
    %264 = tpu.matmul %263, %26, %cst_156 {dimension_numbers = #tpu.dot_dimension_numbers<[1], [0], [0], [1], [0, 0, 1, 1], [], []>} : vector<32x64xf32>, vector<64x128xf32>, vector<32x128xf32> -> vector<32x128xf32>
    %265 = arith.addf %139, %264 : vector<32x128xf32>
    %c0_157 = arith.constant 0 : index
    %c0_158 = arith.constant 0 : index
    %c0_159 = arith.constant 0 : index
    %266 = vector.load %arg11[%c0_157, %c0_158, %c0_159] : memref<2x32x1xf32, #tpu.memory_space<vmem>>, vector<1x32x1xf32>
    %267 = vector.shape_cast %266 : vector<1x32x1xf32> to vector<32x1xf32>
    %c0_160 = arith.constant 0 : index
    %c0_161 = arith.constant 0 : index
    %c0_162 = arith.constant 0 : index
    %268 = vector.load %arg12[%c0_160, %c0_161, %c0_162] : memref<2x32x1xf32, #tpu.memory_space<vmem>>, vector<1x32x1xf32>
    %269 = vector.shape_cast %268 : vector<1x32x1xf32> to vector<32x1xf32>
    %270 = vector.shape_cast %265 : vector<32x128xf32> to vector<1x32x128xf32>
    %cst_163 = arith.constant dense<0.000000e+00> : vector<1xf32>
    %271 = vector.multi_reduction <add>, %270, %cst_163 [1, 2] : vector<1x32x128xf32> to vector<1xf32>
    %272 = vector.shape_cast %271 : vector<1xf32> to vector<1x1x1xf32>
    %273 = vector.extract %272[0, 0, 0] : f32 from vector<1x1x1xf32>
    %cst_164 = arith.constant 2.44140625E-4 : f32
    %274 = arith.mulf %273, %cst_164 : f32
    %275 = vector.broadcast %274 : f32 to vector<32x128xf32>
    %276 = arith.subf %265, %275 : vector<32x128xf32>
    %277 = arith.mulf %276, %276 : vector<32x128xf32>
    %278 = vector.shape_cast %277 : vector<32x128xf32> to vector<1x32x128xf32>
    %cst_165 = arith.constant dense<0.000000e+00> : vector<1xf32>
    %279 = vector.multi_reduction <add>, %278, %cst_165 [1, 2] : vector<1x32x128xf32> to vector<1xf32>
    %280 = vector.shape_cast %279 : vector<1xf32> to vector<1x1x1xf32>
    %281 = vector.extract %280[0, 0, 0] : f32 from vector<1x1x1xf32>
    %cst_166 = arith.constant 2.44140625E-4 : f32
    %282 = arith.mulf %281, %cst_166 : f32
    %cst_167 = arith.constant 9.99999993E-9 : f32
    %283 = arith.addf %282, %cst_167 : f32
    %284 = math.rsqrt %283 : f32
    %285 = vector.broadcast %284 : f32 to vector<32x128xf32>
    %286 = arith.mulf %276, %285 : vector<32x128xf32>
    %287 = vector.broadcast %267 : vector<32x1xf32> to vector<32x128xf32>
    %288 = arith.mulf %286, %287 : vector<32x128xf32>
    %289 = vector.broadcast %269 : vector<32x1xf32> to vector<32x128xf32>
    %290 = arith.addf %288, %289 : vector<32x128xf32>
    %c0_168 = arith.constant 0 : index
    %c1_169 = arith.constant 1 : index
    %291 = memref.load %arg2[%c0_168, %c1_169] : memref<2x2xf32, #tpu.memory_space<smem>>
    %cst_170 = arith.constant 0.000000e+00 : f32
    %292 = vector.broadcast %cst_170 : f32 to vector<32x128xf32>
    %293 = arith.cmpf oge, %290, %292 : vector<32x128xf32>
    %294 = vector.broadcast %291 : f32 to vector<32x128xf32>
    %295 = arith.mulf %294, %290 : vector<32x128xf32>
    %296 = arith.select %293, %290, %295 : vector<32x128xi1>, vector<32x128xf32>
    %c0_171 = arith.constant 0 : index
    %c0_172 = arith.constant 0 : index
    %c0_173 = arith.constant 0 : index
    %297 = vector.load %arg13[%c0_171, %c0_172, %c0_173] : memref<2x16x32xf32, #tpu.memory_space<vmem>>, vector<1x16x32xf32>
    %298 = vector.shape_cast %297 : vector<1x16x32xf32> to vector<16x32xf32>
    %cst_174 = arith.constant dense<0.000000e+00> : vector<16x128xf32>
    %299 = tpu.matmul %298, %296, %cst_174 {dimension_numbers = #tpu.dot_dimension_numbers<[1], [0], [0], [1], [0, 0, 1, 1], [], []>} : vector<16x32xf32>, vector<32x128xf32>, vector<16x128xf32> -> vector<16x128xf32>
    %c0_175 = arith.constant 0 : index
    %c0_176 = arith.constant 0 : index
    %c0_177 = arith.constant 0 : index
    %300 = vector.load %arg14[%c0_175, %c0_176, %c0_177] : memref<2x16x1xf32, #tpu.memory_space<vmem>>, vector<1x16x1xf32>
    %301 = vector.shape_cast %300 : vector<1x16x1xf32> to vector<16x1xf32>
    %302 = vector.broadcast %301 : vector<16x1xf32> to vector<16x128xf32>
    %303 = arith.addf %299, %302 : vector<16x128xf32>
    %304 = arith.addf %303, %41 : vector<16x128xf32>
    %c1_178 = arith.constant 1 : index
    %c0_179 = arith.constant 0 : index
    %c0_180 = arith.constant 0 : index
    %305 = vector.load %arg3[%c1_178, %c0_179, %c0_180] : memref<2x32x16xf32, #tpu.memory_space<vmem>>, vector<1x32x16xf32>
    %306 = vector.shape_cast %305 : vector<1x32x16xf32> to vector<32x16xf32>
    %cst_181 = arith.constant dense<0.000000e+00> : vector<32x128xf32>
    %307 = tpu.matmul %306, %304, %cst_181 {dimension_numbers = #tpu.dot_dimension_numbers<[1], [0], [0], [1], [0, 0, 1, 1], [], []>} : vector<32x16xf32>, vector<16x128xf32>, vector<32x128xf32> -> vector<32x128xf32>
    %c1_182 = arith.constant 1 : index
    %c0_183 = arith.constant 0 : index
    %c0_184 = arith.constant 0 : index
    %308 = vector.load %arg4[%c1_182, %c0_183, %c0_184] : memref<2x32x1xf32, #tpu.memory_space<vmem>>, vector<1x32x1xf32>
    %309 = vector.shape_cast %308 : vector<1x32x1xf32> to vector<32x1xf32>
    %310 = vector.broadcast %309 : vector<32x1xf32> to vector<32x128xf32>
    %311 = arith.addf %307, %310 : vector<32x128xf32>
    %c1_185 = arith.constant 1 : index
    %c0_186 = arith.constant 0 : index
    %c0_187 = arith.constant 0 : index
    %312 = vector.load %arg5[%c1_185, %c0_186, %c0_187] : memref<2x32x1xf32, #tpu.memory_space<vmem>>, vector<1x32x1xf32>
    %313 = vector.shape_cast %312 : vector<1x32x1xf32> to vector<32x1xf32>
    %c1_188 = arith.constant 1 : index
    %c0_189 = arith.constant 0 : index
    %c0_190 = arith.constant 0 : index
    %314 = vector.load %arg6[%c1_188, %c0_189, %c0_190] : memref<2x32x1xf32, #tpu.memory_space<vmem>>, vector<1x32x1xf32>
    %315 = vector.shape_cast %314 : vector<1x32x1xf32> to vector<32x1xf32>
    %316 = vector.shape_cast %311 : vector<32x128xf32> to vector<1x32x128xf32>
    %cst_191 = arith.constant dense<0.000000e+00> : vector<1xf32>
    %317 = vector.multi_reduction <add>, %316, %cst_191 [1, 2] : vector<1x32x128xf32> to vector<1xf32>
    %318 = vector.shape_cast %317 : vector<1xf32> to vector<1x1x1xf32>
    %319 = vector.extract %318[0, 0, 0] : f32 from vector<1x1x1xf32>
    %cst_192 = arith.constant 2.44140625E-4 : f32
    %320 = arith.mulf %319, %cst_192 : f32
    %321 = vector.broadcast %320 : f32 to vector<32x128xf32>
    %322 = arith.subf %311, %321 : vector<32x128xf32>
    %323 = arith.mulf %322, %322 : vector<32x128xf32>
    %324 = vector.shape_cast %323 : vector<32x128xf32> to vector<1x32x128xf32>
    %cst_193 = arith.constant dense<0.000000e+00> : vector<1xf32>
    %325 = vector.multi_reduction <add>, %324, %cst_193 [1, 2] : vector<1x32x128xf32> to vector<1xf32>
    %326 = vector.shape_cast %325 : vector<1xf32> to vector<1x1x1xf32>
    %327 = vector.extract %326[0, 0, 0] : f32 from vector<1x1x1xf32>
    %cst_194 = arith.constant 2.44140625E-4 : f32
    %328 = arith.mulf %327, %cst_194 : f32
    %cst_195 = arith.constant 9.99999993E-9 : f32
    %329 = arith.addf %328, %cst_195 : f32
    %330 = math.rsqrt %329 : f32
    %331 = vector.broadcast %330 : f32 to vector<32x128xf32>
    %332 = arith.mulf %322, %331 : vector<32x128xf32>
    %333 = vector.broadcast %313 : vector<32x1xf32> to vector<32x128xf32>
    %334 = arith.mulf %332, %333 : vector<32x128xf32>
    %335 = vector.broadcast %315 : vector<32x1xf32> to vector<32x128xf32>
    %336 = arith.addf %334, %335 : vector<32x128xf32>
    %c1_196 = arith.constant 1 : index
    %c0_197 = arith.constant 0 : index
    %337 = memref.load %arg2[%c1_196, %c0_197] : memref<2x2xf32, #tpu.memory_space<smem>>
    %cst_198 = arith.constant 0.000000e+00 : f32
    %338 = vector.broadcast %cst_198 : f32 to vector<32x128xf32>
    %339 = arith.cmpf oge, %336, %338 : vector<32x128xf32>
    %340 = vector.broadcast %337 : f32 to vector<32x128xf32>
    %341 = arith.mulf %340, %336 : vector<32x128xf32>
    %342 = arith.select %339, %336, %341 : vector<32x128xi1>, vector<32x128xf32>
    %cst_199 = arith.constant 0.000000e+00 : f32
    %343 = vector.broadcast %cst_199 : f32 to vector<32x2xf32>
    %344 = tpu.concatenate %343, %342, %343 in 1 : vector<32x2xf32>, vector<32x128xf32>, vector<32x2xf32> -> vector<32x132xf32>
    %345 = vector.extract_strided_slice %344 {offsets = [0, 0], sizes = [32, 128], strides = [1, 1]} : vector<32x132xf32> to vector<32x128xf32>
    %c1_200 = arith.constant 1 : index
    %c0_201 = arith.constant 0 : index
    %c0_202 = arith.constant 0 : index
    %c0_203 = arith.constant 0 : index
    %c0_204 = arith.constant 0 : index
    %346 = vector.load %arg7[%c1_200, %c0_201, %c0_202, %c0_203, %c0_204] : memref<2x3x5x32x1xf32, #tpu.memory_space<vmem>>, vector<1x1x1x32x1xf32>
    %347 = vector.shape_cast %346 : vector<1x1x1x32x1xf32> to vector<32x1xf32>
    %348 = vector.broadcast %347 : vector<32x1xf32> to vector<32x128xf32>
    %349 = arith.mulf %345, %348 : vector<32x128xf32>
    %350 = vector.extract_strided_slice %344 {offsets = [0, 1], sizes = [32, 128], strides = [1, 1]} : vector<32x132xf32> to vector<32x128xf32>
    %c1_205 = arith.constant 1 : index
    %c0_206 = arith.constant 0 : index
    %c1_207 = arith.constant 1 : index
    %c0_208 = arith.constant 0 : index
    %c0_209 = arith.constant 0 : index
    %351 = vector.load %arg7[%c1_205, %c0_206, %c1_207, %c0_208, %c0_209] : memref<2x3x5x32x1xf32, #tpu.memory_space<vmem>>, vector<1x1x1x32x1xf32>
    %352 = vector.shape_cast %351 : vector<1x1x1x32x1xf32> to vector<32x1xf32>
    %353 = vector.broadcast %352 : vector<32x1xf32> to vector<32x128xf32>
    %354 = arith.mulf %350, %353 : vector<32x128xf32>
    %355 = arith.addf %349, %354 : vector<32x128xf32>
    %356 = vector.extract_strided_slice %344 {offsets = [0, 2], sizes = [32, 128], strides = [1, 1]} : vector<32x132xf32> to vector<32x128xf32>
    %c1_210 = arith.constant 1 : index
    %c0_211 = arith.constant 0 : index
    %c2_212 = arith.constant 2 : index
    %c0_213 = arith.constant 0 : index
    %c0_214 = arith.constant 0 : index
    %357 = vector.load %arg7[%c1_210, %c0_211, %c2_212, %c0_213, %c0_214] : memref<2x3x5x32x1xf32, #tpu.memory_space<vmem>>, vector<1x1x1x32x1xf32>
    %358 = vector.shape_cast %357 : vector<1x1x1x32x1xf32> to vector<32x1xf32>
    %359 = vector.broadcast %358 : vector<32x1xf32> to vector<32x128xf32>
    %360 = arith.mulf %356, %359 : vector<32x128xf32>
    %361 = arith.addf %355, %360 : vector<32x128xf32>
    %362 = vector.extract_strided_slice %344 {offsets = [0, 3], sizes = [32, 128], strides = [1, 1]} : vector<32x132xf32> to vector<32x128xf32>
    %c1_215 = arith.constant 1 : index
    %c0_216 = arith.constant 0 : index
    %c3_217 = arith.constant 3 : index
    %c0_218 = arith.constant 0 : index
    %c0_219 = arith.constant 0 : index
    %363 = vector.load %arg7[%c1_215, %c0_216, %c3_217, %c0_218, %c0_219] : memref<2x3x5x32x1xf32, #tpu.memory_space<vmem>>, vector<1x1x1x32x1xf32>
    %364 = vector.shape_cast %363 : vector<1x1x1x32x1xf32> to vector<32x1xf32>
    %365 = vector.broadcast %364 : vector<32x1xf32> to vector<32x128xf32>
    %366 = arith.mulf %362, %365 : vector<32x128xf32>
    %367 = arith.addf %361, %366 : vector<32x128xf32>
    %368 = vector.extract_strided_slice %344 {offsets = [0, 4], sizes = [32, 128], strides = [1, 1]} : vector<32x132xf32> to vector<32x128xf32>
    %c1_220 = arith.constant 1 : index
    %c0_221 = arith.constant 0 : index
    %c4_222 = arith.constant 4 : index
    %c0_223 = arith.constant 0 : index
    %c0_224 = arith.constant 0 : index
    %369 = vector.load %arg7[%c1_220, %c0_221, %c4_222, %c0_223, %c0_224] : memref<2x3x5x32x1xf32, #tpu.memory_space<vmem>>, vector<1x1x1x32x1xf32>
    %370 = vector.shape_cast %369 : vector<1x1x1x32x1xf32> to vector<32x1xf32>
    %371 = vector.broadcast %370 : vector<32x1xf32> to vector<32x128xf32>
    %372 = arith.mulf %368, %371 : vector<32x128xf32>
    %373 = arith.addf %367, %372 : vector<32x128xf32>
    %c1_225 = arith.constant 1 : index
    %c0_226 = arith.constant 0 : index
    %c0_227 = arith.constant 0 : index
    %c0_228 = arith.constant 0 : index
    %374 = vector.load %arg8[%c1_225, %c0_226, %c0_227, %c0_228] : memref<2x3x32x1xf32, #tpu.memory_space<vmem>>, vector<1x1x32x1xf32>
    %375 = vector.shape_cast %374 : vector<1x1x32x1xf32> to vector<32x1xf32>
    %376 = vector.broadcast %375 : vector<32x1xf32> to vector<32x128xf32>
    %377 = arith.addf %373, %376 : vector<32x128xf32>
    %c1_229 = arith.constant 1 : index
    %c0_230 = arith.constant 0 : index
    %c0_231 = arith.constant 0 : index
    %c0_232 = arith.constant 0 : index
    %378 = vector.load %arg9[%c1_229, %c0_230, %c0_231, %c0_232] : memref<2x3x32x1xf32, #tpu.memory_space<vmem>>, vector<1x1x32x1xf32>
    %379 = vector.shape_cast %378 : vector<1x1x32x1xf32> to vector<32x1xf32>
    %c1_233 = arith.constant 1 : index
    %c0_234 = arith.constant 0 : index
    %c0_235 = arith.constant 0 : index
    %c0_236 = arith.constant 0 : index
    %380 = vector.load %arg10[%c1_233, %c0_234, %c0_235, %c0_236] : memref<2x3x32x1xf32, #tpu.memory_space<vmem>>, vector<1x1x32x1xf32>
    %381 = vector.shape_cast %380 : vector<1x1x32x1xf32> to vector<32x1xf32>
    %382 = vector.shape_cast %377 : vector<32x128xf32> to vector<1x32x128xf32>
    %cst_237 = arith.constant dense<0.000000e+00> : vector<1xf32>
    %383 = vector.multi_reduction <add>, %382, %cst_237 [1, 2] : vector<1x32x128xf32> to vector<1xf32>
    %384 = vector.shape_cast %383 : vector<1xf32> to vector<1x1x1xf32>
    %385 = vector.extract %384[0, 0, 0] : f32 from vector<1x1x1xf32>
    %cst_238 = arith.constant 2.44140625E-4 : f32
    %386 = arith.mulf %385, %cst_238 : f32
    %387 = vector.broadcast %386 : f32 to vector<32x128xf32>
    %388 = arith.subf %377, %387 : vector<32x128xf32>
    %389 = arith.mulf %388, %388 : vector<32x128xf32>
    %390 = vector.shape_cast %389 : vector<32x128xf32> to vector<1x32x128xf32>
    %cst_239 = arith.constant dense<0.000000e+00> : vector<1xf32>
    %391 = vector.multi_reduction <add>, %390, %cst_239 [1, 2] : vector<1x32x128xf32> to vector<1xf32>
    %392 = vector.shape_cast %391 : vector<1xf32> to vector<1x1x1xf32>
    %393 = vector.extract %392[0, 0, 0] : f32 from vector<1x1x1xf32>
    %cst_240 = arith.constant 2.44140625E-4 : f32
    %394 = arith.mulf %393, %cst_240 : f32
    %cst_241 = arith.constant 9.99999993E-9 : f32
    %395 = arith.addf %394, %cst_241 : f32
    %396 = math.rsqrt %395 : f32
    %397 = vector.broadcast %396 : f32 to vector<32x128xf32>
    %398 = arith.mulf %388, %397 : vector<32x128xf32>
    %399 = vector.broadcast %379 : vector<32x1xf32> to vector<32x128xf32>
    %400 = arith.mulf %398, %399 : vector<32x128xf32>
    %401 = vector.broadcast %381 : vector<32x1xf32> to vector<32x128xf32>
    %402 = arith.addf %400, %401 : vector<32x128xf32>
    %cst_242 = arith.constant 0.000000e+00 : f32
    %403 = vector.broadcast %cst_242 : f32 to vector<32x2xf32>
    %404 = tpu.concatenate %403, %402, %403 in 1 : vector<32x2xf32>, vector<32x128xf32>, vector<32x2xf32> -> vector<32x132xf32>
    %405 = vector.extract_strided_slice %404 {offsets = [0, 0], sizes = [32, 128], strides = [1, 1]} : vector<32x132xf32> to vector<32x128xf32>
    %c1_243 = arith.constant 1 : index
    %c1_244 = arith.constant 1 : index
    %c0_245 = arith.constant 0 : index
    %c0_246 = arith.constant 0 : index
    %c0_247 = arith.constant 0 : index
    %406 = vector.load %arg7[%c1_243, %c1_244, %c0_245, %c0_246, %c0_247] : memref<2x3x5x32x1xf32, #tpu.memory_space<vmem>>, vector<1x1x1x32x1xf32>
    %407 = vector.shape_cast %406 : vector<1x1x1x32x1xf32> to vector<32x1xf32>
    %408 = vector.broadcast %407 : vector<32x1xf32> to vector<32x128xf32>
    %409 = arith.mulf %405, %408 : vector<32x128xf32>
    %410 = vector.extract_strided_slice %404 {offsets = [0, 1], sizes = [32, 128], strides = [1, 1]} : vector<32x132xf32> to vector<32x128xf32>
    %c1_248 = arith.constant 1 : index
    %c1_249 = arith.constant 1 : index
    %c1_250 = arith.constant 1 : index
    %c0_251 = arith.constant 0 : index
    %c0_252 = arith.constant 0 : index
    %411 = vector.load %arg7[%c1_248, %c1_249, %c1_250, %c0_251, %c0_252] : memref<2x3x5x32x1xf32, #tpu.memory_space<vmem>>, vector<1x1x1x32x1xf32>
    %412 = vector.shape_cast %411 : vector<1x1x1x32x1xf32> to vector<32x1xf32>
    %413 = vector.broadcast %412 : vector<32x1xf32> to vector<32x128xf32>
    %414 = arith.mulf %410, %413 : vector<32x128xf32>
    %415 = arith.addf %409, %414 : vector<32x128xf32>
    %416 = vector.extract_strided_slice %404 {offsets = [0, 2], sizes = [32, 128], strides = [1, 1]} : vector<32x132xf32> to vector<32x128xf32>
    %c1_253 = arith.constant 1 : index
    %c1_254 = arith.constant 1 : index
    %c2_255 = arith.constant 2 : index
    %c0_256 = arith.constant 0 : index
    %c0_257 = arith.constant 0 : index
    %417 = vector.load %arg7[%c1_253, %c1_254, %c2_255, %c0_256, %c0_257] : memref<2x3x5x32x1xf32, #tpu.memory_space<vmem>>, vector<1x1x1x32x1xf32>
    %418 = vector.shape_cast %417 : vector<1x1x1x32x1xf32> to vector<32x1xf32>
    %419 = vector.broadcast %418 : vector<32x1xf32> to vector<32x128xf32>
    %420 = arith.mulf %416, %419 : vector<32x128xf32>
    %421 = arith.addf %415, %420 : vector<32x128xf32>
    %422 = vector.extract_strided_slice %404 {offsets = [0, 3], sizes = [32, 128], strides = [1, 1]} : vector<32x132xf32> to vector<32x128xf32>
    %c1_258 = arith.constant 1 : index
    %c1_259 = arith.constant 1 : index
    %c3_260 = arith.constant 3 : index
    %c0_261 = arith.constant 0 : index
    %c0_262 = arith.constant 0 : index
    %423 = vector.load %arg7[%c1_258, %c1_259, %c3_260, %c0_261, %c0_262] : memref<2x3x5x32x1xf32, #tpu.memory_space<vmem>>, vector<1x1x1x32x1xf32>
    %424 = vector.shape_cast %423 : vector<1x1x1x32x1xf32> to vector<32x1xf32>
    %425 = vector.broadcast %424 : vector<32x1xf32> to vector<32x128xf32>
    %426 = arith.mulf %422, %425 : vector<32x128xf32>
    %427 = arith.addf %421, %426 : vector<32x128xf32>
    %428 = vector.extract_strided_slice %404 {offsets = [0, 4], sizes = [32, 128], strides = [1, 1]} : vector<32x132xf32> to vector<32x128xf32>
    %c1_263 = arith.constant 1 : index
    %c1_264 = arith.constant 1 : index
    %c4_265 = arith.constant 4 : index
    %c0_266 = arith.constant 0 : index
    %c0_267 = arith.constant 0 : index
    %429 = vector.load %arg7[%c1_263, %c1_264, %c4_265, %c0_266, %c0_267] : memref<2x3x5x32x1xf32, #tpu.memory_space<vmem>>, vector<1x1x1x32x1xf32>
    %430 = vector.shape_cast %429 : vector<1x1x1x32x1xf32> to vector<32x1xf32>
    %431 = vector.broadcast %430 : vector<32x1xf32> to vector<32x128xf32>
    %432 = arith.mulf %428, %431 : vector<32x128xf32>
    %433 = arith.addf %427, %432 : vector<32x128xf32>
    %cst_268 = arith.constant dense<0.000000e+00> : vector<32x64xf32>
    %434 = tpu.matmul %433, %6, %cst_268 {dimension_numbers = #tpu.dot_dimension_numbers<[1], [0], [0], [1], [0, 0, 1, 1], [], []>} : vector<32x128xf32>, vector<128x64xf32>, vector<32x64xf32> -> vector<32x64xf32>
    %c1_269 = arith.constant 1 : index
    %c1_270 = arith.constant 1 : index
    %c0_271 = arith.constant 0 : index
    %c0_272 = arith.constant 0 : index
    %435 = vector.load %arg8[%c1_269, %c1_270, %c0_271, %c0_272] : memref<2x3x32x1xf32, #tpu.memory_space<vmem>>, vector<1x1x32x1xf32>
    %436 = vector.shape_cast %435 : vector<1x1x32x1xf32> to vector<32x1xf32>
    %437 = vector.broadcast %436 : vector<32x1xf32> to vector<32x64xf32>
    %438 = arith.addf %434, %437 : vector<32x64xf32>
    %c1_273 = arith.constant 1 : index
    %c1_274 = arith.constant 1 : index
    %c0_275 = arith.constant 0 : index
    %c0_276 = arith.constant 0 : index
    %439 = vector.load %arg9[%c1_273, %c1_274, %c0_275, %c0_276] : memref<2x3x32x1xf32, #tpu.memory_space<vmem>>, vector<1x1x32x1xf32>
    %440 = vector.shape_cast %439 : vector<1x1x32x1xf32> to vector<32x1xf32>
    %c1_277 = arith.constant 1 : index
    %c1_278 = arith.constant 1 : index
    %c0_279 = arith.constant 0 : index
    %c0_280 = arith.constant 0 : index
    %441 = vector.load %arg10[%c1_277, %c1_278, %c0_279, %c0_280] : memref<2x3x32x1xf32, #tpu.memory_space<vmem>>, vector<1x1x32x1xf32>
    %442 = vector.shape_cast %441 : vector<1x1x32x1xf32> to vector<32x1xf32>
    %443 = vector.shape_cast %438 : vector<32x64xf32> to vector<1x32x64xf32>
    %cst_281 = arith.constant dense<0.000000e+00> : vector<1xf32>
    %444 = vector.multi_reduction <add>, %443, %cst_281 [1, 2] : vector<1x32x64xf32> to vector<1xf32>
    %445 = vector.shape_cast %444 : vector<1xf32> to vector<1x1x1xf32>
    %446 = vector.extract %445[0, 0, 0] : f32 from vector<1x1x1xf32>
    %cst_282 = arith.constant 4.8828125E-4 : f32
    %447 = arith.mulf %446, %cst_282 : f32
    %448 = vector.broadcast %447 : f32 to vector<32x64xf32>
    %449 = arith.subf %438, %448 : vector<32x64xf32>
    %450 = arith.mulf %449, %449 : vector<32x64xf32>
    %451 = vector.shape_cast %450 : vector<32x64xf32> to vector<1x32x64xf32>
    %cst_283 = arith.constant dense<0.000000e+00> : vector<1xf32>
    %452 = vector.multi_reduction <add>, %451, %cst_283 [1, 2] : vector<1x32x64xf32> to vector<1xf32>
    %453 = vector.shape_cast %452 : vector<1xf32> to vector<1x1x1xf32>
    %454 = vector.extract %453[0, 0, 0] : f32 from vector<1x1x1xf32>
    %cst_284 = arith.constant 4.8828125E-4 : f32
    %455 = arith.mulf %454, %cst_284 : f32
    %cst_285 = arith.constant 9.99999993E-9 : f32
    %456 = arith.addf %455, %cst_285 : f32
    %457 = math.rsqrt %456 : f32
    %458 = vector.broadcast %457 : f32 to vector<32x64xf32>
    %459 = arith.mulf %449, %458 : vector<32x64xf32>
    %460 = vector.broadcast %440 : vector<32x1xf32> to vector<32x64xf32>
    %461 = arith.mulf %459, %460 : vector<32x64xf32>
    %462 = vector.broadcast %442 : vector<32x1xf32> to vector<32x64xf32>
    %463 = arith.addf %461, %462 : vector<32x64xf32>
    %cst_286 = arith.constant 0.000000e+00 : f32
    %464 = vector.broadcast %cst_286 : f32 to vector<32x2xf32>
    %465 = tpu.concatenate %464, %463, %464 in 1 : vector<32x2xf32>, vector<32x64xf32>, vector<32x2xf32> -> vector<32x68xf32>
    %466 = vector.extract_strided_slice %465 {offsets = [0, 0], sizes = [32, 64], strides = [1, 1]} : vector<32x68xf32> to vector<32x64xf32>
    %c1_287 = arith.constant 1 : index
    %c2_288 = arith.constant 2 : index
    %c0_289 = arith.constant 0 : index
    %c0_290 = arith.constant 0 : index
    %c0_291 = arith.constant 0 : index
    %467 = vector.load %arg7[%c1_287, %c2_288, %c0_289, %c0_290, %c0_291] : memref<2x3x5x32x1xf32, #tpu.memory_space<vmem>>, vector<1x1x1x32x1xf32>
    %468 = vector.shape_cast %467 : vector<1x1x1x32x1xf32> to vector<32x1xf32>
    %469 = vector.broadcast %468 : vector<32x1xf32> to vector<32x64xf32>
    %470 = arith.mulf %466, %469 : vector<32x64xf32>
    %471 = vector.extract_strided_slice %465 {offsets = [0, 1], sizes = [32, 64], strides = [1, 1]} : vector<32x68xf32> to vector<32x64xf32>
    %c1_292 = arith.constant 1 : index
    %c2_293 = arith.constant 2 : index
    %c1_294 = arith.constant 1 : index
    %c0_295 = arith.constant 0 : index
    %c0_296 = arith.constant 0 : index
    %472 = vector.load %arg7[%c1_292, %c2_293, %c1_294, %c0_295, %c0_296] : memref<2x3x5x32x1xf32, #tpu.memory_space<vmem>>, vector<1x1x1x32x1xf32>
    %473 = vector.shape_cast %472 : vector<1x1x1x32x1xf32> to vector<32x1xf32>
    %474 = vector.broadcast %473 : vector<32x1xf32> to vector<32x64xf32>
    %475 = arith.mulf %471, %474 : vector<32x64xf32>
    %476 = arith.addf %470, %475 : vector<32x64xf32>
    %477 = vector.extract_strided_slice %465 {offsets = [0, 2], sizes = [32, 64], strides = [1, 1]} : vector<32x68xf32> to vector<32x64xf32>
    %c1_297 = arith.constant 1 : index
    %c2_298 = arith.constant 2 : index
    %c2_299 = arith.constant 2 : index
    %c0_300 = arith.constant 0 : index
    %c0_301 = arith.constant 0 : index
    %478 = vector.load %arg7[%c1_297, %c2_298, %c2_299, %c0_300, %c0_301] : memref<2x3x5x32x1xf32, #tpu.memory_space<vmem>>, vector<1x1x1x32x1xf32>
    %479 = vector.shape_cast %478 : vector<1x1x1x32x1xf32> to vector<32x1xf32>
    %480 = vector.broadcast %479 : vector<32x1xf32> to vector<32x64xf32>
    %481 = arith.mulf %477, %480 : vector<32x64xf32>
    %482 = arith.addf %476, %481 : vector<32x64xf32>
    %483 = vector.extract_strided_slice %465 {offsets = [0, 3], sizes = [32, 64], strides = [1, 1]} : vector<32x68xf32> to vector<32x64xf32>
    %c1_302 = arith.constant 1 : index
    %c2_303 = arith.constant 2 : index
    %c3_304 = arith.constant 3 : index
    %c0_305 = arith.constant 0 : index
    %c0_306 = arith.constant 0 : index
    %484 = vector.load %arg7[%c1_302, %c2_303, %c3_304, %c0_305, %c0_306] : memref<2x3x5x32x1xf32, #tpu.memory_space<vmem>>, vector<1x1x1x32x1xf32>
    %485 = vector.shape_cast %484 : vector<1x1x1x32x1xf32> to vector<32x1xf32>
    %486 = vector.broadcast %485 : vector<32x1xf32> to vector<32x64xf32>
    %487 = arith.mulf %483, %486 : vector<32x64xf32>
    %488 = arith.addf %482, %487 : vector<32x64xf32>
    %489 = vector.extract_strided_slice %465 {offsets = [0, 4], sizes = [32, 64], strides = [1, 1]} : vector<32x68xf32> to vector<32x64xf32>
    %c1_307 = arith.constant 1 : index
    %c2_308 = arith.constant 2 : index
    %c4_309 = arith.constant 4 : index
    %c0_310 = arith.constant 0 : index
    %c0_311 = arith.constant 0 : index
    %490 = vector.load %arg7[%c1_307, %c2_308, %c4_309, %c0_310, %c0_311] : memref<2x3x5x32x1xf32, #tpu.memory_space<vmem>>, vector<1x1x1x32x1xf32>
    %491 = vector.shape_cast %490 : vector<1x1x1x32x1xf32> to vector<32x1xf32>
    %492 = vector.broadcast %491 : vector<32x1xf32> to vector<32x64xf32>
    %493 = arith.mulf %489, %492 : vector<32x64xf32>
    %494 = arith.addf %488, %493 : vector<32x64xf32>
    %cst_312 = arith.constant dense<0.000000e+00> : vector<32x32xf32>
    %495 = tpu.matmul %494, %13, %cst_312 {dimension_numbers = #tpu.dot_dimension_numbers<[1], [0], [0], [1], [0, 0, 1, 1], [], []>} : vector<32x64xf32>, vector<64x32xf32>, vector<32x32xf32> -> vector<32x32xf32>
    %c1_313 = arith.constant 1 : index
    %c2_314 = arith.constant 2 : index
    %c0_315 = arith.constant 0 : index
    %c0_316 = arith.constant 0 : index
    %496 = vector.load %arg8[%c1_313, %c2_314, %c0_315, %c0_316] : memref<2x3x32x1xf32, #tpu.memory_space<vmem>>, vector<1x1x32x1xf32>
    %497 = vector.shape_cast %496 : vector<1x1x32x1xf32> to vector<32x1xf32>
    %498 = vector.broadcast %497 : vector<32x1xf32> to vector<32x32xf32>
    %499 = arith.addf %495, %498 : vector<32x32xf32>
    %c1_317 = arith.constant 1 : index
    %c2_318 = arith.constant 2 : index
    %c0_319 = arith.constant 0 : index
    %c0_320 = arith.constant 0 : index
    %500 = vector.load %arg9[%c1_317, %c2_318, %c0_319, %c0_320] : memref<2x3x32x1xf32, #tpu.memory_space<vmem>>, vector<1x1x32x1xf32>
    %501 = vector.shape_cast %500 : vector<1x1x32x1xf32> to vector<32x1xf32>
    %c1_321 = arith.constant 1 : index
    %c2_322 = arith.constant 2 : index
    %c0_323 = arith.constant 0 : index
    %c0_324 = arith.constant 0 : index
    %502 = vector.load %arg10[%c1_321, %c2_322, %c0_323, %c0_324] : memref<2x3x32x1xf32, #tpu.memory_space<vmem>>, vector<1x1x32x1xf32>
    %503 = vector.shape_cast %502 : vector<1x1x32x1xf32> to vector<32x1xf32>
    %504 = vector.shape_cast %499 : vector<32x32xf32> to vector<1x32x32xf32>
    %cst_325 = arith.constant dense<0.000000e+00> : vector<1xf32>
    %505 = vector.multi_reduction <add>, %504, %cst_325 [1, 2] : vector<1x32x32xf32> to vector<1xf32>
    %506 = vector.shape_cast %505 : vector<1xf32> to vector<1x1x1xf32>
    %507 = vector.extract %506[0, 0, 0] : f32 from vector<1x1x1xf32>
    %cst_326 = arith.constant 9.765625E-4 : f32
    %508 = arith.mulf %507, %cst_326 : f32
    %509 = vector.broadcast %508 : f32 to vector<32x32xf32>
    %510 = arith.subf %499, %509 : vector<32x32xf32>
    %511 = arith.mulf %510, %510 : vector<32x32xf32>
    %512 = vector.shape_cast %511 : vector<32x32xf32> to vector<1x32x32xf32>
    %cst_327 = arith.constant dense<0.000000e+00> : vector<1xf32>
    %513 = vector.multi_reduction <add>, %512, %cst_327 [1, 2] : vector<1x32x32xf32> to vector<1xf32>
    %514 = vector.shape_cast %513 : vector<1xf32> to vector<1x1x1xf32>
    %515 = vector.extract %514[0, 0, 0] : f32 from vector<1x1x1xf32>
    %cst_328 = arith.constant 9.765625E-4 : f32
    %516 = arith.mulf %515, %cst_328 : f32
    %cst_329 = arith.constant 9.99999993E-9 : f32
    %517 = arith.addf %516, %cst_329 : f32
    %518 = math.rsqrt %517 : f32
    %519 = vector.broadcast %518 : f32 to vector<32x32xf32>
    %520 = arith.mulf %510, %519 : vector<32x32xf32>
    %521 = vector.broadcast %501 : vector<32x1xf32> to vector<32x32xf32>
    %522 = arith.mulf %520, %521 : vector<32x32xf32>
    %523 = vector.broadcast %503 : vector<32x1xf32> to vector<32x32xf32>
    %524 = arith.addf %522, %523 : vector<32x32xf32>
    %cst_330 = arith.constant dense<0.000000e+00> : vector<32x64xf32>
    %525 = tpu.matmul %524, %39, %cst_330 {dimension_numbers = #tpu.dot_dimension_numbers<[1], [0], [0], [1], [0, 0, 1, 1], [], []>} : vector<32x32xf32>, vector<32x64xf32>, vector<32x64xf32> -> vector<32x64xf32>
    %526 = arith.addf %463, %525 : vector<32x64xf32>
    %cst_331 = arith.constant dense<0.000000e+00> : vector<32x128xf32>
    %527 = tpu.matmul %526, %26, %cst_331 {dimension_numbers = #tpu.dot_dimension_numbers<[1], [0], [0], [1], [0, 0, 1, 1], [], []>} : vector<32x64xf32>, vector<64x128xf32>, vector<32x128xf32> -> vector<32x128xf32>
    %528 = arith.addf %402, %527 : vector<32x128xf32>
    %c1_332 = arith.constant 1 : index
    %c0_333 = arith.constant 0 : index
    %c0_334 = arith.constant 0 : index
    %529 = vector.load %arg11[%c1_332, %c0_333, %c0_334] : memref<2x32x1xf32, #tpu.memory_space<vmem>>, vector<1x32x1xf32>
    %530 = vector.shape_cast %529 : vector<1x32x1xf32> to vector<32x1xf32>
    %c1_335 = arith.constant 1 : index
    %c0_336 = arith.constant 0 : index
    %c0_337 = arith.constant 0 : index
    %531 = vector.load %arg12[%c1_335, %c0_336, %c0_337] : memref<2x32x1xf32, #tpu.memory_space<vmem>>, vector<1x32x1xf32>
    %532 = vector.shape_cast %531 : vector<1x32x1xf32> to vector<32x1xf32>
    %533 = vector.shape_cast %528 : vector<32x128xf32> to vector<1x32x128xf32>
    %cst_338 = arith.constant dense<0.000000e+00> : vector<1xf32>
    %534 = vector.multi_reduction <add>, %533, %cst_338 [1, 2] : vector<1x32x128xf32> to vector<1xf32>
    %535 = vector.shape_cast %534 : vector<1xf32> to vector<1x1x1xf32>
    %536 = vector.extract %535[0, 0, 0] : f32 from vector<1x1x1xf32>
    %cst_339 = arith.constant 2.44140625E-4 : f32
    %537 = arith.mulf %536, %cst_339 : f32
    %538 = vector.broadcast %537 : f32 to vector<32x128xf32>
    %539 = arith.subf %528, %538 : vector<32x128xf32>
    %540 = arith.mulf %539, %539 : vector<32x128xf32>
    %541 = vector.shape_cast %540 : vector<32x128xf32> to vector<1x32x128xf32>
    %cst_340 = arith.constant dense<0.000000e+00> : vector<1xf32>
    %542 = vector.multi_reduction <add>, %541, %cst_340 [1, 2] : vector<1x32x128xf32> to vector<1xf32>
    %543 = vector.shape_cast %542 : vector<1xf32> to vector<1x1x1xf32>
    %544 = vector.extract %543[0, 0, 0] : f32 from vector<1x1x1xf32>
    %cst_341 = arith.constant 2.44140625E-4 : f32
    %545 = arith.mulf %544, %cst_341 : f32
    %cst_342 = arith.constant 9.99999993E-9 : f32
    %546 = arith.addf %545, %cst_342 : f32
    %547 = math.rsqrt %546 : f32
    %548 = vector.broadcast %547 : f32 to vector<32x128xf32>
    %549 = arith.mulf %539, %548 : vector<32x128xf32>
    %550 = vector.broadcast %530 : vector<32x1xf32> to vector<32x128xf32>
    %551 = arith.mulf %549, %550 : vector<32x128xf32>
    %552 = vector.broadcast %532 : vector<32x1xf32> to vector<32x128xf32>
    %553 = arith.addf %551, %552 : vector<32x128xf32>
    %c1_343 = arith.constant 1 : index
    %c1_344 = arith.constant 1 : index
    %554 = memref.load %arg2[%c1_343, %c1_344] : memref<2x2xf32, #tpu.memory_space<smem>>
    %cst_345 = arith.constant 0.000000e+00 : f32
    %555 = vector.broadcast %cst_345 : f32 to vector<32x128xf32>
    %556 = arith.cmpf oge, %553, %555 : vector<32x128xf32>
    %557 = vector.broadcast %554 : f32 to vector<32x128xf32>
    %558 = arith.mulf %557, %553 : vector<32x128xf32>
    %559 = arith.select %556, %553, %558 : vector<32x128xi1>, vector<32x128xf32>
    %c1_346 = arith.constant 1 : index
    %c0_347 = arith.constant 0 : index
    %c0_348 = arith.constant 0 : index
    %560 = vector.load %arg13[%c1_346, %c0_347, %c0_348] : memref<2x16x32xf32, #tpu.memory_space<vmem>>, vector<1x16x32xf32>
    %561 = vector.shape_cast %560 : vector<1x16x32xf32> to vector<16x32xf32>
    %cst_349 = arith.constant dense<0.000000e+00> : vector<16x128xf32>
    %562 = tpu.matmul %561, %559, %cst_349 {dimension_numbers = #tpu.dot_dimension_numbers<[1], [0], [0], [1], [0, 0, 1, 1], [], []>} : vector<16x32xf32>, vector<32x128xf32>, vector<16x128xf32> -> vector<16x128xf32>
    %c1_350 = arith.constant 1 : index
    %c0_351 = arith.constant 0 : index
    %c0_352 = arith.constant 0 : index
    %563 = vector.load %arg14[%c1_350, %c0_351, %c0_352] : memref<2x16x1xf32, #tpu.memory_space<vmem>>, vector<1x16x1xf32>
    %564 = vector.shape_cast %563 : vector<1x16x1xf32> to vector<16x1xf32>
    %565 = vector.broadcast %564 : vector<16x1xf32> to vector<16x128xf32>
    %566 = arith.addf %562, %565 : vector<16x128xf32>
    %567 = arith.addf %566, %304 : vector<16x128xf32>
    %c0_353 = arith.constant 0 : index
    %c0_354 = arith.constant 0 : index
    %c0_355 = arith.constant 0 : index
    %568 = vector.load %arg15[%c0_353, %c0_354, %c0_355] : memref<1x16x128xf32, #tpu.memory_space<vmem>>, vector<1x16x128xf32>
    %569 = vector.shape_cast %568 : vector<1x16x128xf32> to vector<16x128xf32>
    %570 = vector.shape_cast %567 : vector<16x128xf32> to vector<1x16x128xf32>
    tpu.vector_store %arg15[%c0_353, %c0_354, %c0_355], %570 {strides = array<i32>} : memref<1x16x128xf32, #tpu.memory_space<vmem>>, vector<1x16x128xf32>,
    return
  }
  func.func @transform_0(%arg0: i32) -> (i32, i32, i32) {
    %c0_i32 = arith.constant 0 : i32
    %c0_i32_0 = arith.constant 0 : i32
    %c0_i32_1 = arith.constant 0 : i32
    return %arg0, %c0_i32, %c0_i32_0 : i32, i32, i32
  }
  func.func @transform_1(%arg0: i32) -> (i32, i32) {
    %c0_i32 = arith.constant 0 : i32
    %c0_i32_0 = arith.constant 0 : i32
    %c0_i32_1 = arith.constant 0 : i32
    return %c0_i32, %c0_i32_0 : i32, i32
  }
  func.func @transform_2(%arg0: i32) -> (i32, i32, i32) {
    %c0_i32 = arith.constant 0 : i32
    %c0_i32_0 = arith.constant 0 : i32
    %c0_i32_1 = arith.constant 0 : i32
    %c0_i32_2 = arith.constant 0 : i32
    return %c0_i32, %c0_i32_0, %c0_i32_1 : i32, i32, i32
  }
  func.func @transform_3(%arg0: i32) -> (i32, i32, i32) {
    %c0_i32 = arith.constant 0 : i32
    %c0_i32_0 = arith.constant 0 : i32
    %c0_i32_1 = arith.constant 0 : i32
    %c0_i32_2 = arith.constant 0 : i32
    return %c0_i32, %c0_i32_0, %c0_i32_1 : i32, i32, i32
  }
  func.func @transform_4(%arg0: i32) -> (i32, i32, i32) {
    %c0_i32 = arith.constant 0 : i32
    %c0_i32_0 = arith.constant 0 : i32
    %c0_i32_1 = arith.constant 0 : i32
    %c0_i32_2 = arith.constant 0 : i32
    return %c0_i32, %c0_i32_0, %c0_i32_1 : i32, i32, i32
  }
  func.func @transform_5(%arg0: i32) -> (i32, i32, i32) {
    %c0_i32 = arith.constant 0 : i32
    %c0_i32_0 = arith.constant 0 : i32
    %c0_i32_1 = arith.constant 0 : i32
    %c0_i32_2 = arith.constant 0 : i32
    return %c0_i32, %c0_i32_0, %c0_i32_1 : i32, i32, i32
  }
  func.func @transform_6(%arg0: i32) -> (i32, i32, i32, i32, i32) {
    %c0_i32 = arith.constant 0 : i32
    %c0_i32_0 = arith.constant 0 : i32
    %c0_i32_1 = arith.constant 0 : i32
    %c0_i32_2 = arith.constant 0 : i32
    %c0_i32_3 = arith.constant 0 : i32
    %c0_i32_4 = arith.constant 0 : i32
    return %c0_i32, %c0_i32_0, %c0_i32_1, %c0_i32_2, %c0_i32_3 : i32, i32, i32, i32, i32
  }
  func.func @transform_7(%arg0: i32) -> (i32, i32, i32, i32) {
    %c0_i32 = arith.constant 0 : i32
    %c0_i32_0 = arith.constant 0 : i32
    %c0_i32_1 = arith.constant 0 : i32
    %c0_i32_2 = arith.constant 0 : i32
    %c0_i32_3 = arith.constant 0 : i32
    return %c0_i32, %c0_i32_0, %c0_i32_1, %c0_i32_2 : i32, i32, i32, i32
  }
  func.func @transform_8(%arg0: i32) -> (i32, i32, i32, i32) {
    %c0_i32 = arith.constant 0 : i32
    %c0_i32_0 = arith.constant 0 : i32
    %c0_i32_1 = arith.constant 0 : i32
    %c0_i32_2 = arith.constant 0 : i32
    %c0_i32_3 = arith.constant 0 : i32
    return %c0_i32, %c0_i32_0, %c0_i32_1, %c0_i32_2 : i32, i32, i32, i32
  }
  func.func @transform_9(%arg0: i32) -> (i32, i32, i32, i32) {
    %c0_i32 = arith.constant 0 : i32
    %c0_i32_0 = arith.constant 0 : i32
    %c0_i32_1 = arith.constant 0 : i32
    %c0_i32_2 = arith.constant 0 : i32
    %c0_i32_3 = arith.constant 0 : i32
    return %c0_i32, %c0_i32_0, %c0_i32_1, %c0_i32_2 : i32, i32, i32, i32
  }
  func.func @transform_10(%arg0: i32) -> (i32, i32, i32) {
    %c0_i32 = arith.constant 0 : i32
    %c0_i32_0 = arith.constant 0 : i32
    %c0_i32_1 = arith.constant 0 : i32
    %c0_i32_2 = arith.constant 0 : i32
    return %c0_i32, %c0_i32_0, %c0_i32_1 : i32, i32, i32
  }
  func.func @transform_11(%arg0: i32) -> (i32, i32, i32) {
    %c0_i32 = arith.constant 0 : i32
    %c0_i32_0 = arith.constant 0 : i32
    %c0_i32_1 = arith.constant 0 : i32
    %c0_i32_2 = arith.constant 0 : i32
    return %c0_i32, %c0_i32_0, %c0_i32_1 : i32, i32, i32
  }
  func.func @transform_12(%arg0: i32) -> (i32, i32, i32) {
    %c0_i32 = arith.constant 0 : i32
    %c0_i32_0 = arith.constant 0 : i32
    %c0_i32_1 = arith.constant 0 : i32
    %c0_i32_2 = arith.constant 0 : i32
    return %c0_i32, %c0_i32_0, %c0_i32_1 : i32, i32, i32
  }
  func.func @transform_13(%arg0: i32) -> (i32, i32, i32) {
    %c0_i32 = arith.constant 0 : i32
    %c0_i32_0 = arith.constant 0 : i32
    %c0_i32_1 = arith.constant 0 : i32
    %c0_i32_2 = arith.constant 0 : i32
    return %c0_i32, %c0_i32_0, %c0_i32_1 : i32, i32, i32
  }
  func.func @transform_14(%arg0: i32) -> (i32, i32, i32) {
    %c0_i32 = arith.constant 0 : i32
    %c0_i32_0 = arith.constant 0 : i32
    %c0_i32_1 = arith.constant 0 : i32
    return %arg0, %c0_i32, %c0_i32_0 : i32, i32, i32
  }
}

</mosaic_0001>

<bundles_post_ra>
// kernel: sudormrf_wrapper_forward.1
= control target key start
LH: loop header
LB: loop body
LE: loop exit
PB: predicated region body
PF: predicated region fallthrough
CT: control target
= control target key end

     0   :  { %s8243_s0 = inlined_call_operand.vmem [shape: f32[2,16,128], index: 0, kind: input, shape index: {}]   ;;  %s8244_s1 = inlined_call_operand.vmem [shape: f32[2,2], index: 1, kind: input, shape index: {}]   ;;  %s8245_s2 = inlined_call_operand.vmem [shape: f32[2,32,16], index: 2, kind: input, shape index: {}]   ;;  %s8246_s3 = inlined_call_operand.vmem [shape: f32[2,32,1], index: 3, kind: input, shape index: {}]   ;;  %s8247_s4 = inlined_call_operand.vmem [shape: f32[2,32,1], index: 4, kind: input, shape index: {}]   ;;  %s8248_s5 = inlined_call_operand.vmem [shape: f32[2,32,1], index: 5, kind: input, shape index: {}]   ;;  %s8249_s6 = inlined_call_operand.vmem [shape: f32[2,3,5,32,1], index: 6, kind: input, shape index: {}]   ;;  %s8250_s7 = inlined_call_operand.vmem [shape: f32[2,3,32,1], index: 7, kind: input, shape index: {}]   ;;  %s8251_s8 = inlined_call_operand.vmem [shape: f32[2,3,32,1], index: 8, kind: input, shape index: {}]   ;;  %s8252_s9 = inlined_call_operand.vmem [shape: f32[2,3,32,1], index: 9, kind: input, shape index: {}]   ;;  %s8253_s10 = inlined_call_operand.vmem [shape: f32[2,32,1], index: 10, kind: input, shape index: {}]   ;;  %s8254_s11 = inlined_call_operand.vmem [shape: f32[2,32,1], index: 11, kind: input, shape index: {}]   ;;  %s8255_s12 = inlined_call_operand.vmem [shape: f32[2,16,32], index: 12, kind: input, shape index: {}]   ;;  %s8256_s13 = inlined_call_operand.vmem [shape: f32[2,16,1], index: 13, kind: input, shape index: {}]   ;;  %s8257_s14 = inlined_call_operand.hbm [shape: f32[2,16,128], index: 14, kind: output, shape index: {}]  }
   0x1   :  { %8292 = sst [smem:[#allocation14_spill]] %s8243_s0 }
   0x2   :  { %8293 = sst [smem:[#allocation15_spill]] %s8244_s1 }
   0x3   :  { %8294 = sst [smem:[#allocation16_spill]] %s8257_s14 }
   0x4   :  { %19 = vsyncpa [#allocation4], 0 }
   0x5   :  { %20 = vsyncpa [#allocation3], 0 }
   0x6   :  { %22 = vsyncpa [#allocation3 + $0x1], 0  ;;  %s6190_s29 = smov 0   ;;  %s6192_s30 = smov 0  }
   0x7   :  { %s6194_s15 = smov 0   ;;  %s6196_s16 = smov 0  }
   0x8 LB: > { %8295 = sst [smem:[#allocation8_spill]] %s6090_s29  ;;  %s6211_s17 = sadd.s32 4294967295, %s6102_s16   ;;  %s6102_s16 = sphi %s6196_s16, %s8442_s16   ;;  %s6098_s15 = sphi %s6194_s15, %s8444_s15   ;;  %s6094_s30 = sphi %s6192_s30, %s8446_s30   ;;  %s6090_s29 = sphi %s6190_s29, %s8445_s29  }
   0x9   : > { %8296 = sst [smem:[#allocation9_spill]] %s6098_s15  ;;  %s4993_s18 = sadd.s32 4294967294, %s6102_s16  }
   0xa   : > { %8297 = sst [smem:[#allocation10_spill]] %s6102_s16  ;;  %s6215_s19 = sadd.s32 1, %s6102_s16  }
   0xb   : > { %8298 = sst [smem:[#allocation11_spill]] %s6215_s19  ;;  %s334_s20 = sadd.s32 1, %s6098_s15 }
   0xc   : > { %s331_s21 = ssub.s32 %s6102_s16, %s6215_s19  ;;  %p344_p0 = scmp.ne.s32.totalorder %s6098_s15, %s6094_s30 }
   0xd   : > { %p332_p1 = scmp.eq.s32.totalorder %s331_s21, 0  ;;  %p345_p2 = scmp.eq.s32.totalorder %s6211_s17, 1 }
   0xe   : > { %p350_p3 = scmp.ne.s32.totalorder %s6094_s30, %s6090_s29  ;;  %p351_p4 = scmp.eq.s32.totalorder %s4993_s18, 1 }
   0xf   : > { %s6226_s22 = scalar_select %p332_p1, %s6098_s15, %s334_s20  }
  0x10   : > { %p6228_p5 = por %p345_p2, %p344_p0  ;;  %p6232_p6 = por %p351_p4, %p350_p3 }
  0x11   : > { %8299 = sst [smem:[#allocation12_spill]] %s6226_s22  ;;  %p4994_p7 = scmp.ge.s32.totalorder %s6102_s16, 1 }
  0x12   : > { %s8301_s24 = scalar_select %p6232_p6, 1, 0 }
  0x13   : > { %p358_p8 = scmp.lt.s32.totalorder %s6102_s16, 3  ;;  %p5952_p9 = scmp.eq.s32.totalorder %s6211_s17, 0 }
  0x14   : > { %8302 = sst [smem:[#allocation13_spill]] %s8301_s24  ;;  %s8304_s1 = sld [smem:[#allocation15_spill]] }
  0x15   : > { %p6239_p10 = pnand %p4994_p7, %p358_p8 }
  0x17   : > { %p5944_p11 = pneg %p6239_p10 }
  0x19   : > { %p5945_p12 = pnand %p5952_p9, %p5944_p11 }
  0x1a   : > { %s371_s28 = sshll.u32 %s8304_s1, 4  ;;  %s372_s28 = int_to_ptr.vmem [resolvable:$true] %s371_s28 }
  0x1b   : > { %s6021_s18 = scalar_lea.vmem %s372_s28, 32  ;;  %p6023_p0 = pneg %p5945_p12 }
  0x1c   : > { %p6022_p13 = scmp.ne.s32.totalorder %s372_s28, %s6021_s18  ;;  %p6029_p3 = scmp.lt.s32.totalorder %s372_s28, %s372_s28 }
  0x1d   : > { %p6030_p4 = scmp.lt.s32.totalorder %s6021_s18, %s6021_s18 }
  0x1e   : > { %p6024_p1 = pnand %p6023_p0, %p6022_p13 }
  0x1f   : > { %p6031_p7 = por %p6030_p4, %p6029_p3 }
  0x20   : > { %p6025_p2 = pneg %p6024_p1 }
  0x22   : > { %p6032_p8 = pnand %p6031_p7, %p6025_p2 }
  0x24   : > { %6035 = shalt.err (!%p6032_p8)
}
  0x25   : > { %s6104_s20 = smov [#allocation2]   ;;  %428 = sbr.rel (%p6239_p10) target bundleno = 9421 (0x24cd), region = 76 }
  0x26   : > { %5947 = dma.vmem_to_smem (!%p5945_p12), %s372_s28, 32, %s6104_s20, [#allocation4]  }
  0x2c   : > { %6081 = dma.done.wait (%p5952_p9), [#allocation4], 32  }
  0x2d   : > { %6083 = vsyncadd (%p5952_p9), [#allocation4], 4294967264 }
  0x2e   : > { %434 = sfence }
  0x2f   : > { %p475_p11 = scmp.lt.s32.totalorder %s6211_s17, 1  ;;  %v606_v0 = vld [vmem:[%s8245_s2] sm:$0xff]  ;;  %vm8271_vm0 = vcmask 130048   ;;  %v6105_v1 = vmov 0   ;;  %v612_v3 = vld [vmem:[%s8246_s3 + $0x10] sm:$0xff]  ;;  %v611_v4 = vld [vmem:[%s8246_s3 + $0x8] sm:$0xff] }
  0x30   : > { %5480 = vmatprep.mubr.msk.f32.mxu0 %vm8271_vm0, %v606_v0  ;;  %5997 = vset.pattern.permute.xlu0 %v6105_v1  ;;  %v610_v2 = vld [vmem:[%s8246_s3] sm:$0xff]  ;;  %v613_v5 = vld [vmem:[%s8246_s3 + $0x18] sm:$0xff]  ;;  %s8305_s0 = sld [smem:[#allocation14_spill]]  ;;  %v607_v9 = vld [vmem:[%s8245_s2 + $0x8] sm:$0xff]  ;;  %s832_s25 = sld [smem:[#allocation2]]  ;;  %vm8281_vm5 = vcmask 15360  }
  0x31   : > { %s476_s20 = scalar_select %p475_p11, %s6211_s17, 1  ;;  %616 = vperm.xlu0 %5997, %v610_v2   ;;  %5998 = vset.pattern.permute.xlu1 %v6105_v1  ;;  %v608_v10 = vld [vmem:[%s8245_s2 + $0x10] sm:$0xff]  ;;  %v609_v11 = vld [vmem:[%s8245_s2 + $0x18] sm:$0xff]  ;;  %v732_v27 = vld [vmem:[%s8247_s4] sm:$0xff]  ;;  %vm8280_vm6 = vcmask 1039360   ;;  %vm8279_vm7 = vcmask 1031168  }
  0x32   : > { %626 = vperm.xlu1 %5998, %v612_v3   ;;  %v734_v28 = vld [vmem:[%s8247_s4 + $0x10] sm:$0xff]  ;;  %v737_v29 = vld [vmem:[%s8248_s5 + $0x8] sm:$0xff]  ;;  %v5030_v31 = vld [vmem:[%s8249_s6 + $0x20] sm:$0xff]  ;;  %s8269_s28 = smov 2   ;;  %s8261_s15 = smov 124   ;;  %vm8278_vm8 = vcmask 1022976  }
  0x33   : > { %s5346_s26 = sshll.u32 %s476_s20, 4  ;;  %v738_v30 = vld [vmem:[%s8248_s5 + $0x10] sm:$0xff]  ;;  %v5035_v33 = vld [vmem:[%s8249_s6 + $0x48] sm:$0xff]  ;;  %v5041_v38 = vld [vmem:[%s8249_s6 + $0x78] sm:$0xff]  ;;  %vm8277_vm9 = vcmask 1014784  }
  0x34   : > { %v5032_v32 = vld [vmem:[%s8249_s6 + $0x30] sm:$0xff]  ;;  %v5039_v35 = vld [vmem:[%s8249_s6 + $0x68] sm:$0xff]  ;;  %v871_v39 = vld [vmem:[%s8249_s6] sm:$0xff] }
  0x35   : > { %621 = vperm.xlu0 %5997, %v611_v4   ;;  %v5036_v34 = vld [vmem:[%s8249_s6 + $0x50] sm:$0xff]  ;;  %v5043_v37 = vld [vmem:[%s8249_s6 + $0x88] sm:$0xff]  ;;  %v1179_v41 = vld [vmem:[%s8250_s7] sm:$0xff] }
  0x36   : > { %s6277_s27 = scalar_lea.vmem %s8305_s0, %s5346_s26  ;;  %631 = vperm.xlu1 %5998, %v613_v5   ;;  %v5040_v36 = vld [vmem:[%s8249_s6 + $0x70] sm:$0xff]  ;;  %v733_v61 = vld [vmem:[%s8247_s4 + $0x8] sm:$0xff]  ;;  %v736_v62 = vld [vmem:[%s8248_s5] sm:$0xff] }
  0x37   : > { %v604_v6 = vld [vmem:[%s6277_s27] sm:$0xff]  ;;  %v605_v7 = vld [vmem:[%s6277_s27 + $0x8] sm:$0xff]  ;;  %v873_v40 = vld [vmem:[%s8249_s6 + $0x10] sm:$0xff] }
  0x38   : > { %v5710_v8 = vpack.c.bf16 %v605_v7, %v604_v6  ;;  %v735_v63 = vld [vmem:[%s8247_s4 + $0x18] sm:$0xff]  ;;  %v5031_v1 = vld [vmem:[%s8249_s6 + $0x28] sm:$0xff]  ;;  %v5034_v2 = vld [vmem:[%s8249_s6 + $0x40] sm:$0xff] }
  0x39   : > { %v739_v0 = vld [vmem:[%s8248_s5 + $0x18] sm:$0xff]  ;;  %v5038_v4 = vld [vmem:[%s8249_s6 + $0x60] sm:$0xff]  ;;  %v5044_v7 = vld [vmem:[%s8249_s6 + $0x90] sm:$0xff] }
  0x3a   : > { %5711 = vmatprep.subr.bf16.mxu0 %v5710_v8  ;;  %v5033_v3 = vld [vmem:[%s8249_s6 + $0x38] sm:$0xff]  ;;  %v5042_v6 = vld [vmem:[%s8249_s6 + $0x80] sm:$0xff] }
  0x3b   : > { %5713 = vmatpush3.bf16.msra.mxu0 %v5710_v8  ;;  %v5037_v5 = vld [vmem:[%s8249_s6 + $0x58] sm:$0xff] }
  0x3c   : > { %v5045_v8 = vld [vmem:[%s8249_s6 + $0x98] sm:$0xff] }
  0x3e   : > { %5481 = vmatmul.mubr.msk.f32.vlgmr.msra.gmra.mrb[0].mxu0 %vm8271_vm0, %v607_v9  ;;  %v872_v9 = vld [vmem:[%s8249_s6 + $0x8] sm:$0xff] }
  0x3f   : > { %5483 = vmatprep.mubr.msk.f32.mxu0 %vm8271_vm0, %v608_v10  ;;  %v874_v10 = vld [vmem:[%s8249_s6 + $0x18] sm:$0xff] }
  0x42   : > { %5484 = vmatmul.mubr.msk.f32.gmra.mrb[2].mxu0 %vm8271_vm0, %v609_v11 }
  0xb0   : > { %v617_v12 = vpop.permute.xlu0 %616 }
  0xb1   : > { %v627_v13 = vpop.permute.xlu1 %626 }
  0xb4   : > { %v622_v14 = vpop.permute.xlu0 %621 }
  0xb5   : > { %v632_v20 = vpop.permute.xlu1 %631 }
 0x111   : > { %v5482_v15 = vpop.f32.mrb[0].mxu0 }
 0x112   : > { %v713_v16 = vpop.f32.mrb[1].mxu0  ;;  %v719_v17 = vadd.f32 %v5482_v15, %v622_v14 }
 0x113   : > { %v714_v18 = vadd.f32 %v713_v16, %v617_v12 }
 0x115   : > { %v5485_v19 = vpop.f32.mrb[2].mxu0  ;;  %v740_v22 = vadd.f32 %v719_v17, %v714_v18 }
 0x116   : > { %v723_v21 = vpop.f32.mrb[3].mxu0  ;;  %v729_v24 = vadd.f32 %v5485_v19, %v632_v20 }
 0x117   : > { %v724_v23 = vadd.f32 %v723_v21, %v627_v13 }
 0x119   : > { %v741_v25 = vadd.f32 %v740_v22, %v724_v23 }
 0x11b   : > { %v742_v26 = vadd.f32 %v741_v25, %v729_v24 }
 0x11d   : > { %743 = vadd.xlane.f32.xlu0 %v742_v26 }
 0x133   : > { %786 = vperm.xlu0 %5997, %v732_v27  }
 0x137   : > { %796 = vperm.xlu0 %5997, %v734_v28  }
 0x13b   : > { %815 = vperm.xlu0 %5997, %v737_v29  }
 0x13f   : > { %820 = vperm.xlu0 %5997, %v738_v30  }
 0x143   : > { %906 = vperm.xlu0 %5997, %v5030_v31  }
 0x147   : > { %916 = vperm.xlu0 %5997, %v5032_v32  }
 0x14b   : > { %981 = vperm.xlu0 %5997, %v5035_v33  }
 0x14f   : > { %986 = vperm.xlu0 %5997, %v5036_v34  }
 0x153   : > { %1051 = vperm.xlu0 %5997, %v5039_v35  }
 0x157   : > { %1056 = vperm.xlu0 %5997, %v5040_v36  }
 0x15b   : > { %1121 = vperm.xlu0 %5997, %v5043_v37   ;;  %v837_v37 = vstv %s832_s25  ;;  %s8265_s25 = smov 126  }
 0x15f   : > { %1061 = vperm.xlu0 %5997, %v5041_v38  }
 0x163   : > { %877 = vperm.xlu0 %5997, %v871_v39  }
 0x167   : > { %887 = vperm.xlu0 %5997, %v873_v40  }
 0x16b   : > { %1185 = vperm.xlu0 %5997, %v1179_v41  }
 0x1aa   : > { %v744_v42 = vpop.xlane.xlu0 %743 }
 0x1ab   : > { %v745_v43 = vrot.slane %v744_v42, 4 }
 0x1ad   : > { %v746_v44 = vadd.f32 %v745_v43, %v744_v42 }
 0x1af   : > { %v747_v45 = vrot.slane %v746_v44, 2 }
 0x1b1   : > { %v748_v46 = vadd.f32 %v747_v45, %v746_v44 }
 0x1b2   : > { %v787_v20 = vpop.permute.xlu0 %786 }
 0x1b3   : > { %v749_v47 = vrot.slane %v748_v46, 1 }
 0x1b5   : > { %v750_v48 = vadd.f32 %v749_v47, %v748_v46 }
 0x1b6   : > { %v797_v22 = vpop.permute.xlu0 %796 }
 0x1b7   : > { %5878 = vpush %v750_v48 }
 0x1e8   : > { %s5879_s20 = spop %5878 }
 0x1e9   : > { %s752_s21 = smul.f32 0.00024414063, %s5879_s20 }
 0x1eb   : > { %v753_v49 = vstv %s752_s21 }
 0x1ec   : > { %v6338_v50 = vsub.f32 %v714_v18, %v753_v49  ;;  %v6340_v51 = vsub.f32 %v719_v17, %v753_v49  ;;  %v6342_v52 = vsub.f32 %v724_v23, %v753_v49  ;;  %v6344_v53 = vsub.f32 %v729_v24, %v753_v49  ;;  %v816_v24 = vpop.permute.xlu0 %815 }
 0x1ee   : > { %v758_v54 = vmul.f32 %v6338_v50, %v6338_v50  ;;  %v759_v55 = vmul.f32 %v6340_v51, %v6340_v51  ;;  %v760_v56 = vmul.f32 %v6342_v52, %v6342_v52  ;;  %v761_v58 = vmul.f32 %v6344_v53, %v6344_v53 }
 0x1f0   : > { %v762_v57 = vadd.f32 %v759_v55, %v758_v54  ;;  %v821_v35 = vpop.permute.xlu0 %820 }
 0x1f2   : > { %v763_v59 = vadd.f32 %v762_v57, %v760_v56 }
 0x1f4   : > { %v764_v60 = vadd.f32 %v763_v59, %v761_v58 }
 0x1f6   : > { %765 = vadd.xlane.f32.xlu1 %v764_v60 }
 0x207   : > { %791 = vperm.xlu1 %5998, %v733_v61  }
 0x20b   : > { %810 = vperm.xlu1 %5998, %v736_v62  }
 0x20f   : > { %801 = vperm.xlu1 %5998, %v735_v63  }
 0x213   : > { %825 = vperm.xlu1 %5998, %v739_v0  }
 0x217   : > { %911 = vperm.xlu1 %5998, %v5031_v1  }
 0x21b   : > { %976 = vperm.xlu1 %5998, %v5034_v2  }
 0x21f   : > { %921 = vperm.xlu1 %5998, %v5033_v3  }
 0x223   : > { %1046 = vperm.xlu1 %5998, %v5038_v4  }
 0x227   : > { %991 = vperm.xlu1 %5998, %v5037_v5  }
 0x22b   : > { %1116 = vperm.xlu1 %5998, %v5042_v6  }
 0x22f   : > { %1126 = vperm.xlu1 %5998, %v5044_v7  }
 0x233   : > { %1131 = vperm.xlu1 %5998, %v5045_v8  }
 0x237   : > { %882 = vperm.xlu1 %5998, %v872_v9  }
 0x23b   : > { %892 = vperm.xlu1 %5998, %v874_v10  }
 0x283   : > { %v766_v11 = vpop.xlane.xlu1 %765 }
 0x284   : > { %v767_v12 = vrot.slane %v766_v11, 4 }
 0x286   : > { %v768_v13 = vadd.f32 %v767_v12, %v766_v11 }
 0x287   : > { %v792_v21 = vpop.permute.xlu1 %791 }
 0x288   : > { %v769_v14 = vrot.slane %v768_v13, 2 }
 0x28a   : > { %v770_v15 = vadd.f32 %v769_v14, %v768_v13 }
 0x28b   : > { %v811_v23 = vpop.permute.xlu1 %810 }
 0x28c   : > { %v771_v16 = vrot.slane %v770_v15, 1 }
 0x28e   : > { %v772_v17 = vadd.f32 %v771_v16, %v770_v15 }
 0x28f   : > { %v802_v25 = vpop.permute.xlu1 %801 }
 0x290   : > { %5880 = vpush %v772_v17 }
 0x293   : > { %v826_v36 = vpop.permute.xlu1 %825 }
 0x297   : > { %v912_v55 = vpop.permute.xlu1 %911 }
 0x29b   : > { %v977_v57 = vpop.permute.xlu1 %976 }
 0x29f   : > { %v922_v59 = vpop.permute.xlu1 %921 }
 0x2a3   : > { %v1047_v61 = vpop.permute.xlu1 %1046 }
 0x2a7   : > { %v6417_v63 = vpop.permute.xlu1 %991 }
 0x2ab   : > { %v6421_v1 = vpop.permute.xlu1 %1116 }
 0x2af   : > { %v6425_v3 = vpop.permute.xlu1 %1126 }
 0x2b3   : > { %v6429_v5 = vpop.permute.xlu1 %1131 }
 0x2b7   : > { %v6433_v7 = vpop.permute.xlu1 %882 }
 0x2bb   : > { %v6437_v9 = vpop.permute.xlu1 %892 }
 0x2c1   : > { %s5881_s20 = spop %5880 }
 0x2c2   : > { %s774_s21 = smul.f32 0.00024414063, %s5881_s20 }
 0x2c4   : > { %s775_s26 = sadd.f32 1e-08, %s774_s21 }
 0x2c6   : > { %v776_v18 = vstv %s775_s26  ;;  %s8267_s26 = smov 127  }
 0x2c7   : > { %5999 = vrsqrt.f32 %v776_v18 }
 0x2d1   : > { %v6000_v19 = vpop.eup %5999 }
 0x2d2   : > { %5882 = vpush %v6000_v19 }
 0x303   : > { %s5883_s1 = spop %5882 }
 0x304   : > { %v779_v26 = vstv %s5883_s1  ;;  %s8263_s1 = smov 125  }
 0x305   : > { %v780_v27 = vmul.f32 %v779_v26, %v6338_v50  ;;  %v781_v28 = vmul.f32 %v779_v26, %v6340_v51  ;;  %v782_v29 = vmul.f32 %v779_v26, %v6342_v52  ;;  %v783_v30 = vmul.f32 %v779_v26, %v6344_v53  ;;  %v1181_v50 = vld [vmem:[%s8250_s7 + $0x10] sm:$0xff]  ;;  %v1180_v51 = vld [vmem:[%s8250_s7 + $0x8] sm:$0xff]  ;;  %v1182_v52 = vld [vmem:[%s8250_s7 + $0x18] sm:$0xff]  ;;  %v907_v53 = vpop.permute.xlu0 %906 }
 0x307   : > { %v804_v31 = vmul.f32 %v787_v20, %v780_v27  ;;  %v805_v32 = vmul.f32 %v792_v21, %v781_v28  ;;  %v806_v33 = vmul.f32 %v797_v22, %v782_v29  ;;  %v807_v34 = vmul.f32 %v802_v25, %v783_v30 }
 0x309   : > { %v828_v38 = vadd.f32 %v811_v23, %v804_v31  ;;  %v829_v39 = vadd.f32 %v816_v24, %v805_v32  ;;  %v831_v40 = vadd.f32 %v826_v36, %v807_v34  ;;  %v830_v41 = vadd.f32 %v821_v35, %v806_v33  ;;  %v917_v54 = vpop.permute.xlu0 %916 }
 0x30b   : > { %vm833_vm1 = vcmp.ge.f32.partialorder %v828_v38, 0.0  ;;  %v838_v42 = vmul.f32 %v837_v37, %v828_v38  ;;  %vm834_vm2 = vcmp.ge.f32.partialorder %v829_v39, 0.0  ;;  %v839_v43 = vmul.f32 %v837_v37, %v829_v39 }
 0x30c   : > { %v841_v46 = vmul.f32 %v837_v37, %v831_v40  ;;  %v840_v47 = vmul.f32 %v837_v37, %v830_v41  ;;  %vm836_vm3 = vcmp.ge.f32.partialorder %v831_v40, 0.0  ;;  %vm835_vm4 = vcmp.ge.f32.partialorder %v830_v41, 0.0 }
 0x30d   : > { %v842_v44 = vsel %vm833_vm1, %v828_v38, %v838_v42  ;;  %v843_v45 = vsel %vm834_vm2, %v829_v39, %v839_v43  ;;  %v982_v56 = vpop.permute.xlu0 %981 }
 0x30e   : > { %850 = vrot.lane.b32.xlu1 %v842_v44, %s8269_s28  ;;  %852 = vrot.lane.b32.xlu0 %v843_v45, %s8269_s28  ;;  %v845_v48 = vsel %vm836_vm3, %v831_v40, %v841_v46  ;;  %v844_v49 = vsel %vm835_vm4, %v830_v41, %v840_v47 }
 0x311   : > { %v987_v58 = vpop.permute.xlu0 %986 }
 0x312   : > { %856 = vrot.lane.b32.xlu0 %v845_v48, %s8269_s28  ;;  %854 = vrot.lane.b32.xlu1 %v844_v49, %s8269_s28 }
 0x315   : > { %v6413_v60 = vpop.permute.xlu0 %1051 }
 0x316   : > { %1195 = vperm.xlu0 %5997, %v1181_v50   ;;  %1190 = vperm.xlu1 %5998, %v1180_v51  }
 0x319   : > { %v6415_v62 = vpop.permute.xlu0 %1056 }
 0x31a   : > { %1200 = vperm.xlu1 %5998, %v1182_v52  }
 0x31d   : > { %v6419_v0 = vpop.permute.xlu0 %1121 }
 0x321   : > { %v6423_v2 = vpop.permute.xlu0 %1061 }
 0x325   : > { %v6427_v4 = vpop.permute.xlu0 %877 }
 0x329   : > { %v6431_v6 = vpop.permute.xlu0 %887 }
 0x32d   : > { %v6435_v8 = vpop.permute.xlu0 %1185 }
 0x380   : > { %v851_v10 = vpop.permute.xlu1 %850  ;;  %v853_v11 = vpop.permute.xlu0 %852 }
 0x381   : > { %v6440_v12 = vsel %vm8281_vm5, 0.0, %v851_v10  ;;  %v867_v13 = vsel %vm8281_vm5, %v851_v10, 0.0  ;;  %v6445_v16 = vsel %vm8281_vm5, 0.0, %v853_v11  ;;  %v868_v17 = vsel %vm8281_vm5, %v853_v11, 0.0 }
 0x382   : > { %v925_v14 = vmul.f32 %v907_v53, %v867_v13  ;;  %v924_v15 = vmul.f32 %v907_v53, %v6440_v12  ;;  %v927_v19 = vmul.f32 %v912_v55, %v868_v17  ;;  %v926_v20 = vmul.f32 %v912_v55, %v6445_v16 }
 0x383   : > { %v995_v25 = vmul.f32 %v977_v57, %v867_v13  ;;  %v994_v26 = vmul.f32 %v977_v57, %v6440_v12  ;;  %v997_v28 = vmul.f32 %v982_v56, %v868_v17  ;;  %v996_v29 = vmul.f32 %v982_v56, %v6445_v16 }
 0x384   : > { %v855_v18 = vpop.permute.xlu1 %854  ;;  %942 = vrot.lane.b32.xlu1 %v925_v14, %s8267_s26  ;;  %940 = vrot.lane.b32.xlu0 %v924_v15, %s8267_s26  ;;  %v857_v27 = vpop.permute.xlu0 %856  ;;  %v1065_v36 = vmul.f32 %v1047_v61, %v867_v13  ;;  %v1064_v37 = vmul.f32 %v1047_v61, %v6440_v12  ;;  %v1067_v38 = vmul.f32 %v6413_v60, %v868_v17 }
 0x385   : > { %v6452_v21 = vsel %vm8281_vm5, 0.0, %v855_v18  ;;  %v869_v22 = vsel %vm8281_vm5, %v855_v18, 0.0  ;;  %v6465_v30 = vsel %vm8281_vm5, 0.0, %v857_v27  ;;  %v870_v31 = vsel %vm8281_vm5, %v857_v27, 0.0 }
 0x386   : > { %v929_v23 = vmul.f32 %v917_v54, %v869_v22  ;;  %v928_v24 = vmul.f32 %v917_v54, %v6452_v21  ;;  %v931_v32 = vmul.f32 %v922_v59, %v870_v31  ;;  %v930_v33 = vmul.f32 %v922_v59, %v6465_v30 }
 0x387   : > { %v999_v34 = vmul.f32 %v987_v58, %v869_v22  ;;  %v998_v35 = vmul.f32 %v987_v58, %v6452_v21  ;;  %v1066_v39 = vmul.f32 %v6413_v60, %v6445_v16  ;;  %v1000_v40 = vmul.f32 %v6417_v63, %v6465_v30 }
 0x388   : > { %946 = vrot.lane.b32.xlu1 %v927_v19, %s8267_s26  ;;  %944 = vrot.lane.b32.xlu0 %v926_v20, %s8267_s26  ;;  %v1001_v41 = vmul.f32 %v6417_v63, %v870_v31  ;;  %v1068_v42 = vmul.f32 %v6415_v62, %v6452_v21  ;;  %v1069_v43 = vmul.f32 %v6415_v62, %v869_v22 }
 0x389   : > { %v1134_v44 = vmul.f32 %v6421_v1, %v6440_v12  ;;  %v1135_v45 = vmul.f32 %v6421_v1, %v867_v13  ;;  %v1136_v46 = vmul.f32 %v6419_v0, %v6445_v16  ;;  %v1137_v47 = vmul.f32 %v6419_v0, %v868_v17 }
 0x38a   : > { %v1071_v48 = vmul.f32 %v6423_v2, %v870_v31  ;;  %v1070_v49 = vmul.f32 %v6423_v2, %v6465_v30  ;;  %v1139_v50 = vmul.f32 %v6425_v3, %v869_v22  ;;  %v1138_v51 = vmul.f32 %v6425_v3, %v6452_v21 }
 0x38b   : > { %v1141_v52 = vmul.f32 %v6429_v5, %v870_v31  ;;  %v1140_v53 = vmul.f32 %v6429_v5, %v6465_v30 }
 0x38c   : > { %950 = vrot.lane.b32.xlu1 %v929_v23, %s8267_s26  ;;  %948 = vrot.lane.b32.xlu0 %v928_v24, %s8267_s26 }
 0x390   : > { %1012 = vrot.lane.b32.xlu1 %v995_v25, %s8265_s25  ;;  %1010 = vrot.lane.b32.xlu0 %v994_v26, %s8265_s25  ;;  %v896_v26 = vmul.f32 %v6433_v7, %v6445_v16  ;;  %v897_v7 = vmul.f32 %v6431_v6, %v6452_v21  ;;  %v898_v6 = vmul.f32 %v6437_v9, %v6465_v30 }
 0x394   : > { %1016 = vrot.lane.b32.xlu1 %v997_v28, %s8265_s25  ;;  %1014 = vrot.lane.b32.xlu0 %v996_v29, %s8265_s25  ;;  %v895_v29 = vmul.f32 %v6427_v4, %v6440_v12 }
 0x395   : > { %v6519_v54 = vpop.permute.xlu1 %1190  ;;  %v6521_v55 = vpop.permute.xlu0 %1195 }
 0x398   : > { %954 = vrot.lane.b32.xlu1 %v931_v32, %s8267_s26  ;;  %952 = vrot.lane.b32.xlu0 %v930_v33, %s8267_s26 }
 0x399   : > { %v6523_v56 = vpop.permute.xlu1 %1200 }
 0x39c   : > { %1020 = vrot.lane.b32.xlu1 %v999_v34, %s8265_s25  ;;  %1018 = vrot.lane.b32.xlu0 %v998_v35, %s8265_s25 }
 0x3a0   : > { %1082 = vrot.lane.b32.xlu1 %v1065_v36, %s8263_s1  ;;  %1080 = vrot.lane.b32.xlu0 %v1064_v37, %s8263_s1 }
 0x3a4   : > { %1086 = vrot.lane.b32.xlu1 %v1067_v38, %s8263_s1  ;;  %1084 = vrot.lane.b32.xlu0 %v1066_v39, %s8263_s1 }
 0x3a8   : > { %1022 = vrot.lane.b32.xlu1 %v1000_v40, %s8265_s25  ;;  %1024 = vrot.lane.b32.xlu0 %v1001_v41, %s8265_s25  ;;  %s8306_s25 = smov 2  }
 0x3ac   : > { %1088 = vrot.lane.b32.xlu1 %v1068_v42, %s8263_s1  ;;  %1090 = vrot.lane.b32.xlu0 %v1069_v43, %s8263_s1 }
 0x3b0   : > { %1150 = vrot.lane.b32.xlu1 %v1134_v44, %s8261_s15  ;;  %1152 = vrot.lane.b32.xlu0 %v1135_v45, %s8261_s15 }
 0x3b4   : > { %1154 = vrot.lane.b32.xlu1 %v1136_v46, %s8261_s15  ;;  %1156 = vrot.lane.b32.xlu0 %v1137_v47, %s8261_s15 }
 0x3b8   : > { %1094 = vrot.lane.b32.xlu1 %v1071_v48, %s8263_s1  ;;  %1092 = vrot.lane.b32.xlu0 %v1070_v49, %s8263_s1  ;;  %s8324_s1 = smov 124  }
 0x3bc   : > { %1160 = vrot.lane.b32.xlu1 %v1139_v50, %s8261_s15  ;;  %1158 = vrot.lane.b32.xlu0 %v1138_v51, %s8261_s15 }
 0x3c0   : > { %1164 = vrot.lane.b32.xlu1 %v1141_v52, %s8261_s15  ;;  %1162 = vrot.lane.b32.xlu0 %v1140_v53, %s8261_s15 }
 0x3f6   : > { %v943_v57 = vpop.permute.xlu1 %942  ;;  %v941_v58 = vpop.permute.xlu0 %940 }
 0x3f7   : > { %v957_v27 = vsel %vm8280_vm6, %v941_v58, %v943_v57 }
 0x3f8   : > { %v965_v37 = vadd.f32 %v957_v27, %v895_v29 }
 0x3fa   : > { %v947_v59 = vpop.permute.xlu1 %946  ;;  %v945_v60 = vpop.permute.xlu0 %944 }
 0x3fb   : > { %v958_v25 = vsel %vm8280_vm6, %v945_v60, %v947_v59 }
 0x3fc   : > { %v966_v31 = vadd.f32 %v958_v25, %v896_v26 }
 0x3fe   : > { %v951_v61 = vpop.permute.xlu1 %950  ;;  %v949_v62 = vpop.permute.xlu0 %948 }
 0x3ff   : > { %v959_v34 = vsel %vm8280_vm6, %v949_v62, %v951_v61 }
 0x400   : > { %v967_v39 = vadd.f32 %v959_v34, %v897_v7 }
 0x402   : > { %v1013_v63 = vpop.permute.xlu1 %1012  ;;  %v1011_v0 = vpop.permute.xlu0 %1010 }
 0x403   : > { %v1027_v35 = vsel %vm8279_vm7, %v1011_v0, %v1013_v63 }
 0x404   : > { %v1035_v40 = vadd.f32 %v1027_v35, %v965_v37 }
 0x406   : > { %v1017_v1 = vpop.permute.xlu1 %1016  ;;  %v1015_v2 = vpop.permute.xlu0 %1014 }
 0x407   : > { %v1028_v28 = vsel %vm8279_vm7, %v1015_v2, %v1017_v1 }
 0x408   : > { %v1036_v16 = vadd.f32 %v1028_v28, %v966_v31 }
 0x40a   : > { %v955_v3 = vpop.permute.xlu1 %954  ;;  %v953_v5 = vpop.permute.xlu0 %952 }
 0x40b   : > { %v960_v44 = vsel %vm8280_vm6, %v953_v5, %v955_v3 }
 0x40c   : > { %v968_v50 = vadd.f32 %v960_v44, %v898_v6  ;;  %v5051_v44 = vld [vmem:[%s8249_s6 + $0xc8] sm:$0xff] }
 0x40d   : > { %v5059_v6 = vld [vmem:[%s8249_s6 + $0x108] sm:$0xff] }
 0x40e   : > { %v1021_v10 = vpop.permute.xlu1 %1020  ;;  %v1019_v11 = vpop.permute.xlu0 %1018 }
 0x40f   : > { %v1029_v38 = vsel %vm8279_vm7, %v1019_v11, %v1021_v10 }
 0x410   : > { %v1037_v21 = vadd.f32 %v1029_v38, %v967_v39 }
 0x412   : > { %v1083_v13 = vpop.permute.xlu1 %1082  ;;  %v1081_v14 = vpop.permute.xlu0 %1080 }
 0x413   : > { %v1097_v4 = vsel %vm8278_vm8, %v1081_v14, %v1083_v13  ;;  %v5050_v14 = vld [vmem:[%s8249_s6 + $0xc0] sm:$0xff] }
 0x414   : > { %v1105_v47 = vadd.f32 %v1097_v4, %v1035_v40  ;;  %v1208_v40 = vld [vmem:[%s8251_s8 + $0x8] sm:$0xff] }
 0x416   : > { %v1087_v15 = vpop.permute.xlu1 %1086  ;;  %v1085_v17 = vpop.permute.xlu0 %1084 }
 0x417   : > { %v1098_v36 = vsel %vm8278_vm8, %v1085_v17, %v1087_v15  ;;  %v5054_v15 = vld [vmem:[%s8249_s6 + $0xe0] sm:$0xff]  ;;  %v5052_v17 = vld [vmem:[%s8249_s6 + $0xd0] sm:$0xff] }
 0x418   : > { %v1106_v41 = vadd.f32 %v1098_v36, %v1036_v16 }
 0x41a   : > { %v1023_v18 = vpop.permute.xlu1 %1022  ;;  %v1025_v19 = vpop.permute.xlu0 %1024 }
 0x41b   : > { %v1030_v49 = vsel %vm8279_vm7, %v1023_v18, %v1025_v19  ;;  %v5053_v18 = vld [vmem:[%s8249_s6 + $0xd8] sm:$0xff]  ;;  %v5062_v19 = vld [vmem:[%s8249_s6 + $0x120] sm:$0xff] }
 0x41c   : > { %v1038_v60 = vadd.f32 %v1030_v49, %v968_v50  ;;  %v5064_v49 = vld [vmem:[%s8249_s6 + $0x130] sm:$0xff]  ;;  %v5065_v50 = vld [vmem:[%s8249_s6 + $0x138] sm:$0xff] }
 0x41e   : > { %v1089_v20 = vpop.permute.xlu1 %1088  ;;  %v1091_v22 = vpop.permute.xlu0 %1090 }
 0x41f   : > { %v1099_v45 = vsel %vm8278_vm8, %v1089_v20, %v1091_v22  ;;  %v5057_v20 = vld [vmem:[%s8249_s6 + $0xf8] sm:$0xff]  ;;  %v5060_v22 = vld [vmem:[%s8249_s6 + $0x110] sm:$0xff] }
 0x420   : > { %v1107_v51 = vadd.f32 %v1099_v45, %v1037_v21  ;;  %v5055_v45 = vld [vmem:[%s8249_s6 + $0xe8] sm:$0xff]  ;;  %v5056_v21 = vld [vmem:[%s8249_s6 + $0xf0] sm:$0xff] }
 0x422   : > { %v1151_v23 = vpop.permute.xlu1 %1150  ;;  %v1153_v24 = vpop.permute.xlu0 %1152 }
 0x423   : > { %v1167_v46 = vsel %vm8277_vm9, %v1151_v23, %v1153_v24  ;;  %v5046_v23 = vld [vmem:[%s8249_s6 + $0xa0] sm:$0xff] }
 0x424   : > { %v1175_v52 = vadd.f32 %v1167_v46, %v1105_v47  ;;  %v5058_v46 = vld [vmem:[%s8249_s6 + $0x100] sm:$0xff]  ;;  %v5063_v47 = vld [vmem:[%s8249_s6 + $0x128] sm:$0xff] }
 0x426   : > { %v1155_v32 = vpop.permute.xlu1 %1154  ;;  %v1157_v33 = vpop.permute.xlu0 %1156  ;;  %v1203_v9 = vadd.f32 %v6435_v8, %v1175_v52  ;;  %v1211_v8 = vld [vmem:[%s8252_s9] sm:$0xff] }
 0x427   : > { %v1168_v12 = vsel %vm8277_vm9, %v1155_v32, %v1157_v33 }
 0x428   : > { %v1176_v48 = vadd.f32 %v1168_v12, %v1106_v41  ;;  %v1212_v41 = vld [vmem:[%s8252_s9 + $0x8] sm:$0xff] }
 0x42a   : > { %v1095_v42 = vpop.permute.xlu1 %1094  ;;  %v1093_v43 = vpop.permute.xlu0 %1092  ;;  %v1204_v61 = vadd.f32 %v6519_v54, %v1176_v48  ;;  %v1207_v54 = vld [vmem:[%s8251_s8] sm:$0xff]  ;;  %v5061_v48 = vld [vmem:[%s8249_s6 + $0x118] sm:$0xff] }
 0x42b   : > { %v1100_v58 = vsel %vm8278_vm8, %v1093_v43, %v1095_v42  ;;  %v1210_v42 = vld [vmem:[%s8251_s8 + $0x18] sm:$0xff] }
 0x42c   : > { %v1108_v30 = vadd.f32 %v1100_v58, %v1038_v60  ;;  %v1215_v5 = vadd.f32 %v1204_v61, %v1203_v9  ;;  %v1214_v43 = vld [vmem:[%s8252_s9 + $0x18] sm:$0xff] }
 0x42e   : > { %v1161_v53 = vpop.permute.xlu1 %1160  ;;  %v1159_v57 = vpop.permute.xlu0 %1158 }
 0x42f   : > { %v1169_v59 = vsel %vm8277_vm9, %v1159_v57, %v1161_v53 }
 0x430   : > { %v1177_v62 = vadd.f32 %v1169_v59, %v1107_v51 }
 0x432   : > { %v1205_v63 = vadd.f32 %v6521_v55, %v1177_v62  ;;  %v1165_v0 = vpop.permute.xlu1 %1164  ;;  %v1163_v1 = vpop.permute.xlu0 %1162  ;;  %v1209_v55 = vld [vmem:[%s8251_s8 + $0x10] sm:$0xff] }
 0x433   : > { %v1170_v2 = vsel %vm8277_vm9, %v1163_v1, %v1165_v0 }
 0x434   : > { %v1178_v3 = vadd.f32 %v1170_v2, %v1108_v30  ;;  %v1216_v11 = vadd.f32 %v1215_v5, %v1205_v63 }
 0x436   : > { %v1206_v10 = vadd.f32 %v6523_v56, %v1178_v3  ;;  %v1213_v56 = vld [vmem:[%s8252_s9 + $0x10] sm:$0xff] }
 0x438   : > { %v1217_v13 = vadd.f32 %v1216_v11, %v1206_v10 }
 0x43a   : > { %1218 = vadd.xlane.f32.xlu0 %v1217_v13 }
 0x450   : > { %1261 = vperm.xlu0 %5997, %v1207_v54  }
 0x454   : > { %1285 = vperm.xlu0 %5997, %v1211_v8  }
 0x458   : > { %1271 = vperm.xlu0 %5997, %v1209_v55  }
 0x45c   : > { %1295 = vperm.xlu0 %5997, %v1213_v56  }
 0x460   : > { %1367 = vperm.xlu0 %5997, %v5050_v14  }
 0x464   : > { %1436 = vperm.xlu0 %5997, %v5054_v15  }
 0x468   : > { %1377 = vperm.xlu0 %5997, %v5052_v17   ;;  %v5047_v17 = vld [vmem:[%s8249_s6 + $0xa8] sm:$0xff] }
 0x46c   : > { %1382 = vperm.xlu0 %5997, %v5053_v18  }
 0x470   : > { %1574 = vperm.xlu0 %5997, %v5062_v19  }
 0x474   : > { %1451 = vperm.xlu0 %5997, %v5057_v20  }
 0x478   : > { %1515 = vperm.xlu0 %5997, %v5060_v22   ;;  %v5049_v22 = vld [vmem:[%s8249_s6 + $0xb8] sm:$0xff] }
 0x47c   : > { %1338 = vperm.xlu0 %5997, %v5046_v23  }
 0x4c7   : > { %v1219_v24 = vpop.xlane.xlu0 %1218 }
 0x4c8   : > { %v1220_v25 = vrot.slane %v1219_v24, 4 }
 0x4ca   : > { %v1221_v26 = vadd.f32 %v1220_v25, %v1219_v24  ;;  %v5048_v24 = vld [vmem:[%s8249_s6 + $0xb0] sm:$0xff] }
 0x4cc   : > { %v1222_v27 = vrot.slane %v1221_v26, 2 }
 0x4ce   : > { %v1223_v28 = vadd.f32 %v1222_v27, %v1221_v26 }
 0x4d0   : > { %v1224_v29 = vrot.slane %v1223_v28, 1 }
 0x4d2   : > { %v1225_v31 = vadd.f32 %v1224_v29, %v1223_v28 }
 0x4d4   : > { %5884 = vpush %v1225_v31 }
 0x505   : > { %s5885_s15 = spop %5884 }
 0x506   : > { %s1227_s21 = smul.f32 0.00024414063, %s5885_s15 }
 0x508   : > { %v1228_v32 = vstv %s1227_s21 }
 0x509   : > { %v1229_v33 = vsub.f32 %v1203_v9, %v1228_v32  ;;  %v1230_v34 = vsub.f32 %v1204_v61, %v1228_v32  ;;  %v1231_v35 = vsub.f32 %v1205_v63, %v1228_v32  ;;  %v1232_v36 = vsub.f32 %v1206_v10, %v1228_v32  ;;  %v1262_v9 = vpop.permute.xlu0 %1261 }
 0x50b   : > { %v1233_v37 = vmul.f32 %v1229_v33, %v1229_v33  ;;  %v1234_v7 = vmul.f32 %v1230_v34, %v1230_v34  ;;  %v1235_v16 = vmul.f32 %v1231_v35, %v1231_v35  ;;  %v1236_v4 = vmul.f32 %v1232_v36, %v1232_v36 }
 0x50d   : > { %v1237_v38 = vadd.f32 %v1234_v7, %v1233_v37  ;;  %v1286_v63 = vpop.permute.xlu0 %1285 }
 0x50f   : > { %v1238_v12 = vadd.f32 %v1237_v38, %v1235_v16 }
 0x511   : > { %v1239_v39 = vadd.f32 %v1238_v12, %v1236_v4  ;;  %v1272_v10 = vpop.permute.xlu0 %1271 }
 0x513   : > { %1240 = vadd.xlane.f32.xlu1 %v1239_v39 }
 0x515   : > { %v1296_v15 = vpop.permute.xlu0 %1295 }
 0x519   : > { %v1368_v26 = vpop.permute.xlu0 %1367 }
 0x51d   : > { %v1437_v28 = vpop.permute.xlu0 %1436 }
 0x521   : > { %v1378_v31 = vpop.permute.xlu0 %1377 }
 0x524   : > { %1266 = vperm.xlu1 %5998, %v1208_v40  }
 0x528   : > { %1290 = vperm.xlu1 %5998, %v1212_v41  }
 0x52c   : > { %1276 = vperm.xlu1 %5998, %v1210_v42  }
 0x530   : > { %1300 = vperm.xlu1 %5998, %v1214_v43  }
 0x534   : > { %1372 = vperm.xlu1 %5998, %v5051_v44  }
 0x538   : > { %1441 = vperm.xlu1 %5998, %v5055_v45  }
 0x53c   : > { %1505 = vperm.xlu1 %5998, %v5058_v46  }
 0x540   : > { %1510 = vperm.xlu1 %5998, %v5059_v6   ;;  %v480_v6 = vlaneseq }
 0x544   : > { %1446 = vperm.xlu1 %5998, %v5056_v21  }
 0x548   : > { %1579 = vperm.xlu1 %5998, %v5063_v47  }
 0x54c   : > { %1520 = vperm.xlu1 %5998, %v5061_v48   ;;  %v6697_v48 = vshrl.u32 %v480_v6, 7 }
 0x550   : > { %1584 = vperm.xlu1 %5998, %v5064_v49   ;;  %v6699_v49 = vand.u32 127, %v480_v6 }
 0x554   : > { %1589 = vperm.xlu1 %5998, %v5065_v50  }
 0x5a0   : > { %v1241_v51 = vpop.xlane.xlu1 %1240 }
 0x5a1   : > { %v1242_v52 = vrot.slane %v1241_v51, 4 }
 0x5a3   : > { %v1243_v53 = vadd.f32 %v1242_v52, %v1241_v51 }
 0x5a4   : > { %v1267_v30 = vpop.permute.xlu1 %1266 }
 0x5a5   : > { %v1244_v57 = vrot.slane %v1243_v53, 2 }
 0x5a7   : > { %v1245_v58 = vadd.f32 %v1244_v57, %v1243_v53  ;;  %v6707_v57 = vadd.s32 8, %v6697_v48 }
 0x5a8   : > { %v1291_v0 = vpop.permute.xlu1 %1290 }
 0x5a9   : > { %v1246_v59 = vrot.slane %v1245_v58, 1 }
 0x5ab   : > { %v1247_v60 = vadd.f32 %v1246_v59, %v1245_v58  ;;  %v6710_v58 = vmul.u32 2, %v6699_v49  ;;  %v6713_v59 = vadd.s32 16, %v6697_v48 }
 0x5ac   : > { %v1277_v14 = vpop.permute.xlu1 %1276 }
 0x5ad   : > { %5886 = vpush %v1247_v60  ;;  %vm500_vm10 = vcmp.eq.s32.totalorder %v6697_v48, %v6710_v58  ;;  %vm501_vm11 = vcmp.eq.s32.totalorder %v6707_v57, %v6710_v58  ;;  %vm502_vm12 = vcmp.eq.s32.totalorder %v6713_v59, %v6710_v58 }
 0x5ae   : > { %vm6737_vm13 = vmpackc.low %vm501_vm11, %vm500_vm10 }
 0x5b0   : > { %v1301_v20 = vpop.permute.xlu1 %1300 }
 0x5b4   : > { %v1373_v25 = vpop.permute.xlu1 %1372 }
 0x5b8   : > { %v1442_v27 = vpop.permute.xlu1 %1441 }
 0x5bc   : > { %v6653_v29 = vpop.permute.xlu1 %1505 }
 0x5c0   : > { %v6655_v32 = vpop.permute.xlu1 %1510 }
 0x5de   : > { %s5887_s18 = spop %5886 }
 0x5df   : > { %s1249_s20 = smul.f32 0.00024414063, %s5887_s18 }
 0x5e1   : > { %s1250_s15 = sadd.f32 1e-08, %s1249_s20  ;;  %s8307_s20 = smov 127  }
 0x5e3   : > { %v1251_v61 = vstv %s1250_s15  ;;  %s8308_s15 = smov 126  }
 0x5e4   : > { %6001 = vrsqrt.f32 %v1251_v61  ;;  %v6717_v61 = vadd.s32 24, %v6697_v48 }
 0x5e6   : > { %vm503_vm14 = vcmp.eq.s32.totalorder %v6717_v61, %v6710_v58 }
 0x5e7   : > { %vm6745_vm15 = vmpackc.low %vm503_vm14, %vm502_vm12 }
 0x5ee   : > { %v6002_v62 = vpop.eup %6001 }
 0x5ef   : > { %5888 = vpush %v6002_v62  ;;  %v6720_v62 = vadd.s32 32, %v6697_v48 }
 0x5f1   : > { %vm504_vm1 = vcmp.eq.s32.totalorder %v6720_v62, %v6710_v58 }
 0x620   : > { %s5889_s21 = spop %5888 }
 0x621   : > { %v1254_v1 = vstv %s5889_s21  ;;  %s8315_s21 = smov 125  }
 0x622   : > { %v1255_v2 = vmul.f32 %v1254_v1, %v1229_v33  ;;  %v1256_v3 = vmul.f32 %v1254_v1, %v1230_v34  ;;  %v1257_v5 = vmul.f32 %v1254_v1, %v1231_v35  ;;  %v1258_v54 = vmul.f32 %v1254_v1, %v1232_v36  ;;  %v6657_v33 = vpop.permute.xlu0 %1382  ;;  %v6659_v34 = vpop.permute.xlu1 %1446 }
 0x624   : > { %v1279_v11 = vmul.f32 %v1262_v9, %v1255_v2  ;;  %v1280_v13 = vmul.f32 %v1267_v30, %v1256_v3  ;;  %v1281_v8 = vmul.f32 %v1272_v10, %v1257_v5  ;;  %v1282_v18 = vmul.f32 %v1277_v14, %v1258_v54 }
 0x625   : > { %v6723_v9 = vadd.s32 40, %v6697_v48  ;;  %v6111_v2 = vmov 1.0|1.0   ;;  %v6757_v3 = vadd.s32 48, %v6697_v48  ;;  %v6760_v5 = vadd.s32 56, %v6697_v48 }
 0x626   : > { %v6628_v55 = vadd.f32 %v1291_v0, %v1280_v13  ;;  %v6630_v56 = vadd.f32 %v1286_v63, %v1279_v11  ;;  %v6639_v19 = vadd.f32 %v1296_v15, %v1281_v8  ;;  %v6646_v23 = vadd.f32 %v1301_v20, %v1282_v18  ;;  %v6661_v35 = vpop.permute.xlu0 %1574  ;;  %v6663_v36 = vpop.permute.xlu1 %1579  ;;  %5715 = vmatprep.subr.msk.bf16.mxu1 %vm6737_vm13, %v6111_v2 }
 0x627   : > { %vm505_vm2 = vcmp.eq.s32.totalorder %v6723_v9, %v6710_v58  ;;  %5747 = vmatprep.subr.msk.bf16.mxu0 %vm6737_vm13, %v6111_v2  ;;  %5717 = vmatpush3.bf16.msk.msra.mxu1 %vm6737_vm13, %v6111_v2  ;;  %vm506_vm4 = vcmp.eq.s32.totalorder %v6757_v3, %v6710_v58  ;;  %vm507_vm10 = vcmp.eq.s32.totalorder %v6760_v5, %v6710_v58  ;;  %v489_v8 = vadd.s32 64, %v6697_v48 }
 0x628   : > { %1313 = vrot.lane.b32.xlu1 %v6628_v55, %s8306_s25  ;;  %1311 = vrot.lane.b32.xlu0 %v6630_v56, %s8306_s25  ;;  %vm6781_vm3 = vmpackc.low %vm505_vm2, %vm504_vm1  ;;  %v490_v14 = vadd.s32 72, %v6697_v48 }
 0x629   : > { %5749 = vmatpush3.bf16.msk.msra.mxu0 %vm6737_vm13, %v6111_v2  ;;  %5719 = vmatprep.subr.msk.bf16.mxu1 %vm6745_vm15, %v6111_v2  ;;  %vm6815_vm11 = vmpackc.low %vm507_vm10, %vm506_vm4  ;;  %vm508_vm12 = vcmp.eq.s32.totalorder %v489_v8, %v6710_v58 }
 0x62a   : > { %v6665_v37 = vpop.permute.xlu0 %1451  ;;  %v6667_v7 = vpop.permute.xlu1 %1520  ;;  %5751 = vmatprep.subr.msk.bf16.mxu0 %vm6745_vm15, %v6111_v2  ;;  %vm509_vm14 = vcmp.eq.s32.totalorder %v490_v14, %v6710_v58 }
 0x62b   : > { %5721 = vmatpush3.bf16.msk.msra.mxu1 %vm6745_vm15, %v6111_v2  ;;  %vm6841_vm1 = vmpackc.low %vm509_vm14, %vm508_vm12 }
 0x62c   : > { %1343 = vperm.xlu1 %5998, %v5047_v17   ;;  %1315 = vrot.lane.b32.xlu0 %v6639_v19, %s8306_s25 }
 0x62d   : > { %5753 = vmatpush3.bf16.msk.msra.mxu0 %vm6745_vm15, %v6111_v2  ;;  %5723 = vmatprep.subr.msk.bf16.mxu1 %vm6781_vm3, %v6111_v2 }
 0x62e   : > { %v6669_v16 = vpop.permute.xlu0 %1515  ;;  %v6671_v38 = vpop.permute.xlu1 %1584  ;;  %5755 = vmatprep.subr.msk.bf16.mxu0 %vm6781_vm3, %v6111_v2 }
 0x62f   : > { %5725 = vmatpush3.bf16.msk.msra.mxu1 %vm6781_vm3, %v6111_v2 }
 0x630   : > { %1353 = vperm.xlu1 %5998, %v5049_v22   ;;  %1317 = vrot.lane.b32.xlu0 %v6646_v23, %s8306_s25 }
 0x631   : > { %5757 = vmatpush3.bf16.msk.msra.mxu0 %vm6781_vm3, %v6111_v2  ;;  %5727 = vmatprep.subr.msk.bf16.mxu1 %vm6815_vm11, %v6111_v2 }
 0x632   : > { %v6673_v4 = vpop.permute.xlu0 %1338  ;;  %v6675_v12 = vpop.permute.xlu1 %1589  ;;  %5759 = vmatprep.subr.msk.bf16.mxu0 %vm6815_vm11, %v6111_v2 }
 0x633   : > { %5729 = vmatpush3.bf16.msk.msra.mxu1 %vm6815_vm11, %v6111_v2 }
 0x634   : > { %1348 = vperm.xlu0 %5997, %v5048_v24   ;;  %v491_v24 = vadd.s32 80, %v6697_v48  ;;  %5731 = vmatprep.subr.msk.bf16.mxu1 %vm6841_vm1, %v6111_v2 }
 0x635   : > { %5761 = vmatpush3.bf16.msk.msra.mxu0 %vm6815_vm11, %v6111_v2 }
 0x636   : > { %vm510_vm2 = vcmp.eq.s32.totalorder %v491_v24, %v6710_v58 }
 0x637   : > { %5733 = vmatpush3.bf16.msk.msra.mxu1 %vm6841_vm1, %v6111_v2 }
 0x69a   : > { %v1314_v39 = vpop.permute.xlu1 %1313  ;;  %v1312_v40 = vpop.permute.xlu0 %1311 }
 0x69b   : > { %v6678_v41 = vsel %vm8281_vm5, 0.0, %v1312_v40  ;;  %v6681_v42 = vsel %vm8281_vm5, %v1312_v40, 0.0  ;;  %v6686_v45 = vsel %vm8281_vm5, 0.0, %v1314_v39  ;;  %v6689_v46 = vsel %vm8281_vm5, %v1314_v39, 0.0 }
 0x69c   : > { %v1386_v43 = vmul.f32 %v1368_v26, %v6681_v42  ;;  %v1385_v44 = vmul.f32 %v1368_v26, %v6678_v41  ;;  %v1388_v21 = vmul.f32 %v1373_v25, %v6689_v46  ;;  %v1387_v47 = vmul.f32 %v1373_v25, %v6686_v45 }
 0x69d   : > { %v1455_v50 = vmul.f32 %v1437_v28, %v6681_v42  ;;  %v1454_v51 = vmul.f32 %v1437_v28, %v6678_v41  ;;  %v1457_v53 = vmul.f32 %v1442_v27, %v6689_v46  ;;  %v1456_v60 = vmul.f32 %v1442_v27, %v6686_v45 }
 0x69e   : > { %1403 = vrot.lane.b32.xlu1 %v1386_v43, %s8307_s20  ;;  %1401 = vrot.lane.b32.xlu0 %v1385_v44, %s8307_s20  ;;  %v1316_v52 = vpop.permute.xlu0 %1315  ;;  %v1524_v15 = vmul.f32 %v6653_v29, %v6681_v42  ;;  %v1523_v17 = vmul.f32 %v6653_v29, %v6678_v41  ;;  %v492_v25 = vadd.s32 88, %v6697_v48  ;;  %v8318_v28 = vmov 0 }
 0x69f   : > { %v6732_v30 = vsel %vm8281_vm5, 0.0, %v1316_v52  ;;  %v6735_v63 = vsel %vm8281_vm5, %v1316_v52, 0.0  ;;  %v8319_v28 = vsel %vm6841_vm1, 4294967295, %v8318_v28  ;;  %v493_v29 = vadd.s32 96, %v6697_v48 }
 0x6a0   : > { %v1390_v10 = vmul.f32 %v1378_v31, %v6735_v63  ;;  %v1389_v11 = vmul.f32 %v1378_v31, %v6732_v30  ;;  %vm511_vm4 = vcmp.eq.s32.totalorder %v492_v25, %v6710_v58  ;;  %v494_v31 = vadd.s32 104, %v6697_v48 }
 0x6a1   : > { %v1525_v39 = vmul.f32 %v6655_v32, %v6686_v45  ;;  %vm6864_vm10 = vmpackc.low %vm511_vm4, %vm510_vm2  ;;  %v8320_v40 = vmov 0  ;;  %vm512_vm12 = vcmp.eq.s32.totalorder %v493_v29, %v6710_v58  ;;  %v496_v43 = vadd.s32 120, %v6697_v48 }
 0x6a2   : > { %1407 = vrot.lane.b32.xlu1 %v1388_v21, %s8307_s20  ;;  %1405 = vrot.lane.b32.xlu0 %v1387_v47, %s8307_s20  ;;  %v1318_v13 = vpop.permute.xlu0 %1317  ;;  %v8321_v40 = vsel %vm6864_vm10, 4294967295, %v8320_v40  ;;  %vm513_vm14 = vcmp.eq.s32.totalorder %v494_v31, %v6710_v58  ;;  %v1459_v44 = vmul.f32 %v6659_v34, %v6735_v63  ;;  %v1458_v6 = vmul.f32 %v6659_v34, %v6732_v30 }
 0x6a3   : > { %v6802_v18 = vsel %vm8281_vm5, 0.0, %v1318_v13  ;;  %v6805_v20 = vsel %vm8281_vm5, %v1318_v13, 0.0  ;;  %5735 = vmatprep.subr.msk.bf16.mxu1 %vm6864_vm10, %v6111_v2  ;;  %vm6884_vm2 = vmpackc.low %vm513_vm14, %vm512_vm12  ;;  %v8322_v21 = vmov 0  ;;  %vm515_vm0 = vcmp.eq.s32.totalorder %v496_v43, %v6710_v58 }
 0x6a4   : > { %v1392_v26 = vmul.f32 %v6657_v33, %v6805_v20  ;;  %v1391_v27 = vmul.f32 %v6657_v33, %v6802_v18  ;;  %v1526_v33 = vmul.f32 %v6655_v32, %v6689_v46  ;;  %v495_v32 = vadd.s32 112, %v6697_v48  ;;  %5737 = vmatpush3.bf16.msk.msra.mxu1 %vm6864_vm10, %v6111_v2 }
 0x6a5   : > { %v8323_v21 = vsel %vm6884_vm2, 4294967295, %v8322_v21  ;;  %v1593_v34 = vmul.f32 %v6661_v35, %v6681_v42  ;;  %v1592_v47 = vmul.f32 %v6661_v35, %v6678_v41  ;;  %5739 = vmatprep.subr.msk.bf16.mxu1 %vm6884_vm2, %v6111_v2  ;;  %v1461_v42 = vmul.f32 %v6665_v37, %v6805_v20 }
 0x6a6   : > { %1472 = vrot.lane.b32.xlu1 %v1455_v50, %s8308_s15  ;;  %1470 = vrot.lane.b32.xlu0 %v1454_v51, %s8308_s15  ;;  %vm514_vm4 = vcmp.eq.s32.totalorder %v495_v32, %v6710_v58  ;;  %v8325_v50 = vmov 0  ;;  %v1460_v35 = vmul.f32 %v6665_v37, %v6802_v18  ;;  %v1595_v51 = vmul.f32 %v6663_v36, %v6689_v46 }
 0x6a7   : > { %vm6902_vm12 = vmpackc.low %vm515_vm0, %vm514_vm4  ;;  %v1594_v52 = vmul.f32 %v6663_v36, %v6686_v45  ;;  %v1528_v37 = vmul.f32 %v6669_v16, %v6735_v63  ;;  %v1530_v36 = vmul.f32 %v6667_v7, %v6805_v20  ;;  %v1529_v46 = vmul.f32 %v6667_v7, %v6802_v18 }
 0x6a8   : > { %v8326_v50 = vsel %vm6902_vm12, 4294967295, %v8325_v50  ;;  %5741 = vmatpush3.bf16.msk.msra.mxu1 %vm6884_vm2, %v6111_v2  ;;  %v1597_v58 = vmul.f32 %v6671_v38, %v6735_v63  ;;  %v1598_v7 = vmul.f32 %v6675_v12, %v6802_v18  ;;  %v5067_v63 = vld [vmem:[%s8250_s7 + $0x28] sm:$0xff]  ;;  %vm8282_vm0 = vcmask 523264  }
 0x6a9   : > { %5743 = vmatprep.subr.msk.bf16.mxu1 %vm6902_vm12, %v6111_v2  ;;  %vm8276_vm14 = vcmask 539648   ;;  %vm8283_vm4 = vcmask 261120  }
 0x6aa   : > { %1476 = vrot.lane.b32.xlu1 %v1457_v53, %s8308_s15  ;;  %1474 = vrot.lane.b32.xlu0 %v1456_v60, %s8308_s15  ;;  %v1527_v53 = vmul.f32 %v6669_v16, %v6732_v30  ;;  %v1596_v16 = vmul.f32 %v6671_v38, %v6732_v30  ;;  %v1599_v60 = vmul.f32 %v6675_v12, %v6805_v20  ;;  %v5066_v38 = vld [vmem:[%s8250_s7 + $0x20] sm:$0xff]  ;;  %v5068_v12 = vld [vmem:[%s8250_s7 + $0x30] sm:$0xff] }
 0x6ac   : > { %5745 = vmatpush3.bf16.msk.msra.mxu1 %vm6902_vm12, %v6111_v2 }
 0x6ae   : > { %1411 = vrot.lane.b32.xlu1 %v1390_v10, %s8307_s20  ;;  %1409 = vrot.lane.b32.xlu0 %v1389_v11, %s8307_s20  ;;  %v5069_v10 = vld [vmem:[%s8250_s7 + $0x38] sm:$0xff]  ;;  %v1344_v11 = vpop.permute.xlu1 %1343 }
 0x6b2   : > { %1541 = vrot.lane.b32.xlu1 %v1524_v15, %s8315_s21  ;;  %1539 = vrot.lane.b32.xlu0 %v1523_v17, %s8315_s21  ;;  %v1354_v13 = vpop.permute.xlu1 %1353 }
 0x6b3   : > { %v1349_v8 = vpop.permute.xlu0 %1348 }
 0x6b6   : > { %1415 = vrot.lane.b32.xlu1 %v1392_v26, %s8307_s20  ;;  %1413 = vrot.lane.b32.xlu0 %v1391_v27, %s8307_s20 }
 0x6ba   : > { %1545 = vrot.lane.b32.xlu1 %v1526_v33, %s8315_s21  ;;  %1543 = vrot.lane.b32.xlu0 %v1525_v39, %s8315_s21 }
 0x6be   : > { %1480 = vrot.lane.b32.xlu1 %v1459_v44, %s8308_s15  ;;  %1478 = vrot.lane.b32.xlu0 %v1458_v6, %s8308_s15 }
 0x6c2   : > { %1610 = vrot.lane.b32.xlu1 %v1593_v34, %s8324_s1  ;;  %1608 = vrot.lane.b32.xlu0 %v1592_v47, %s8324_s1  ;;  %v1356_v47 = vmul.f32 %v6673_v4, %v6678_v41 }
 0x6c6   : > { %1484 = vrot.lane.b32.xlu1 %v1461_v42, %s8308_s15  ;;  %1482 = vrot.lane.b32.xlu0 %v1460_v35, %s8308_s15 }
 0x6ca   : > { %1614 = vrot.lane.b32.xlu1 %v1595_v51, %s8324_s1  ;;  %1612 = vrot.lane.b32.xlu0 %v1594_v52, %s8324_s1 }
 0x6ce   : > { %1549 = vrot.lane.b32.xlu1 %v1528_v37, %s8315_s21  ;;  %1547 = vrot.lane.b32.xlu0 %v1527_v53, %s8315_s21 }
 0x6d2   : > { %1553 = vrot.lane.b32.xlu1 %v1530_v36, %s8315_s21  ;;  %1551 = vrot.lane.b32.xlu0 %v1529_v46, %s8315_s21 }
 0x6d6   : > { %1618 = vrot.lane.b32.xlu1 %v1597_v58, %s8324_s1  ;;  %1616 = vrot.lane.b32.xlu0 %v1596_v16, %s8324_s1 }
 0x6da   : > { %1622 = vrot.lane.b32.xlu1 %v1599_v60, %s8324_s1  ;;  %1620 = vrot.lane.b32.xlu0 %v1598_v7, %s8324_s1  ;;  %v1357_v7 = vmul.f32 %v1344_v11, %v6686_v45  ;;  %v1358_v11 = vmul.f32 %v1349_v8, %v6732_v30 }
 0x6de   : > { %1648 = vperm.xlu1 %5998, %v5067_v63   ;;  %1643 = vperm.xlu0 %5997, %v5066_v38  }
 0x6e2   : > { %1658 = vperm.xlu1 %5998, %v5069_v10   ;;  %1653 = vperm.xlu0 %5997, %v5068_v12  }
 0x710   : > { %v1404_v14 = vpop.permute.xlu1 %1403  ;;  %v1402_v15 = vpop.permute.xlu0 %1401 }
 0x711   : > { %v1417_v34 = vsel %vm8280_vm6, %v1402_v15, %v1404_v14 }
 0x712   : > { %v1425_v35 = vadd.f32 %v1417_v34, %v1356_v47 }
 0x714   : > { %v1408_v17 = vpop.permute.xlu1 %1407  ;;  %v1406_v20 = vpop.permute.xlu0 %1405 }
 0x715   : > { %v1418_v16 = vsel %vm8280_vm6, %v1406_v20, %v1408_v17 }
 0x716   : > { %v1426_v41 = vadd.f32 %v1418_v16, %v1357_v7 }
 0x718   : > { %v1473_v24 = vpop.permute.xlu1 %1472  ;;  %v1471_v25 = vpop.permute.xlu0 %1470 }
 0x719   : > { %v1486_v42 = vsel %vm8279_vm7, %v1471_v25, %v1473_v24 }
 0x71a   : > { %v1494_v53 = vadd.f32 %v1486_v42, %v1425_v35  ;;  %v1359_v42 = vmul.f32 %v1354_v13, %v6802_v18 }
 0x71c   : > { %v1477_v26 = vpop.permute.xlu1 %1476  ;;  %v1475_v27 = vpop.permute.xlu0 %1474 }
 0x71d   : > { %v1487_v4 = vsel %vm8279_vm7, %v1475_v27, %v1477_v26 }
 0x71e   : > { %v1495_v14 = vadd.f32 %v1487_v4, %v1426_v41 }
 0x720   : > { %v1412_v29 = vpop.permute.xlu1 %1411  ;;  %v1410_v31 = vpop.permute.xlu0 %1409 }
 0x721   : > { %v1419_v45 = vsel %vm8280_vm6, %v1410_v31, %v1412_v29 }
 0x722   : > { %v1427_v27 = vadd.f32 %v1419_v45, %v1358_v11  ;;  %v5086_v11 = vld [vmem:[%s8251_s8 + $0x20] sm:$0xff] }
 0x724   : > { %v1542_v33 = vpop.permute.xlu1 %1541  ;;  %v1540_v39 = vpop.permute.xlu0 %1539 }
 0x725   : > { %v1555_v37 = vsel %vm8278_vm8, %v1540_v39, %v1542_v33 }
 0x726   : > { %v1563_v58 = vadd.f32 %v1555_v37, %v1494_v53 }
 0x728   : > { %v1416_v32 = vpop.permute.xlu1 %1415  ;;  %v1414_v43 = vpop.permute.xlu0 %1413 }
 0x72c   : > { %v1546_v44 = vpop.permute.xlu1 %1545  ;;  %v1544_v6 = vpop.permute.xlu0 %1543 }
 0x72d   : > { %v1556_v12 = vsel %vm8278_vm8, %v1544_v6, %v1546_v44  ;;  %v1420_v44 = vsel %vm8280_vm6, %v1414_v43, %v1416_v32 }
 0x72e   : > { %v1564_v15 = vadd.f32 %v1556_v12, %v1495_v14  ;;  %v1428_v53 = vadd.f32 %v1420_v44, %v1359_v42  ;;  %v5102_v44 = vld [vmem:[%s8249_s6 + $0x180] sm:$0xff]  ;;  %v5107_v42 = vld [vmem:[%s8249_s6 + $0x1a8] sm:$0xff] }
 0x730   : > { %v1481_v51 = vpop.permute.xlu1 %1480  ;;  %v1479_v52 = vpop.permute.xlu0 %1478 }
 0x731   : > { %v1488_v26 = vsel %vm8279_vm7, %v1479_v52, %v1481_v51 }
 0x732   : > { %v1496_v35 = vadd.f32 %v1488_v26, %v1427_v27  ;;  %v5090_v26 = vld [vmem:[%s8252_s9 + $0x20] sm:$0xff]  ;;  %v5088_v27 = vld [vmem:[%s8251_s8 + $0x30] sm:$0xff] }
 0x734   : > { %v1611_v36 = vpop.permute.xlu1 %1610  ;;  %v1609_v46 = vpop.permute.xlu0 %1608 }
 0x735   : > { %v1624_v60 = vsel %vm8277_vm9, %v1609_v46, %v1611_v36 }
 0x736   : > { %v1632_v63 = vadd.f32 %v1624_v60, %v1563_v58 }
 0x738   : > { %v1485_v38 = vpop.permute.xlu1 %1484  ;;  %5518 = vmatprep.mubr.f32.mxu1 %v1632_v63  ;;  %v1483_v10 = vpop.permute.xlu0 %1482 }
 0x739   : > { %v1489_v37 = vsel %vm8279_vm7, %v1483_v10, %v1485_v38 }
 0x73a   : > { %v1497_v31 = vadd.f32 %v1489_v37, %v1428_v53  ;;  %v5105_v37 = vld [vmem:[%s8249_s6 + $0x198] sm:$0xff]  ;;  %v5108_v53 = vld [vmem:[%s8249_s6 + $0x1b0] sm:$0xff] }
 0x73c   : > { %v1615_v24 = vpop.permute.xlu1 %1614  ;;  %v1613_v25 = vpop.permute.xlu0 %1612 }
 0x73d   : > { %v1625_v33 = vsel %vm8277_vm9, %v1613_v25, %v1615_v24 }
 0x73e   : > { %v1633_v17 = vadd.f32 %v1625_v33, %v1564_v15 }
 0x740   : > { %v1550_v20 = vpop.permute.xlu1 %1549  ;;  %5519 = vmatmul.mubr.f32.vlgmr.msra.gmra.mrb[0].mxu1 %v1633_v17  ;;  %v1548_v39 = vpop.permute.xlu0 %1547 }
 0x741   : > { %v1557_v6 = vsel %vm8278_vm8, %v1548_v39, %v1550_v20 }
 0x742   : > { %v1565_v36 = vadd.f32 %v1557_v6, %v1496_v35  ;;  %v5100_v6 = vld [vmem:[%s8249_s6 + $0x170] sm:$0xff] }
 0x743   : > { %v5104_v35 = vld [vmem:[%s8249_s6 + $0x190] sm:$0xff] }
 0x744   : > { %v1554_v34 = vpop.permute.xlu1 %1553  ;;  %v1552_v47 = vpop.permute.xlu0 %1551 }
 0x745   : > { %v1558_v30 = vsel %vm8278_vm8, %v1552_v47, %v1554_v34  ;;  %v5092_v34 = vld [vmem:[%s8252_s9 + $0x30] sm:$0xff]  ;;  %v5098_v47 = vld [vmem:[%s8249_s6 + $0x160] sm:$0xff] }
 0x746   : > { %v1566_v52 = vadd.f32 %v1558_v30, %v1497_v31 }
 0x748   : > { %v1619_v46 = vpop.permute.xlu1 %1618  ;;  %v1617_v29 = vpop.permute.xlu0 %1616 }
 0x749   : > { %v1626_v8 = vsel %vm8277_vm9, %v1617_v29, %v1619_v46 }
 0x74a   : > { %v1634_v51 = vadd.f32 %v1626_v8, %v1565_v36 }
 0x74c   : > { %v1623_v58 = vpop.permute.xlu1 %1622  ;;  %5521 = vmatprep.mubr.f32.mxu1 %v1634_v51  ;;  %v1621_v32 = vpop.permute.xlu0 %1620 }
 0x74d   : > { %v1627_v43 = vsel %vm8277_vm9, %v1621_v32, %v1623_v58 }
 0x74e   : > { %v1635_v18 = vadd.f32 %v1627_v43, %v1566_v52 }
 0x750   : > { %5522 = vmatmul.mubr.f32.gmra.mrb[2].mxu1 %v1635_v18 }
 0x75d   : > { %v1649_v60 = vpop.permute.xlu1 %1648  ;;  %v1644_v7 = vpop.permute.xlu0 %1643 }
 0x761   : > { %v1659_v41 = vpop.permute.xlu1 %1658  ;;  %v1654_v14 = vpop.permute.xlu0 %1653 }
 0x813   : > { %v5520_v13 = vpop.f32.mrb[0].mxu1 }
 0x814   : > { %v1727_v16 = vpop.f32.mrb[1].mxu1  ;;  %v1733_v63 = vadd.f32 %v5520_v13, %v1649_v60 }
 0x815   : > { %v1728_v4 = vadd.f32 %v1727_v16, %v1644_v7 }
 0x816   : > { %v1758_v38 = vsel %vm8282_vm0, %v1733_v63, 0.0 }
 0x817   : > { %v1757_v10 = vsel %vm8282_vm0, %v1728_v4, 0.0 }
 0x818   : > { %v1759_v33 = vadd.f32 %v1758_v38, %v1757_v10 }
 0x823   : > { %v5523_v12 = vpop.f32.mrb[2].mxu1 }
 0x824   : > { %v1737_v15 = vpop.f32.mrb[3].mxu1  ;;  %v1743_v24 = vadd.f32 %v5523_v12, %v1659_v41 }
 0x825   : > { %v1738_v25 = vadd.f32 %v1737_v15, %v1654_v14 }
 0x826   : > { %v1762_v39 = vsel %vm8282_vm0, %v1743_v24, 0.0 }
 0x827   : > { %v1760_v17 = vsel %vm8282_vm0, %v1738_v25, 0.0 }
 0x828   : > { %v1761_v20 = vadd.f32 %v1760_v17, %v1759_v33  ;;  %v5099_v17 = vld [vmem:[%s8249_s6 + $0x168] sm:$0xff] }
 0x82a   : > { %v1763_v45 = vadd.f32 %v1762_v39, %v1761_v20  ;;  %v5103_v20 = vld [vmem:[%s8249_s6 + $0x188] sm:$0xff]  ;;  %v5106_v39 = vld [vmem:[%s8249_s6 + $0x1a0] sm:$0xff] }
 0x82c   : > { %1764 = vadd.xlane.f32.xlu0 %v1763_v45  ;;  %v5101_v45 = vld [vmem:[%s8249_s6 + $0x178] sm:$0xff] }
 0x842   : > { %1811 = vperm.xlu0 %5997, %v5086_v11   ;;  %v5110_v11 = vld [vmem:[%s8249_s6 + $0x1c0] sm:$0xff] }
 0x846   : > { %1835 = vperm.xlu0 %5997, %v5090_v26   ;;  %v5111_v26 = vld [vmem:[%s8249_s6 + $0x1c8] sm:$0xff] }
 0x84a   : > { %1821 = vperm.xlu0 %5997, %v5088_v27  }
 0x84e   : > { %1845 = vperm.xlu0 %5997, %v5092_v34  }
 0x852   : > { %1918 = vperm.xlu0 %5997, %v5098_v47  }
 0x856   : > { %1967 = vperm.xlu0 %5997, %v5102_v44  }
 0x85a   : > { %1928 = vperm.xlu0 %5997, %v5100_v6  }
 0x85e   : > { %2021 = vperm.xlu0 %5997, %v5107_v42  }
 0x862   : > { %1977 = vperm.xlu0 %5997, %v5104_v35  }
 0x866   : > { %1982 = vperm.xlu0 %5997, %v5105_v37  }
 0x86a   : > { %2026 = vperm.xlu0 %5997, %v5108_v53  }
 0x8b9   : > { %v1765_v36 = vpop.xlane.xlu0 %1764 }
 0x8ba   : > { %v1766_v46 = vrot.slane %v1765_v36, 4 }
 0x8bc   : > { %v1767_v29 = vadd.f32 %v1766_v46, %v1765_v36 }
 0x8be   : > { %v1768_v30 = vrot.slane %v1767_v29, 2 }
 0x8c0   : > { %v1769_v8 = vadd.f32 %v1768_v30, %v1767_v29 }
 0x8c1   : > { %v1812_v36 = vpop.permute.xlu0 %1811 }
 0x8c2   : > { %v1770_v31 = vrot.slane %v1769_v8, 1 }
 0x8c4   : > { %v1771_v51 = vadd.f32 %v1770_v31, %v1769_v8 }
 0x8c5   : > { %v1836_v29 = vpop.permute.xlu0 %1835 }
 0x8c6   : > { %5890 = vpush %v1771_v51 }
 0x8f7   : > { %s5891_s24 = spop %5890 }
 0x8f8   : > { %s1773_s28 = smul.f32 0.00048828125, %s5891_s24 }
 0x8fa   : > { %v1774_v52 = vstv %s1773_s28 }
 0x8fb   : > { %v1775_v58 = vsub.f32 %v1728_v4, %v1774_v52  ;;  %v1776_v32 = vsub.f32 %v1733_v63, %v1774_v52  ;;  %v1777_v43 = vsub.f32 %v1738_v25, %v1774_v52  ;;  %v1778_v18 = vsub.f32 %v1743_v24, %v1774_v52  ;;  %v5087_v63 = vld [vmem:[%s8251_s8 + $0x28] sm:$0xff]  ;;  %v5089_v24 = vld [vmem:[%s8251_s8 + $0x38] sm:$0xff] }
 0x8fc   : > { %v5091_v4 = vld [vmem:[%s8252_s9 + $0x28] sm:$0xff]  ;;  %v5093_v25 = vld [vmem:[%s8252_s9 + $0x38] sm:$0xff] }
 0x8fd   : > { %v1779_v13 = vmul.f32 %v1775_v58, %v1775_v58  ;;  %v1780_v16 = vmul.f32 %v1776_v32, %v1776_v32  ;;  %v1781_v60 = vmul.f32 %v1777_v43, %v1777_v43  ;;  %v1782_v7 = vmul.f32 %v1778_v18, %v1778_v18 }
 0x8ff   : > { %v1783_v41 = vsel %vm8282_vm0, %v1779_v13, 0.0  ;;  %v1784_v38 = vsel %vm8282_vm0, %v1780_v16, 0.0  ;;  %v1786_v12 = vsel %vm8282_vm0, %v1781_v60, 0.0  ;;  %v1788_v15 = vsel %vm8282_vm0, %v1782_v7, 0.0  ;;  %v1822_v13 = vpop.permute.xlu0 %1821 }
 0x900   : > { %v1785_v10 = vadd.f32 %v1784_v38, %v1783_v41 }
 0x902   : > { %v1787_v14 = vadd.f32 %v1786_v12, %v1785_v10 }
 0x904   : > { %v1789_v33 = vadd.f32 %v1788_v15, %v1787_v14  ;;  %v1846_v14 = vpop.permute.xlu0 %1845  ;;  %v5112_v15 = vld [vmem:[%s8249_s6 + $0x1d0] sm:$0xff] }
 0x906   : > { %1790 = vadd.xlane.f32.xlu1 %v1789_v33 }
 0x917   : > { %1816 = vperm.xlu1 %5998, %v5087_v63   ;;  %v5094_v63 = vld [vmem:[%s8249_s6 + $0x140] sm:$0xff] }
 0x91b   : > { %1840 = vperm.xlu1 %5998, %v5091_v4   ;;  %v5113_v4 = vld [vmem:[%s8249_s6 + $0x1d8] sm:$0xff] }
 0x91f   : > { %1826 = vperm.xlu1 %5998, %v5089_v24   ;;  %v5096_v24 = vld [vmem:[%s8249_s6 + $0x150] sm:$0xff] }
 0x923   : > { %1850 = vperm.xlu1 %5998, %v5093_v25   ;;  %v5095_v25 = vld [vmem:[%s8249_s6 + $0x148] sm:$0xff] }
 0x927   : > { %1923 = vperm.xlu1 %5998, %v5099_v17   ;;  %v5097_v17 = vld [vmem:[%s8249_s6 + $0x158] sm:$0xff] }
 0x92b   : > { %1972 = vperm.xlu1 %5998, %v5103_v20   ;;  %v1919_v20 = vpop.permute.xlu0 %1918 }
 0x92f   : > { %2016 = vperm.xlu1 %5998, %v5106_v39   ;;  %v1968_v39 = vpop.permute.xlu0 %1967 }
 0x933   : > { %1933 = vperm.xlu1 %5998, %v5101_v45  }
 0x937   : > { %2065 = vperm.xlu1 %5998, %v5110_v11   ;;  %v1929_v11 = vpop.permute.xlu0 %1928 }
 0x93b   : > { %2070 = vperm.xlu1 %5998, %v5111_v26  }
 0x993   : > { %v1791_v27 = vpop.xlane.xlu1 %1790 }
 0x994   : > { %v1792_v34 = vrot.slane %v1791_v27, 4 }
 0x996   : > { %v1793_v47 = vadd.f32 %v1792_v34, %v1791_v27  ;;  %v2022_v27 = vpop.permute.xlu0 %2021 }
 0x997   : > { %v1817_v46 = vpop.permute.xlu1 %1816 }
 0x998   : > { %v1794_v44 = vrot.slane %v1793_v47, 2 }
 0x99a   : > { %v1795_v6 = vadd.f32 %v1794_v44, %v1793_v47  ;;  %v1978_v47 = vpop.permute.xlu0 %1977 }
 0x99b   : > { %v1841_v30 = vpop.permute.xlu1 %1840 }
 0x99c   : > { %v1796_v42 = vrot.slane %v1795_v6, 1 }
 0x99e   : > { %v1797_v35 = vadd.f32 %v1796_v42, %v1795_v6  ;;  %v1983_v6 = vpop.permute.xlu0 %1982 }
 0x99f   : > { %v1827_v12 = vpop.permute.xlu1 %1826 }
 0x9a0   : > { %5892 = vpush %v1797_v35 }
 0x9a2   : > { %v2027_v35 = vpop.permute.xlu0 %2026 }
 0x9d1   : > { %s5893_s26 = spop %5892 }
 0x9d2   : > { %s1799_s22 = smul.f32 0.00048828125, %s5893_s26 }
 0x9d4   : > { %s1800_s19 = sadd.f32 1e-08, %s1799_s22 }
 0x9d6   : > { %v1801_v37 = vstv %s1800_s19 }
 0x9d7   : > { %6003 = vrsqrt.f32 %v1801_v37 }
 0x9e1   : > { %v6004_v53 = vpop.eup %6003 }
 0x9e2   : > { %5894 = vpush %v6004_v53 }
 0xa13   : > { %s5895_s18 = spop %5894 }
 0xa14   : > { %v1804_v8 = vstv %s5895_s18 }
 0xa15   : > { %v1805_v31 = vmul.f32 %v1804_v8, %v1775_v58  ;;  %v1806_v51 = vmul.f32 %v1804_v8, %v1776_v32  ;;  %v1807_v52 = vmul.f32 %v1804_v8, %v1777_v43  ;;  %v1808_v7 = vmul.f32 %v1804_v8, %v1778_v18  ;;  %v5109_v58 = vld [vmem:[%s8249_s6 + $0x1b8] sm:$0xff]  ;;  %v1851_v18 = vpop.permute.xlu1 %1850 }
 0xa17   : > { %v1829_v16 = vmul.f32 %v1812_v36, %v1805_v31  ;;  %v1830_v60 = vmul.f32 %v1817_v46, %v1806_v51  ;;  %v1831_v41 = vmul.f32 %v1822_v13, %v1807_v52  ;;  %v1832_v32 = vmul.f32 %v1827_v12, %v1808_v7 }
 0xa19   : > { %v7055_v38 = vadd.f32 %v1841_v30, %v1830_v60  ;;  %v7057_v10 = vadd.f32 %v1836_v29, %v1829_v16  ;;  %v7066_v43 = vadd.f32 %v1846_v14, %v1831_v41  ;;  %v7073_v33 = vadd.f32 %v1851_v18, %v1832_v32  ;;  %v1924_v45 = vpop.permute.xlu1 %1923 }
 0xa1b   : > { %1863 = vrot.lane.b32.xlu1 %v7055_v38, %s8306_s25  ;;  %1861 = vrot.lane.b32.xlu0 %v7057_v10, %s8306_s25 }
 0xa1d   : > { %v1973_v26 = vpop.permute.xlu1 %1972 }
 0xa1f   : > { %2031 = vperm.xlu0 %5997, %v5109_v58   ;;  %1865 = vrot.lane.b32.xlu1 %v7066_v43, %s8306_s25 }
 0xa21   : > { %v2017_v34 = vpop.permute.xlu1 %2016 }
 0xa23   : > { %2075 = vperm.xlu0 %5997, %v5112_v15   ;;  %1867 = vrot.lane.b32.xlu1 %v7073_v33, %s8306_s25 }
 0xa25   : > { %v1934_v44 = vpop.permute.xlu1 %1933 }
 0xa27   : > { %1889 = vperm.xlu0 %5997, %v5094_v63   ;;  %2080 = vperm.xlu1 %5998, %v5113_v4  }
 0xa29   : > { %v2066_v42 = vpop.permute.xlu1 %2065 }
 0xa2b   : > { %1899 = vperm.xlu0 %5997, %v5096_v24   ;;  %1894 = vperm.xlu1 %5998, %v5095_v25  }
 0xa2d   : > { %v2071_v37 = vpop.permute.xlu1 %2070 }
 0xa2f   : > { %1904 = vperm.xlu1 %5998, %v5097_v17  }
 0xa8d   : > { %v1864_v53 = vpop.permute.xlu1 %1863  ;;  %v1862_v36 = vpop.permute.xlu0 %1861 }
 0xa8e   : > { %v1874_v46 = vsel %vm8281_vm5, 0.0, %v1864_v53  ;;  %v1873_v29 = vsel %vm8281_vm5, 0.0, %v1862_v36 }
 0xa8f   : > { %v7095_v30 = vsel %vm8276_vm14, %v1874_v46, 0.0  ;;  %v1878_v8 = vsel %vm8276_vm14, %v1873_v29, 0.0 }
 0xa90   : > { %v1937_v31 = vmul.f32 %v1924_v45, %v7095_v30  ;;  %v1936_v51 = vmul.f32 %v1919_v20, %v1878_v8  ;;  %v1986_v16 = vmul.f32 %v1973_v26, %v7095_v30  ;;  %v1985_v60 = vmul.f32 %v1968_v39, %v1878_v8 }
 0xa91   : > { %v1866_v52 = vpop.permute.xlu1 %1865  ;;  %v2034_v14 = vmul.f32 %v2017_v34, %v1878_v8  ;;  %v2035_v18 = vmul.f32 %v2022_v27, %v7095_v30  ;;  %v2083_v63 = vmul.f32 %v2066_v42, %v1878_v8  ;;  %v2084_v25 = vmul.f32 %v2071_v37, %v7095_v30  ;;  %v5115_v34 = vld [vmem:[%s8250_s7 + $0x48] sm:$0xff] }
 0xa92   : > { %v1875_v13 = vsel %vm8281_vm5, 0.0, %v1866_v52  ;;  %1946 = vrot.lane.b32.xlu1 %v1937_v31, %s8307_s20  ;;  %1944 = vrot.lane.b32.xlu0 %v1936_v51, %s8307_s20 }
 0xa93   : > { %v7104_v7 = vsel %vm8276_vm14, %v1875_v13, 0.0 }
 0xa94   : > { %v1938_v58 = vmul.f32 %v1929_v11, %v7104_v7  ;;  %v1987_v4 = vmul.f32 %v1978_v47, %v7104_v7  ;;  %v2036_v39 = vmul.f32 %v2027_v35, %v7104_v7  ;;  %v5114_v47 = vld [vmem:[%s8250_s7 + $0x40] sm:$0xff] }
 0xa95   : > { %v1868_v41 = vpop.permute.xlu1 %1867 }
 0xa96   : > { %v1876_v12 = vsel %vm8281_vm5, 0.0, %v1868_v41  ;;  %1995 = vrot.lane.b32.xlu1 %v1986_v16, %s8308_s15  ;;  %1993 = vrot.lane.b32.xlu0 %v1985_v60, %s8308_s15 }
 0xa97   : > { %v1881_v32 = vsel %vm8276_vm14, %v1876_v12, 0.0 }
 0xa98   : > { %v1939_v15 = vmul.f32 %v1934_v44, %v1881_v32  ;;  %v1988_v17 = vmul.f32 %v1983_v6, %v1881_v32  ;;  %v5117_v44 = vld [vmem:[%s8250_s7 + $0x58] sm:$0xff]  ;;  %v5116_v6 = vld [vmem:[%s8250_s7 + $0x50] sm:$0xff] }
 0xa9a   : > { %2042 = vrot.lane.b32.xlu1 %v2034_v14, %s8315_s21  ;;  %1948 = vrot.lane.b32.xlu0 %v1938_v58, %s8307_s20 }
 0xa9e   : > { %2044 = vrot.lane.b32.xlu1 %v2035_v18, %s8315_s21  ;;  %1950 = vrot.lane.b32.xlu0 %v1939_v15, %s8307_s20  ;;  %v2032_v24 = vpop.permute.xlu0 %2031 }
 0xa9f   : > { %v2037_v20 = vmul.f32 %v2032_v24, %v1881_v32 }
 0xaa2   : > { %2091 = vrot.lane.b32.xlu1 %v2083_v63, %s8324_s1  ;;  %1997 = vrot.lane.b32.xlu0 %v1987_v4, %s8308_s15  ;;  %v2076_v45 = vpop.permute.xlu0 %2075 }
 0xaa3   : > { %v2085_v26 = vmul.f32 %v2076_v45, %v7104_v7 }
 0xaa6   : > { %2093 = vrot.lane.b32.xlu1 %v2084_v25, %s8324_s1  ;;  %1999 = vrot.lane.b32.xlu0 %v1988_v17, %s8308_s15  ;;  %v2081_v11 = vpop.permute.xlu1 %2080  ;;  %v1890_v42 = vpop.permute.xlu0 %1889 }
 0xaa7   : > { %v2086_v27 = vmul.f32 %v2081_v11, %v1881_v32  ;;  %v1907_v13 = vmul.f32 %v1890_v42, %v1878_v8 }
 0xaaa   : > { %2046 = vrot.lane.b32.xlu0 %v2036_v39, %s8315_s21  ;;  %2048 = vrot.lane.b32.xlu1 %v2037_v20, %s8315_s21  ;;  %v1895_v35 = vpop.permute.xlu1 %1894  ;;  %v1900_v37 = vpop.permute.xlu0 %1899 }
 0xaab   : > { %v1908_v12 = vmul.f32 %v1895_v35, %v7095_v30  ;;  %v1909_v39 = vmul.f32 %v1900_v37, %v7104_v7 }
 0xaae   : > { %2097 = vrot.lane.b32.xlu1 %v2086_v27, %s8324_s1  ;;  %2095 = vrot.lane.b32.xlu0 %v2085_v26, %s8324_s1  ;;  %v1905_v53 = vpop.permute.xlu1 %1904 }
 0xaaf   : > { %v1910_v8 = vmul.f32 %v1905_v53, %v1881_v32 }
 0xab2   : > { %2119 = vperm.xlu1 %5998, %v5115_v34   ;;  %2114 = vperm.xlu0 %5997, %v5114_v47  }
 0xab6   : > { %2129 = vperm.xlu1 %5998, %v5117_v44   ;;  %2124 = vperm.xlu0 %5997, %v5116_v6  }
 0xb04   : > { %v1947_v36 = vpop.permute.xlu1 %1946  ;;  %v1945_v46 = vpop.permute.xlu0 %1944 }
 0xb05   : > { %v1956_v16 = vadd.f32 %v1945_v46, %v1907_v13  ;;  %v1957_v58 = vadd.f32 %v1947_v36, %v1908_v12 }
 0xb08   : > { %v1996_v29 = vpop.permute.xlu1 %1995  ;;  %v1994_v31 = vpop.permute.xlu0 %1993 }
 0xb09   : > { %v2005_v14 = vadd.f32 %v1994_v31, %v1956_v16  ;;  %v2006_v4 = vadd.f32 %v1996_v29, %v1957_v58 }
 0xb0c   : > { %v2043_v51 = vpop.permute.xlu1 %2042  ;;  %v1949_v52 = vpop.permute.xlu0 %1948 }
 0xb0d   : > { %v2054_v18 = vadd.f32 %v2043_v51, %v2005_v14  ;;  %v1958_v11 = vadd.f32 %v1949_v52, %v1909_v39 }
 0xb10   : > { %v2045_v60 = vpop.permute.xlu1 %2044  ;;  %v1951_v41 = vpop.permute.xlu0 %1950 }
 0xb11   : > { %v2055_v25 = vadd.f32 %v2045_v60, %v2006_v4  ;;  %v1959_v26 = vadd.f32 %v1951_v41, %v1910_v8 }
 0xb14   : > { %v2092_v15 = vpop.permute.xlu1 %2091  ;;  %v1998_v63 = vpop.permute.xlu0 %1997 }
 0xb15   : > { %v2103_v24 = vadd.f32 %v2092_v15, %v2054_v18  ;;  %v2007_v34 = vadd.f32 %v1998_v63, %v1958_v11 }
 0xb17   : > { %5540 = vmatprep.mubr.msk.f32.mxu0 %vm8282_vm0, %v2103_v24  ;;  %v5130_v24 = vld [vmem:[%s8251_s8 + $0x40] sm:$0xff] }
 0xb18   : > { %v2094_v17 = vpop.permute.xlu1 %2093  ;;  %v2000_v20 = vpop.permute.xlu0 %1999 }
 0xb19   : > { %v2104_v45 = vadd.f32 %v2094_v17, %v2055_v25  ;;  %v2008_v47 = vadd.f32 %v2000_v20, %v1959_v26  ;;  %v5134_v25 = vld [vmem:[%s8252_s9 + $0x40] sm:$0xff]  ;;  %v5132_v17 = vld [vmem:[%s8251_s8 + $0x50] sm:$0xff] }
 0xb1a   : > { %v5136_v20 = vld [vmem:[%s8252_s9 + $0x50] sm:$0xff] }
 0xb1b   : > { %5541 = vmatmul.mubr.msk.f32.vlgmr.msra.gmra.mrb[4].mxu0 %vm8282_vm0, %v2104_v45 }
 0xb1c   : > { %v2049_v30 = vpop.permute.xlu1 %2048  ;;  %v2047_v27 = vpop.permute.xlu0 %2046 }
 0xb1d   : > { %v2057_v44 = vadd.f32 %v2049_v30, %v2008_v47  ;;  %v2056_v6 = vadd.f32 %v2047_v27, %v2007_v34 }
 0xb20   : > { %v2098_v42 = vpop.permute.xlu1 %2097  ;;  %v2096_v35 = vpop.permute.xlu0 %2095 }
 0xb21   : > { %v2106_v36 = vadd.f32 %v2098_v42, %v2057_v44  ;;  %v2105_v46 = vadd.f32 %v2096_v35, %v2056_v6 }
 0xb23   : > { %5543 = vmatprep.mubr.msk.f32.mxu0 %vm8282_vm0, %v2105_v46 }
 0xb24   : > { %5544 = vmatmul.mubr.msk.f32.gmra.mrb[6].mxu0 %vm8282_vm0, %v2106_v36 }
 0xb31   : > { %v2120_v37 = vpop.permute.xlu1 %2119  ;;  %v2115_v53 = vpop.permute.xlu0 %2114 }
 0xb35   : > { %v2130_v51 = vpop.permute.xlu1 %2129  ;;  %v2125_v60 = vpop.permute.xlu0 %2124 }
 0xbee   : > { %v5542_v7 = vpop.f32.mrb[4].mxu0 }
 0xbef   : > { %v2210_v32 = vpop.f32.mrb[5].mxu0  ;;  %v2216_v29 = vadd.f32 %v5542_v7, %v2120_v37 }
 0xbf0   : > { %v2211_v31 = vadd.f32 %v2210_v32, %v2115_v53 }
 0xbf1   : > { %v2241_v52 = vsel %vm8283_vm4, %v2216_v29, 0.0 }
 0xbf2   : > { %v2240_v13 = vsel %vm8283_vm4, %v2211_v31, 0.0 }
 0xbf3   : > { %v2242_v58 = vadd.f32 %v2241_v52, %v2240_v13  ;;  %v5131_v13 = vld [vmem:[%s8251_s8 + $0x48] sm:$0xff] }
 0xbf7   : > { %v5545_v16 = vpop.f32.mrb[6].mxu0 }
 0xbf8   : > { %v2220_v41 = vpop.f32.mrb[7].mxu0  ;;  %v2226_v12 = vadd.f32 %v5545_v16, %v2130_v51  ;;  %v5135_v16 = vld [vmem:[%s8252_s9 + $0x48] sm:$0xff] }
 0xbf9   : > { %v2221_v14 = vadd.f32 %v2220_v41, %v2125_v60  ;;  %v5133_v60 = vld [vmem:[%s8251_s8 + $0x58] sm:$0xff] }
 0xbfa   : > { %v2245_v63 = vsel %vm8283_vm4, %v2226_v12, 0.0  ;;  %v5137_v41 = vld [vmem:[%s8252_s9 + $0x58] sm:$0xff] }
 0xbfb   : > { %v2243_v18 = vsel %vm8283_vm4, %v2221_v14, 0.0 }
 0xbfc   : > { %v2244_v15 = vadd.f32 %v2243_v18, %v2242_v58  ;;  %v548_v18 = vmul.u32 2, %v6697_v48 }
 0xbfe   : > { %v2246_v4 = vadd.f32 %v2245_v63, %v2244_v15  ;;  %v549_v15 = vmul.u32 2, %v6707_v57  ;;  %vm556_vm14 = vcmp.eq.s32.totalorder %v6699_v49, %v548_v18 }
 0xc00   : > { %2247 = vadd.xlane.f32.xlu0 %v2246_v4  ;;  %v564_v4 = vadd.s32 1, %v548_v18  ;;  %vm557_vm9 = vcmp.eq.s32.totalorder %v6699_v49, %v549_v15 }
 0xc02   : > { %vm572_vm8 = vcmp.eq.s32.totalorder %v6699_v49, %v564_v4 }
 0xc03   : > { %vm580_vm6 = vmor %vm556_vm14, %vm572_vm8 }
 0xc16   : > { %2294 = vperm.xlu0 %5997, %v5130_v24   ;;  %v565_v24 = vadd.s32 1, %v549_v15 }
 0xc18   : > { %vm573_vm7 = vcmp.eq.s32.totalorder %v6699_v49, %v565_v24 }
 0xc19   : > { %vm581_vm0 = vmor %vm557_vm9, %vm573_vm7 }
 0xc1a   : > { %2318 = vperm.xlu0 %5997, %v5134_v25   ;;  %v550_v25 = vmul.u32 2, %v6713_v59  ;;  %vm7204_vm12 = vmpackc.low %vm581_vm0, %vm580_vm6  ;;  %vm8331_vm0 = vcmask 261120  }
 0xc1b   : > { %5763 = vmatprep.subr.msk.bf16.mxu0 %vm7204_vm12, %v6111_v2 }
 0xc1c   : > { %vm558_vm5 = vcmp.eq.s32.totalorder %v6699_v49, %v550_v25  ;;  %v566_v48 = vadd.s32 1, %v550_v25  ;;  %5765 = vmatpush3.bf16.msk.msra.mxu0 %vm7204_vm12, %v6111_v2 }
 0xc1e   : > { %2304 = vperm.xlu0 %5997, %v5132_v17   ;;  %v551_v17 = vmul.u32 2, %v6717_v61  ;;  %vm574_vm2 = vcmp.eq.s32.totalorder %v6699_v49, %v566_v48 }
 0xc1f   : > { %vm582_vm8 = vmor %vm558_vm5, %vm574_vm2 }
 0xc20   : > { %v567_v57 = vadd.s32 1, %v551_v17 }
 0xc22   : > { %2328 = vperm.xlu0 %5997, %v5136_v20   ;;  %vm575_vm10 = vcmp.eq.s32.totalorder %v6699_v49, %v567_v57 }
 0xc8d   : > { %v2248_v39 = vpop.xlane.xlu0 %2247 }
 0xc8e   : > { %v2249_v8 = vrot.slane %v2248_v39, 4 }
 0xc90   : > { %v2250_v45 = vadd.f32 %v2249_v8, %v2248_v39 }
 0xc92   : > { %v2251_v11 = vrot.slane %v2250_v45, 2 }
 0xc94   : > { %v2252_v26 = vadd.f32 %v2251_v11, %v2250_v45 }
 0xc96   : > { %v2253_v30 = vrot.slane %v2252_v26, 1 }
 0xc98   : > { %v2254_v27 = vadd.f32 %v2253_v30, %v2252_v26  ;;  %v2295_v26 = vpop.permute.xlu0 %2294 }
 0xc9a   : > { %5896 = vpush %v2254_v27 }
 0xc9c   : > { %v2319_v27 = vpop.permute.xlu0 %2318 }
 0xccb   : > { %s5897_s14 = spop %5896 }
 0xccc   : > { %s2256_s16 = smul.f32 0.0009765625, %s5897_s14 }
 0xcce   : > { %v2257_v34 = vstv %s2256_s16 }
 0xccf   : > { %v7162_v47 = vsub.f32 %v2211_v31, %v2257_v34  ;;  %v7164_v44 = vsub.f32 %v2216_v29, %v2257_v34  ;;  %v7166_v6 = vsub.f32 %v2221_v14, %v2257_v34  ;;  %v7168_v42 = vsub.f32 %v2226_v12, %v2257_v34 }
 0xcd0   : > { %v552_v34 = vmul.u32 2, %v6720_v62 }
 0xcd1   : > { %v2262_v35 = vmul.f32 %v7162_v47, %v7162_v47  ;;  %v2263_v36 = vmul.f32 %v7164_v44, %v7164_v44  ;;  %v2264_v46 = vmul.f32 %v7166_v6, %v7166_v6  ;;  %v2265_v7 = vmul.f32 %v7168_v42, %v7168_v42 }
 0xcd2   : > { %vm560_vm5 = vcmp.eq.s32.totalorder %v6699_v49, %v552_v34 }
 0xcd3   : > { %v2266_v32 = vsel %vm8283_vm4, %v2262_v35, 0.0  ;;  %v2267_v37 = vsel %vm8283_vm4, %v2263_v36, 0.0  ;;  %v2269_v29 = vsel %vm8283_vm4, %v2264_v46, 0.0  ;;  %v2271_v51 = vsel %vm8283_vm4, %v2265_v7, 0.0  ;;  %v2305_v46 = vpop.permute.xlu0 %2304 }
 0xcd4   : > { %v2268_v53 = vadd.f32 %v2267_v37, %v2266_v32  ;;  %vm559_vm4 = vcmp.eq.s32.totalorder %v6699_v49, %v551_v17  ;;  %v553_v36 = vmul.u32 2, %v6723_v9  ;;  %v568_v32 = vadd.s32 1, %v552_v34 }
 0xcd5   : > { %vm583_vm7 = vmor %vm559_vm4, %vm575_vm10 }
 0xcd6   : > { %v2270_v31 = vadd.f32 %v2269_v29, %v2268_v53  ;;  %vm7216_vm6 = vmpackc.low %vm583_vm7, %vm582_vm8  ;;  %vm576_vm9 = vcmp.eq.s32.totalorder %v6699_v49, %v568_v32  ;;  %vm561_vm10 = vcmp.eq.s32.totalorder %v6699_v49, %v553_v36 }
 0xcd7   : > { %5767 = vmatprep.subr.msk.bf16.mxu0 %vm7216_vm6, %v6111_v2  ;;  %vm584_vm14 = vmor %vm560_vm5, %vm576_vm9 }
 0xcd8   : > { %v2272_v52 = vadd.f32 %v2271_v51, %v2270_v31  ;;  %5769 = vmatpush3.bf16.msk.msra.mxu0 %vm7216_vm6, %v6111_v2  ;;  %v569_v31 = vadd.s32 1, %v553_v36  ;;  %vm8332_vm4 = vmmov %vm8331_vm0 }
 0xcd9   : > { %5771 = vmatprep.subr.msk.bf16.mxu0 %vm7204_vm12, %v6111_v2  ;;  %vm8333_vm7 = vmmov %vm8331_vm0 }
 0xcda   : > { %2273 = vadd.xlane.f32.xlu1 %v2272_v52  ;;  %vm577_vm2 = vcmp.eq.s32.totalorder %v6699_v49, %v569_v31  ;;  %vm8336_vm5 = vmmov %vm8331_vm0 }
 0xcdb   : > { %vm585_vm8 = vmor %vm561_vm10, %vm577_vm2 }
 0xcdc   : > { %vm7248_vm1 = vmpackc.low %vm585_vm8, %vm584_vm14 }
 0xceb   : > { %2299 = vperm.xlu1 %5998, %v5131_v13  }
 0xcef   : > { %2323 = vperm.xlu1 %5998, %v5135_v16  }
 0xcf3   : > { %2309 = vperm.xlu1 %5998, %v5133_v60  }
 0xcf7   : > { %2333 = vperm.xlu1 %5998, %v5137_v41  }
 0xd67   : > { %v2274_v12 = vpop.xlane.xlu1 %2273 }
 0xd68   : > { %v2275_v14 = vrot.slane %v2274_v12, 4 }
 0xd6a   : > { %v2276_v58 = vadd.f32 %v2275_v14, %v2274_v12  ;;  %v554_v14 = vmul.u32 2, %v6757_v3 }
 0xd6b   : > { %v2300_v30 = vpop.permute.xlu1 %2299 }
 0xd6c   : > { %v2277_v63 = vrot.slane %v2276_v58, 2  ;;  %vm562_vm9 = vcmp.eq.s32.totalorder %v6699_v49, %v554_v14  ;;  %v570_v18 = vadd.s32 1, %v554_v14  ;;  %v5168_v14 = vld [vmem:[%s8246_s3 + $0x38] sm:$0xff] }
 0xd6e   : > { %v2278_v20 = vadd.f32 %v2277_v63, %v2276_v58  ;;  %v555_v58 = vmul.u32 2, %v6760_v5  ;;  %vm578_vm2 = vcmp.eq.s32.totalorder %v6699_v49, %v570_v18 }
 0xd6f   : > { %v2324_v35 = vpop.permute.xlu1 %2323  ;;  %vm586_vm14 = vmor %vm562_vm9, %vm578_vm2  ;;  %vm8343_vm2 = vnez %v8319_v28 }
 0xd70   : > { %v2279_v39 = vrot.slane %v2278_v20, 1  ;;  %v571_v15 = vadd.s32 1, %v555_v58  ;;  %vm563_vm10 = vcmp.eq.s32.totalorder %v6699_v49, %v555_v58 }
 0xd72   : > { %v2280_v59 = vadd.f32 %v2279_v39, %v2278_v20 }
 0xd73   : > { %v2310_v52 = vpop.permute.xlu1 %2309 }
 0xd74   : > { %5898 = vpush %v2280_v59 }
 0xda5   : > { %s5899_s14 = spop %5898 }
 0xda6   : > { %s2282_s16 = smul.f32 0.0009765625, %s5899_s14 }
 0xda8   : > { %s2283_s0 = sadd.f32 1e-08, %s2282_s16 }
 0xdaa   : > { %v2284_v45 = vstv %s2283_s0 }
 0xdab   : > { %6005 = vrsqrt.f32 %v2284_v45  ;;  %v5165_v45 = vld [vmem:[%s8246_s3 + $0x20] sm:$0xff] }
 0xdb5   : > { %v6006_v11 = vpop.eup %6005 }
 0xdb6   : > { %5900 = vpush %v6006_v11  ;;  %v5167_v11 = vld [vmem:[%s8246_s3 + $0x30] sm:$0xff] }
 0xde7   : > { %s5901_s29 = spop %5900 }
 0xde8   : > { %v2287_v7 = vstv %s5901_s29 }
 0xde9   : > { %v2288_v37 = vmul.f32 %v2287_v7, %v7162_v47  ;;  %v2289_v53 = vmul.f32 %v2287_v7, %v7164_v44  ;;  %v2290_v29 = vmul.f32 %v2287_v7, %v7166_v6  ;;  %v2291_v51 = vmul.f32 %v2287_v7, %v7168_v42  ;;  %v2329_v47 = vpop.permute.xlu0 %2328  ;;  %v2334_v42 = vpop.permute.xlu1 %2333 }
 0xdeb   : > { %v2312_v13 = vmul.f32 %v2295_v26, %v2288_v37  ;;  %v2313_v16 = vmul.f32 %v2300_v30, %v2289_v53  ;;  %v2314_v62 = vmul.f32 %v2305_v46, %v2290_v29  ;;  %v2315_v44 = vmul.f32 %v2310_v52, %v2291_v51 }
 0xded   : > { %v2337_v9 = vadd.f32 %v2324_v35, %v2313_v16  ;;  %v2336_v60 = vadd.f32 %v2319_v27, %v2312_v13  ;;  %v2338_v6 = vadd.f32 %v2329_v47, %v2314_v62  ;;  %v2339_v41 = vadd.f32 %v2334_v42, %v2315_v44  ;;  %v2547_v47 = vld [vmem:[%s8254_s11 + $0x8] sm:$0xff]  ;;  %v2545_v44 = vld [vmem:[%s8253_s10 + $0x18] sm:$0xff] }
 0xdee   : > { %v2659_v42 = vld [vmem:[%s8256_s13 + $0x8] sm:$0xff] }
 0xdef   : > { %5554 = vmatprep.mubr.msk.f32.mxu0 %vm8331_vm0, %v2336_v60  ;;  %vm579_vm0 = vcmp.eq.s32.totalorder %v6699_v49, %v571_v15  ;;  %v2543_v60 = vld [vmem:[%s8253_s10 + $0x8] sm:$0xff] }
 0xdf0   : > { %5555 = vmatmul.mubr.msk.f32.vlgmr.msra.gmra.mrb[8].mxu0 %vm8332_vm4, %v2337_v9  ;;  %vm587_vm4 = vmor %vm563_vm10, %vm579_vm0  ;;  %vm8344_vm0 = vnez %v8321_v40 }
 0xdf1   : > { %5557 = vmatprep.mubr.msk.f32.mxu0 %vm8333_vm7, %v2338_v6  ;;  %5773 = vmatpush3.bf16.msk.msra.mxu0 %vm7204_vm12, %v6111_v2  ;;  %vm7268_vm8 = vmpackc.low %vm587_vm4, %vm586_vm14  ;;  %vm8339_vm7 = vcmask 523264   ;;  %vm8345_vm14 = vnez %v8323_v21  ;;  %vm8346_vm4 = vnez %v8326_v50  ;;  %v2542_v50 = vld [vmem:[%s8253_s10] sm:$0xff]  ;;  %v2549_v6 = vld [vmem:[%s8254_s11 + $0x18] sm:$0xff] }
 0xdf2   : > { %5775 = vmatprep.subr.msk.bf16.mxu0 %vm7216_vm6, %v6111_v2 }
 0xdf4   : > { %5558 = vmatmul.mubr.msk.f32.gmra.mrb[10].mxu0 %vm8336_vm5, %v2339_v41  ;;  %vm8340_vm5 = vmmov %vm8339_vm7  ;;  %v5166_v41 = vld [vmem:[%s8246_s3 + $0x28] sm:$0xff] }
 0xdf5   : > { %5777 = vmatpush3.bf16.msk.msra.mxu0 %vm7216_vm6, %v6111_v2  ;;  %vm8341_vm9 = vmmov %vm8340_vm5 }
 0xdf6   : > { %5779 = vmatprep.subr.msk.bf16.mxu0 %vm7248_vm1, %v6111_v2  ;;  %vm8342_vm10 = vmmov %vm8340_vm5 }
 0xdf9   : > { %5781 = vmatpush3.bf16.msk.msra.mxu0 %vm7248_vm1, %v6111_v2 }
 0xdfa   : > { %5783 = vmatprep.subr.msk.bf16.mxu0 %vm7268_vm8, %v6111_v2 }
 0xdfd   : > { %5785 = vmatpush3.bf16.msk.msra.mxu0 %vm7268_vm8, %v6111_v2 }
 0xdfe   : > { %5799 = vmatprep.subr.msk.bf16.mxu0 %vm6737_vm13, %v6111_v2 }
 0xec3   : > { %v5556_v3 = vpop.f32.mrb[8].mxu0 }
 0xec4   : > { %v2418_v49 = vpop.f32.mrb[9].mxu0  ;;  %v2438_v4 = vadd.f32 %v5556_v3, %v7055_v38 }
 0xec5   : > { %v2437_v5 = vadd.f32 %v2418_v49, %v7057_v10 }
 0xec7   : > { %v5559_v24 = vpop.f32.mrb[10].mxu0  ;;  %5576 = vmatprep.mubr.msk.f32.mxu0 %vm8339_vm7, %v2437_v5  ;;  %vm8347_vm7 = vcmask 261120  }
 0xec8   : > { %v2428_v25 = vpop.f32.mrb[11].mxu0  ;;  %5577 = vmatmul.mubr.msk.f32.vlgmr.msra.gmra.mrb[12].mxu0 %vm8340_vm5, %v2438_v4  ;;  %v2440_v20 = vadd.f32 %v5559_v24, %v7073_v33  ;;  %v2656_v24 = vld [vmem:[%s8255_s12] sm:$0xff] }
 0xec9   : > { %v2439_v17 = vadd.f32 %v2428_v25, %v7066_v43  ;;  %5801 = vmatpush3.bf16.msk.msra.mxu0 %vm6737_vm13, %v6111_v2  ;;  %5590 = vmatprep.mubr.msk.f32.mxu1 %vm8347_vm7, %v2656_v24 }
 0xeca   : > { %5803 = vmatprep.subr.msk.bf16.mxu0 %vm6745_vm15, %v6111_v2 }
 0xecb   : > { %5579 = vmatprep.mubr.msk.f32.mxu0 %vm8341_vm9, %v2439_v17 }
 0xecc   : > { %5580 = vmatmul.mubr.msk.f32.gmra.mrb[14].mxu0 %vm8342_vm10, %v2440_v20 }
 0xecd   : > { %5805 = vmatpush3.bf16.msk.msra.mxu0 %vm6745_vm15, %v6111_v2 }
 0xece   : > { %5807 = vmatprep.subr.msk.bf16.mxu0 %vm6781_vm3, %v6111_v2 }
 0xed1   : > { %5809 = vmatpush3.bf16.msk.msra.mxu0 %vm6781_vm3, %v6111_v2 }
 0xed2   : > { %5811 = vmatprep.subr.msk.bf16.mxu0 %vm6815_vm11, %v6111_v2 }
 0xed5   : > { %5813 = vmatpush3.bf16.msk.msra.mxu0 %vm6815_vm11, %v6111_v2 }
 0xed6   : > { %5815 = vmatprep.subr.msk.bf16.mxu0 %vm8343_vm2, %v6111_v2 }
 0xed9   : > { %5817 = vmatpush3.bf16.msk.msra.mxu0 %vm8343_vm2, %v6111_v2 }
 0xeda   : > { %5819 = vmatprep.subr.msk.bf16.mxu0 %vm8344_vm0, %v6111_v2 }
 0xedd   : > { %5821 = vmatpush3.bf16.msk.msra.mxu0 %vm8344_vm0, %v6111_v2  ;;  %vm8348_vm0 = vmmov %vm8347_vm7 }
 0xede   : > { %5823 = vmatprep.subr.msk.bf16.mxu0 %vm8345_vm14, %v6111_v2 }
 0xee1   : > { %5825 = vmatpush3.bf16.msk.msra.mxu0 %vm8345_vm14, %v6111_v2  ;;  %vm8349_vm14 = vcmask 130048  }
 0xee2   : > { %5827 = vmatprep.subr.msk.bf16.mxu0 %vm8346_vm4, %v6111_v2 }
 0xee5   : > { %5829 = vmatpush3.bf16.msk.msra.mxu0 %vm8346_vm4, %v6111_v2  ;;  %vm8350_vm4 = vmmov %vm8349_vm14 }
 0xee6   : > { %vm8351_vm7 = vmmov %vm8350_vm4 }
 0xf9b   : > { %v5578_v28 = vpop.f32.mrb[12].mxu0 }
 0xf9c   : > { %v2519_v38 = vpop.f32.mrb[13].mxu0  ;;  %v2539_v40 = vadd.f32 %v5578_v28, %v6628_v55  ;;  %v2546_v55 = vld [vmem:[%s8254_s11] sm:$0xff] }
 0xf9d   : > { %v2538_v10 = vadd.f32 %v2519_v38, %v6630_v56  ;;  %v2544_v56 = vld [vmem:[%s8253_s10 + $0x10] sm:$0xff] }
 0xf9f   : > { %v5581_v43 = vpop.f32.mrb[14].mxu0  ;;  %v2550_v48 = vadd.f32 %v2539_v40, %v2538_v10 }
 0xfa0   : > { %v2529_v33 = vpop.f32.mrb[15].mxu0  ;;  %v2541_v57 = vadd.f32 %v5581_v43, %v6646_v23  ;;  %v2658_v23 = vld [vmem:[%s8256_s13] sm:$0xff] }
 0xfa1   : > { %v2540_v21 = vadd.f32 %v2529_v33, %v6639_v19  ;;  %v2548_v19 = vld [vmem:[%s8254_s11 + $0x10] sm:$0xff] }
 0xfa3   : > { %v2551_v39 = vadd.f32 %v2550_v48, %v2540_v21 }
 0xfa5   : > { %v2552_v59 = vadd.f32 %v2551_v39, %v2541_v57 }
 0xfa7   : > { %2553 = vadd.xlane.f32.xlu0 %v2552_v59 }
 0xfbd   : > { %2596 = vperm.xlu0 %5997, %v2542_v50  }
 0xfc1   : > { %2620 = vperm.xlu0 %5997, %v2546_v55  }
 0xfc5   : > { %2606 = vperm.xlu0 %5997, %v2544_v56  }
 0xfc9   : > { %2630 = vperm.xlu0 %5997, %v2548_v19  }
 0xfcd   : > { %2662 = vperm.xlu0 %5997, %v2658_v23  }
 0xfd1   : > { %2765 = vperm.xlu0 %5997, %v5165_v45  }
 0xfd5   : > { %2775 = vperm.xlu0 %5997, %v5167_v11  }
0x1034   : > { %v2554_v26 = vpop.xlane.xlu0 %2553 }
0x1035   : > { %v2555_v30 = vrot.slane %v2554_v26, 4 }
0x1037   : > { %v2556_v27 = vadd.f32 %v2555_v30, %v2554_v26 }
0x1039   : > { %v2557_v34 = vrot.slane %v2556_v27, 2 }
0x103b   : > { %v2558_v35 = vadd.f32 %v2557_v34, %v2556_v27 }
0x103c   : > { %v2597_v20 = vpop.permute.xlu0 %2596 }
0x103d   : > { %v2559_v36 = vrot.slane %v2558_v35, 1 }
0x103f   : > { %v2560_v46 = vadd.f32 %v2559_v36, %v2558_v35 }
0x1040   : > { %v2621_v38 = vpop.permute.xlu0 %2620 }
0x1041   : > { %5902 = vpush %v2560_v46 }
0x1072   : > { %s5903_s19 = spop %5902 }
0x1073   : > { %s2562_s18 = smul.f32 0.00024414063, %s5903_s19 }
0x1075   : > { %v2563_v7 = vstv %s2562_s18  ;;  %s5158_s18 = sld [smem:[#allocation2 + $0x1]] }
0x1076   : > { %v2564_v32 = vsub.f32 %v2538_v10, %v2563_v7  ;;  %v2565_v37 = vsub.f32 %v2539_v40, %v2563_v7  ;;  %v2566_v53 = vsub.f32 %v2540_v21, %v2563_v7  ;;  %v2567_v29 = vsub.f32 %v2541_v57, %v2563_v7  ;;  %v2607_v10 = vpop.permute.xlu0 %2606 }
0x1078   : > { %v2568_v31 = vmul.f32 %v2564_v32, %v2564_v32  ;;  %v2569_v51 = vmul.f32 %v2565_v37, %v2565_v37  ;;  %v2570_v52 = vmul.f32 %v2566_v53, %v2566_v53  ;;  %v2571_v16 = vmul.f32 %v2567_v29, %v2567_v29 }
0x107a   : > { %v2572_v13 = vadd.f32 %v2569_v51, %v2568_v31  ;;  %v2631_v19 = vpop.permute.xlu0 %2630  ;;  %v2657_v51 = vld [vmem:[%s8255_s12 + $0x8] sm:$0xff] }
0x107b   : > { %v2647_v45 = vstv %s5158_s18 }
0x107c   : > { %v2573_v62 = vadd.f32 %v2572_v13, %v2570_v52  ;;  %v5161_v52 = vld [vmem:[%s8245_s2 + $0x20] sm:$0xff] }
0x107e   : > { %v2574_v9 = vadd.f32 %v2573_v62, %v2571_v16  ;;  %v2663_v62 = vpop.permute.xlu0 %2662 }
0x1080   : > { %2575 = vadd.xlane.f32.xlu1 %v2574_v9 }
0x1082   : > { %v2766_v0 = vpop.permute.xlu0 %2765 }
0x1086   : > { %v2776_v24 = vpop.permute.xlu0 %2775 }
0x1091   : > { %2601 = vperm.xlu1 %5998, %v2543_v60  }
0x1095   : > { %2625 = vperm.xlu1 %5998, %v2547_v47  }
0x1099   : > { %2611 = vperm.xlu1 %5998, %v2545_v44   ;;  %v6019_v44 = vld [vmem:[%s6277_s27 + $0x8] sm:$0xff] }
0x109d   : > { %2635 = vperm.xlu1 %5998, %v2549_v6  }
0x10a1   : > { %2667 = vperm.xlu1 %5998, %v2659_v42   ;;  %v6020_v42 = vld [vmem:[%s6277_s27] sm:$0xff] }
0x10a5   : > { %2770 = vperm.xlu1 %5998, %v5166_v41  }
0x10a9   : > { %2780 = vperm.xlu1 %5998, %v5168_v14  }
0x110d   : > { %v2576_v58 = vpop.xlane.xlu1 %2575 }
0x110e   : > { %v2577_v18 = vrot.slane %v2576_v58, 4 }
0x1110   : > { %v2578_v15 = vadd.f32 %v2577_v18, %v2576_v58  ;;  %v5162_v58 = vld [vmem:[%s8245_s2 + $0x28] sm:$0xff]  ;;  %v5163_v18 = vld [vmem:[%s8245_s2 + $0x30] sm:$0xff] }
0x1111   : > { %v2602_v28 = vpop.permute.xlu1 %2601 }
0x1112   : > { %v2579_v3 = vrot.slane %v2578_v15, 2 }
0x1114   : > { %v2580_v49 = vadd.f32 %v2579_v3, %v2578_v15  ;;  %v5164_v15 = vld [vmem:[%s8245_s2 + $0x38] sm:$0xff] }
0x1115   : > { %v2626_v40 = vpop.permute.xlu1 %2625 }
0x1116   : > { %v2581_v5 = vrot.slane %v2580_v49, 1 }
0x1118   : > { %v2582_v4 = vadd.f32 %v2581_v5, %v2580_v49 }
0x1119   : > { %v2612_v43 = vpop.permute.xlu1 %2611 }
0x111a   : > { %5904 = vpush %v2582_v4 }
0x111d   : > { %v2636_v23 = vpop.permute.xlu1 %2635 }
0x1121   : > { %v2668_v13 = vpop.permute.xlu1 %2667 }
0x1125   : > { %v2771_v3 = vpop.permute.xlu1 %2770 }
0x114b   : > { %s5905_s26 = spop %5904 }
0x114c   : > { %s2584_s22 = smul.f32 0.00024414063, %s5905_s26 }
0x114e   : > { %s2585_s19 = sadd.f32 1e-08, %s2584_s22 }
0x1150   : > { %v2586_v25 = vstv %s2585_s19 }
0x1151   : > { %6007 = vrsqrt.f32 %v2586_v25 }
0x115b   : > { %v6008_v17 = vpop.eup %6007 }
0x115c   : > { %5906 = vpush %v6008_v17 }
0x118d   : > { %s5907_s14 = spop %5906 }
0x118e   : > { %v2589_v33 = vstv %s5907_s14 }
0x118f   : > { %v2590_v48 = vmul.f32 %v2589_v33, %v2564_v32  ;;  %v2591_v21 = vmul.f32 %v2589_v33, %v2565_v37  ;;  %v2592_v57 = vmul.f32 %v2589_v33, %v2566_v53  ;;  %v2593_v39 = vmul.f32 %v2589_v33, %v2567_v29  ;;  %v5178_v33 = vld [vmem:[%s8248_s5 + $0x28] sm:$0xff] }
0x1191   : > { %v2614_v59 = vmul.f32 %v2597_v20, %v2590_v48  ;;  %v2615_v50 = vmul.f32 %v2602_v28, %v2591_v21  ;;  %v2616_v55 = vmul.f32 %v2607_v10, %v2592_v57  ;;  %v2617_v56 = vmul.f32 %v2612_v43, %v2593_v39  ;;  %v2781_v28 = vpop.permute.xlu1 %2780  ;;  %v5173_v10 = vld [vmem:[%s8247_s4 + $0x20] sm:$0xff]  ;;  %v5175_v43 = vld [vmem:[%s8247_s4 + $0x30] sm:$0xff]  ;;  %v5191_v39 = vld [vmem:[%s8249_s6 + $0x228] sm:$0xff] }
0x1192   : > { %v5179_v48 = vld [vmem:[%s8248_s5 + $0x30] sm:$0xff]  ;;  %v5186_v21 = vld [vmem:[%s8249_s6 + $0x200] sm:$0xff] }
0x1193   : > { %v2638_v11 = vadd.f32 %v2621_v38, %v2614_v59  ;;  %v2639_v26 = vadd.f32 %v2626_v40, %v2615_v50  ;;  %v2640_v30 = vadd.f32 %v2631_v19, %v2616_v55  ;;  %v2641_v27 = vadd.f32 %v2636_v23, %v2617_v56  ;;  %v5188_v57 = vld [vmem:[%s8249_s6 + $0x210] sm:$0xff]  ;;  %v5195_v50 = vld [vmem:[%s8249_s6 + $0x248] sm:$0xff]  ;;  %v5197_v19 = vld [vmem:[%s8249_s6 + $0x258] sm:$0xff] }
0x1194   : > { %v5192_v59 = vld [vmem:[%s8249_s6 + $0x230] sm:$0xff]  ;;  %v5199_v56 = vld [vmem:[%s8249_s6 + $0x268] sm:$0xff]  ;;  %v5182_v23 = vld [vmem:[%s8249_s6 + $0x1e0] sm:$0xff] }
0x1195   : > { %vm2643_vm5 = vcmp.ge.f32.partialorder %v2638_v11, 0.0  ;;  %vm2644_vm9 = vcmp.ge.f32.partialorder %v2639_v26, 0.0  ;;  %v2648_v34 = vmul.f32 %v2647_v45, %v2638_v11  ;;  %v2649_v35 = vmul.f32 %v2647_v45, %v2639_v26  ;;  %v5196_v55 = vld [vmem:[%s8249_s6 + $0x250] sm:$0xff] }
0x1196   : > { %vm2645_vm10 = vcmp.ge.f32.partialorder %v2640_v30, 0.0  ;;  %vm2646_vm2 = vcmp.ge.f32.partialorder %v2641_v27, 0.0  ;;  %v2650_v36 = vmul.f32 %v2647_v45, %v2640_v30  ;;  %v2651_v46 = vmul.f32 %v2647_v45, %v2641_v27  ;;  %v5184_v45 = vld [vmem:[%s8249_s6 + $0x1f0] sm:$0xff] }
0x1197   : > { %v2652_v7 = vsel %vm2643_vm5, %v2638_v11, %v2648_v34  ;;  %v2653_v32 = vsel %vm2644_vm9, %v2639_v26, %v2649_v35  ;;  %vm8352_vm5 = vmmov %vm8350_vm4  ;;  %v5202_v11 = vld [vmem:[%s8250_s7 + $0x60] sm:$0xff]  ;;  %vm8353_vm9 = vcmask 15360  }
0x1198   : > { %v5786_v37 = vpack.c.bf16 %v2653_v32, %v2652_v7  ;;  %v2654_v53 = vsel %vm2645_vm10, %v2640_v30, %v2650_v36  ;;  %v2655_v29 = vsel %vm2646_vm2, %v2641_v27, %v2651_v46  ;;  %vm8354_vm10 = vmmov %vm8353_vm9 }
0x1199   : > { %v5790_v31 = vpack.c.bf16 %v2655_v29, %v2654_v53  ;;  %vm8355_vm2 = vmmov %vm8353_vm9 }
0x119a   : > { %5787 = vmatprep.subr.bf16.mxu1 %v5786_v37 }
0x119b   : > { %5789 = vmatpush3.bf16.msra.mxu1 %v5786_v37 }
0x119c   : > { %5791 = vmatprep.subr.bf16.mxu1 %v5790_v31 }
0x119f   : > { %5793 = vmatpush3.bf16.msra.mxu1 %v5790_v31 }
0x11a2   : > { %5591 = vmatmul.mubr.msk.f32.vlgmr.msra.gmra.mrb[4].mxu1 %vm8348_vm0, %v2657_v51  ;;  %vm8356_vm0 = vmmov %vm8355_vm2 }
0x11a3   : > { %5597 = vmatprep.mubr.msk.f32.mxu1 %vm8349_vm14, %v5161_v52  ;;  %vm8357_vm14 = vmmov %vm8356_vm0 }
0x1275   : > { %v5592_v16 = vpop.f32.mrb[4].mxu1 }
0x1276   : > { %v2748_v9 = vadd.f32 %v5592_v16, %v2668_v13  ;;  %v2742_v60 = vpop.f32.mrb[5].mxu1 }
0x1277   : > { %v2743_v47 = vadd.f32 %v2742_v60, %v2663_v62  ;;  %v5174_v60 = vld [vmem:[%s8247_s4 + $0x28] sm:$0xff] }
0x1278   : > { %v7393_v6 = vadd.f32 %v6019_v44, %v2748_v9  ;;  %v5176_v44 = vld [vmem:[%s8247_s4 + $0x38] sm:$0xff] }
0x1279   : > { %v7396_v41 = vadd.f32 %v6020_v42, %v2743_v47  ;;  %v5177_v47 = vld [vmem:[%s8248_s5 + $0x20] sm:$0xff]  ;;  %v5180_v42 = vld [vmem:[%s8248_s5 + $0x38] sm:$0xff] }
0x127b   : > { %v5794_v14 = vpack.c.bf16 %v7393_v6, %v7396_v41 }
0x127d   : > { %5795 = vmatprep.subr.bf16.mxu1 %v5794_v14 }
0x127e   : > { %5797 = vmatpush3.bf16.msra.mxu1 %v5794_v14  ;;  %v5187_v14 = vld [vmem:[%s8249_s6 + $0x208] sm:$0xff] }
0x127f   : > { %5831 = vmatprep.subr.msk.bf16.mxu1 %vm6737_vm13, %v6111_v2 }
0x1281   : > { %5598 = vmatmul.mubr.msk.f32.vlgmr.msra.gmra.mrb[6].mxu1 %vm8350_vm4, %v5162_v58  ;;  %v5190_v58 = vld [vmem:[%s8249_s6 + $0x220] sm:$0xff]  ;;  %vm8358_vm4 = vmmov %vm8356_vm0 }
0x1282   : > { %5600 = vmatprep.mubr.msk.f32.mxu1 %vm8351_vm7, %v5163_v18  ;;  %5833 = vmatpush3.bf16.msk.msra.mxu1 %vm6737_vm13, %v6111_v2  ;;  %v5189_v18 = vld [vmem:[%s8249_s6 + $0x218] sm:$0xff]  ;;  %vm8359_vm7 = vmmov %vm8356_vm0 }
0x1283   : > { %5835 = vmatprep.subr.msk.bf16.mxu1 %vm6745_vm15, %v6111_v2 }
0x1285   : > { %5601 = vmatmul.mubr.msk.f32.gmra.mrb[8].mxu1 %vm8352_vm5, %v5164_v15  ;;  %v5194_v15 = vld [vmem:[%s8249_s6 + $0x240] sm:$0xff]  ;;  %vm8360_vm5 = vmmov %vm8356_vm0 }
0x1286   : > { %5837 = vmatpush3.bf16.msk.msra.mxu1 %vm6745_vm15, %v6111_v2 }
0x1287   : > { %5839 = vmatprep.subr.msk.bf16.mxu1 %vm6781_vm3, %v6111_v2 }
0x128a   : > { %5841 = vmatpush3.bf16.msk.msra.mxu1 %vm6781_vm3, %v6111_v2 }
0x128b   : > { %5843 = vmatprep.subr.msk.bf16.mxu1 %vm6815_vm11, %v6111_v2 }
0x128e   : > { %5845 = vmatpush3.bf16.msk.msra.mxu1 %vm6815_vm11, %v6111_v2 }
0x128f   : > { %5847 = vmatprep.subr.msk.bf16.mxu1 %vm7204_vm12, %v6111_v2 }
0x1354   : > { %v5599_v1 = vpop.f32.mrb[6].mxu1 }
0x1355   : > { %v2861_v49 = vpop.f32.mrb[7].mxu1  ;;  %v2867_v5 = vadd.f32 %v5599_v1, %v2771_v3  ;;  %v5198_v1 = vld [vmem:[%s8249_s6 + $0x260] sm:$0xff]  ;;  %v5200_v3 = vld [vmem:[%s8249_s6 + $0x270] sm:$0xff] }
0x1356   : > { %v2862_v4 = vadd.f32 %v2861_v49, %v2766_v0  ;;  %v5193_v0 = vld [vmem:[%s8249_s6 + $0x238] sm:$0xff] }
0x1357   : > { %v5201_v49 = vld [vmem:[%s8249_s6 + $0x278] sm:$0xff] }
0x1358   : > { %v5602_v54 = vpop.f32.mrb[8].mxu1  ;;  %v2890_v17 = vadd.f32 %v2867_v5, %v2862_v4 }
0x1359   : > { %v2871_v25 = vpop.f32.mrb[9].mxu1  ;;  %v2877_v38 = vadd.f32 %v5602_v54, %v2781_v28 }
0x135a   : > { %v2872_v20 = vadd.f32 %v2871_v25, %v2776_v24 }
0x135c   : > { %v2891_v40 = vadd.f32 %v2890_v17, %v2872_v20 }
0x135e   : > { %v2892_v22 = vadd.f32 %v2891_v40, %v2877_v38 }
0x1360   : > { %2893 = vadd.xlane.f32.xlu0 %v2892_v22 }
0x1376   : > { %2936 = vperm.xlu0 %5997, %v5173_v10  }
0x137a   : > { %2946 = vperm.xlu0 %5997, %v5175_v43  }
0x137e   : > { %2965 = vperm.xlu0 %5997, %v5178_v33  }
0x1382   : > { %2970 = vperm.xlu0 %5997, %v5179_v48  }
0x1386   : > { %3056 = vperm.xlu0 %5997, %v5186_v21  }
0x138a   : > { %3066 = vperm.xlu0 %5997, %v5188_v57  }
0x138e   : > { %3130 = vperm.xlu0 %5997, %v5191_v39  }
0x1392   : > { %3135 = vperm.xlu0 %5997, %v5192_v59  }
0x1396   : > { %3199 = vperm.xlu0 %5997, %v5195_v50  }
0x139a   : > { %3204 = vperm.xlu0 %5997, %v5196_v55  }
0x139e   : > { %3268 = vperm.xlu0 %5997, %v5199_v56  }
0x13a2   : > { %3209 = vperm.xlu0 %5997, %v5197_v19  }
0x13a6   : > { %3027 = vperm.xlu0 %5997, %v5182_v23  }
0x13aa   : > { %3037 = vperm.xlu0 %5997, %v5184_v45  }
0x13ae   : > { %3332 = vperm.xlu0 %5997, %v5202_v11  }
0x13ed   : > { %v2894_v26 = vpop.xlane.xlu0 %2893 }
0x13ee   : > { %v2895_v30 = vrot.slane %v2894_v26, 4 }
0x13f0   : > { %v2896_v27 = vadd.f32 %v2895_v30, %v2894_v26 }
0x13f2   : > { %v2897_v34 = vrot.slane %v2896_v27, 2 }
0x13f4   : > { %v2898_v35 = vadd.f32 %v2897_v34, %v2896_v27 }
0x13f5   : > { %v2937_v10 = vpop.permute.xlu0 %2936 }
0x13f6   : > { %v2899_v36 = vrot.slane %v2898_v35, 1 }
0x13f8   : > { %v2900_v46 = vadd.f32 %v2899_v36, %v2898_v35 }
0x13f9   : > { %v2947_v33 = vpop.permute.xlu0 %2946 }
0x13fa   : > { %5908 = vpush %v2900_v46 }
0x13fd   : > { %v2966_v21 = vpop.permute.xlu0 %2965 }
0x1401   : > { %v2971_v26 = vpop.permute.xlu0 %2970 }
0x142b   : > { %s5909_s19 = spop %5908 }
0x142c   : > { %s2902_s27 = smul.f32 0.00024414063, %s5909_s19  ;;  %s5181_s19 = sld [smem:[#allocation2 + $0x80]] }
0x142e   : > { %v2903_v7 = vstv %s2902_s27 }
0x142f   : > { %v7484_v32 = vsub.f32 %v2862_v4, %v2903_v7  ;;  %v7486_v37 = vsub.f32 %v2867_v5, %v2903_v7  ;;  %v7488_v53 = vsub.f32 %v2872_v20, %v2903_v7  ;;  %v7490_v29 = vsub.f32 %v2877_v38, %v2903_v7  ;;  %v5183_v5 = vld [vmem:[%s8249_s6 + $0x1e8] sm:$0xff]  ;;  %v5185_v4 = vld [vmem:[%s8249_s6 + $0x1f8] sm:$0xff] }
0x1431   : > { %v2908_v31 = vmul.f32 %v7484_v32, %v7484_v32  ;;  %v2909_v51 = vmul.f32 %v7486_v37, %v7486_v37  ;;  %v2910_v52 = vmul.f32 %v7488_v53, %v7488_v53  ;;  %v2911_v16 = vmul.f32 %v7490_v29, %v7490_v29 }
0x1432   : > { %v2987_v27 = vstv %s5181_s19 }
0x1433   : > { %v2912_v13 = vadd.f32 %v2909_v51, %v2908_v31 }
0x1435   : > { %v2913_v62 = vadd.f32 %v2912_v13, %v2910_v52  ;;  %v5204_v13 = vld [vmem:[%s8250_s7 + $0x70] sm:$0xff] }
0x1437   : > { %v2914_v9 = vadd.f32 %v2913_v62, %v2911_v16  ;;  %v5203_v16 = vld [vmem:[%s8250_s7 + $0x68] sm:$0xff]  ;;  %v5205_v62 = vld [vmem:[%s8250_s7 + $0x78] sm:$0xff] }
0x1439   : > { %2915 = vadd.xlane.f32.xlu1 %v2914_v9  ;;  %v3057_v9 = vpop.permute.xlu0 %3056 }
0x144a   : > { %2941 = vperm.xlu1 %5998, %v5174_v60   ;;  %v3067_v60 = vpop.permute.xlu0 %3066 }
0x144e   : > { %2960 = vperm.xlu1 %5998, %v5177_v47  }
0x1452   : > { %2951 = vperm.xlu1 %5998, %v5176_v44   ;;  %v3131_v44 = vpop.permute.xlu0 %3130 }
0x1456   : > { %2975 = vperm.xlu1 %5998, %v5180_v42  }
0x145a   : > { %3061 = vperm.xlu1 %5998, %v5187_v14   ;;  %v3136_v14 = vpop.permute.xlu0 %3135 }
0x145e   : > { %3125 = vperm.xlu1 %5998, %v5190_v58  }
0x1462   : > { %3071 = vperm.xlu1 %5998, %v5189_v18   ;;  %v3200_v18 = vpop.permute.xlu0 %3199 }
0x1466   : > { %3194 = vperm.xlu1 %5998, %v5194_v15  }
0x146a   : > { %3140 = vperm.xlu1 %5998, %v5193_v0   ;;  %v7559_v0 = vpop.permute.xlu0 %3204 }
0x146e   : > { %3263 = vperm.xlu1 %5998, %v5198_v1  }
0x1472   : > { %3273 = vperm.xlu1 %5998, %v5200_v3   ;;  %v7561_v3 = vpop.permute.xlu0 %3268 }
0x1476   : > { %3278 = vperm.xlu1 %5998, %v5201_v49  }
0x147a   : > { %3032 = vperm.xlu1 %5998, %v5183_v5   ;;  %v7565_v5 = vpop.permute.xlu0 %3209 }
0x147e   : > { %3042 = vperm.xlu1 %5998, %v5185_v4  }
0x14c6   : > { %v2916_v54 = vpop.xlane.xlu1 %2915 }
0x14c7   : > { %v2917_v24 = vrot.slane %v2916_v54, 4 }
0x14c9   : > { %v2918_v25 = vadd.f32 %v2917_v24, %v2916_v54  ;;  %v7569_v54 = vpop.permute.xlu0 %3027 }
0x14ca   : > { %v2942_v43 = vpop.permute.xlu1 %2941 }
0x14cb   : > { %v2919_v17 = vrot.slane %v2918_v25, 2 }
0x14cd   : > { %v2920_v20 = vadd.f32 %v2919_v17, %v2918_v25  ;;  %v7573_v25 = vpop.permute.xlu0 %3037 }
0x14ce   : > { %v2961_v48 = vpop.permute.xlu1 %2960 }
0x14cf   : > { %v2921_v28 = vrot.slane %v2920_v20, 1 }
0x14d1   : > { %v2922_v38 = vadd.f32 %v2921_v28, %v2920_v20  ;;  %v7577_v20 = vpop.permute.xlu0 %3332 }
0x14d2   : > { %v2952_v57 = vpop.permute.xlu1 %2951 }
0x14d3   : > { %5910 = vpush %v2922_v38 }
0x14d6   : > { %v2976_v30 = vpop.permute.xlu1 %2975 }
0x14da   : > { %v3062_v47 = vpop.permute.xlu1 %3061 }
0x14de   : > { %v3126_v42 = vpop.permute.xlu1 %3125 }
0x14e2   : > { %v3072_v58 = vpop.permute.xlu1 %3071 }
0x14e6   : > { %v3195_v15 = vpop.permute.xlu1 %3194 }
0x14ea   : > { %v3141_v1 = vpop.permute.xlu1 %3140 }
0x14ee   : > { %v7563_v49 = vpop.permute.xlu1 %3263 }
0x14f2   : > { %v7567_v4 = vpop.permute.xlu1 %3273 }
0x14f6   : > { %v7571_v24 = vpop.permute.xlu1 %3278 }
0x14fa   : > { %v7575_v17 = vpop.permute.xlu1 %3032 }
0x14fe   : > { %v7579_v28 = vpop.permute.xlu1 %3042 }
0x1504   : > { %s5911_s28 = spop %5910 }
0x1505   : > { %s2924_s26 = smul.f32 0.00024414063, %s5911_s28 }
0x1507   : > { %s2925_s22 = sadd.f32 1e-08, %s2924_s26  ;;  %s8438_s26 = sld [smem:[#allocation16_spill]] }
0x1509   : > { %v2926_v40 = vstv %s2925_s22 }
0x150a   : > { %6009 = vrsqrt.f32 %v2926_v40 }
0x1514   : > { %v6010_v22 = vpop.eup %6009 }
0x1515   : > { %5912 = vpush %v6010_v22 }
0x1546   : > { %s5913_s27 = spop %5912 }
0x1547   : > { %v2929_v39 = vstv %s5913_s27 }
0x1548   : > { %v2930_v59 = vmul.f32 %v2929_v39, %v7484_v32  ;;  %v2931_v50 = vmul.f32 %v2929_v39, %v7486_v37  ;;  %v2932_v55 = vmul.f32 %v2929_v39, %v7488_v53  ;;  %v2933_v56 = vmul.f32 %v2929_v39, %v7490_v29 }
0x154a   : > { %v2954_v19 = vmul.f32 %v2937_v10, %v2930_v59  ;;  %v2955_v23 = vmul.f32 %v2942_v43, %v2931_v50  ;;  %v2956_v45 = vmul.f32 %v2947_v33, %v2932_v55  ;;  %v2957_v11 = vmul.f32 %v2952_v57, %v2933_v56 }
0x154c   : > { %v2978_v34 = vadd.f32 %v2961_v48, %v2954_v19  ;;  %v2979_v35 = vadd.f32 %v2966_v21, %v2955_v23  ;;  %v2981_v36 = vadd.f32 %v2976_v30, %v2957_v11  ;;  %v2980_v46 = vadd.f32 %v2971_v26, %v2956_v45 }
0x154e   : > { %vm2983_vm13 = vcmp.ge.f32.partialorder %v2978_v34, 0.0  ;;  %v2988_v7 = vmul.f32 %v2987_v27, %v2978_v34  ;;  %vm2984_vm15 = vcmp.ge.f32.partialorder %v2979_v35, 0.0  ;;  %v2989_v32 = vmul.f32 %v2987_v27, %v2979_v35 }
0x154f   : > { %v2991_v53 = vmul.f32 %v2987_v27, %v2981_v36  ;;  %v2990_v51 = vmul.f32 %v2987_v27, %v2980_v46  ;;  %vm2986_vm3 = vcmp.ge.f32.partialorder %v2981_v36, 0.0  ;;  %vm2985_vm11 = vcmp.ge.f32.partialorder %v2980_v46, 0.0 }
0x1550   : > { %v2992_v37 = vsel %vm2983_vm13, %v2978_v34, %v2988_v7  ;;  %v2993_v31 = vsel %vm2984_vm15, %v2979_v35, %v2989_v32  ;;  %vm8361_vm13 = vcmask 1039360  }
0x1551   : > { %3000 = vrot.lane.b32.xlu1 %v2992_v37, %s8306_s25  ;;  %3002 = vrot.lane.b32.xlu0 %v2993_v31, %s8306_s25  ;;  %v2995_v29 = vsel %vm2986_vm3, %v2981_v36, %v2991_v53  ;;  %v2994_v52 = vsel %vm2985_vm11, %v2980_v46, %v2990_v51  ;;  %vm8362_vm15 = vmmov %vm8361_vm13  ;;  %vm8363_vm3 = vcmask 1031168  }
0x1552   : > { %vm8364_vm11 = vmmov %vm8361_vm13 }
0x1555   : > { %3006 = vrot.lane.b32.xlu0 %v2995_v29, %s8306_s25  ;;  %3004 = vrot.lane.b32.xlu1 %v2994_v52, %s8306_s25 }
0x1559   : > { %3342 = vperm.xlu0 %5997, %v5204_v13   ;;  %3337 = vperm.xlu1 %5998, %v5203_v16  }
0x155d   : > { %3347 = vperm.xlu1 %5998, %v5205_v62  }
0x15c3   : > { %v3001_v38 = vpop.permute.xlu1 %3000  ;;  %v3003_v40 = vpop.permute.xlu0 %3002 }
0x15c4   : > { %v7582_v22 = vsel %vm8353_vm9, 0.0, %v3001_v38  ;;  %v3016_v10 = vsel %vm8354_vm10, %v3001_v38, 0.0  ;;  %v7587_v48 = vsel %vm8355_vm2, 0.0, %v3003_v40  ;;  %v3017_v21 = vsel %vm8356_vm0, %v3003_v40, 0.0  ;;  %vm8365_vm9 = vmmov %vm8363_vm3 }
0x15c5   : > { %v3075_v43 = vmul.f32 %v3057_v9, %v3016_v10  ;;  %v3074_v33 = vmul.f32 %v3057_v9, %v7582_v22  ;;  %v3077_v39 = vmul.f32 %v3062_v47, %v3017_v21  ;;  %v3076_v59 = vmul.f32 %v3062_v47, %v7587_v48  ;;  %vm8367_vm2 = vmmov %vm8363_vm3 }
0x15c6   : > { %v3144_v23 = vmul.f32 %v3126_v42, %v3016_v10  ;;  %v3143_v45 = vmul.f32 %v3126_v42, %v7582_v22  ;;  %v3146_v26 = vmul.f32 %v3131_v44, %v3017_v21  ;;  %v3145_v30 = vmul.f32 %v3131_v44, %v7587_v48 }
0x15c7   : > { %v3005_v57 = vpop.permute.xlu1 %3004  ;;  %3092 = vrot.lane.b32.xlu1 %v3075_v43, %s8307_s20  ;;  %3090 = vrot.lane.b32.xlu0 %v3074_v33, %s8307_s20  ;;  %v3007_v11 = vpop.permute.xlu0 %3006  ;;  %v3213_v32 = vmul.f32 %v3195_v15, %v3016_v10  ;;  %v3212_v37 = vmul.f32 %v3195_v15, %v7582_v22  ;;  %v3215_v31 = vmul.f32 %v3200_v18, %v3017_v21  ;;  %vm8366_vm10 = vcmask 1022976  }
0x15c8   : > { %v7594_v50 = vsel %vm8357_vm14, 0.0, %v3005_v57  ;;  %v3018_v55 = vsel %vm8358_vm4, %v3005_v57, 0.0  ;;  %v7607_v27 = vsel %vm8359_vm7, 0.0, %v3007_v11  ;;  %v3019_v34 = vsel %vm8360_vm5, %v3007_v11, 0.0  ;;  %vm8368_vm0 = vmmov %vm8366_vm10 }
0x15c9   : > { %v3079_v56 = vmul.f32 %v3067_v60, %v3018_v55  ;;  %v3078_v19 = vmul.f32 %v3067_v60, %v7594_v50  ;;  %v3081_v35 = vmul.f32 %v3072_v58, %v3019_v34  ;;  %v3080_v36 = vmul.f32 %v3072_v58, %v7607_v27  ;;  %vm8370_vm4 = vmmov %vm8364_vm11 }
0x15ca   : > { %v3148_v46 = vmul.f32 %v3136_v14, %v3018_v55  ;;  %v3147_v7 = vmul.f32 %v3136_v14, %v7594_v50  ;;  %v3214_v53 = vmul.f32 %v3200_v18, %v7587_v48  ;;  %v3149_v51 = vmul.f32 %v3141_v1, %v7607_v27  ;;  %vm8371_vm7 = vmmov %vm8368_vm0 }
0x15cb   : > { %3096 = vrot.lane.b32.xlu1 %v3077_v39, %s8307_s20  ;;  %3094 = vrot.lane.b32.xlu0 %v3076_v59, %s8307_s20  ;;  %v3150_v29 = vmul.f32 %v3141_v1, %v3019_v34  ;;  %v3216_v52 = vmul.f32 %v7559_v0, %v7594_v50  ;;  %v3217_v13 = vmul.f32 %v7559_v0, %v3018_v55  ;;  %vm8369_vm14 = vcmask 1014784  }
0x15cc   : > { %v3281_v16 = vmul.f32 %v7563_v49, %v7582_v22  ;;  %v3282_v62 = vmul.f32 %v7563_v49, %v3016_v10  ;;  %v3283_v9 = vmul.f32 %v7561_v3, %v7587_v48  ;;  %v3284_v60 = vmul.f32 %v7561_v3, %v3017_v21  ;;  %vm8372_vm5 = vmmov %vm8369_vm14 }
0x15cd   : > { %v3219_v47 = vmul.f32 %v7565_v5, %v3019_v34  ;;  %v3218_v44 = vmul.f32 %v7565_v5, %v7607_v27  ;;  %v3286_v42 = vmul.f32 %v7567_v4, %v3018_v55  ;;  %v3285_v14 = vmul.f32 %v7567_v4, %v7594_v50 }
0x15ce   : > { %v3288_v58 = vmul.f32 %v7571_v24, %v3019_v34  ;;  %v3287_v18 = vmul.f32 %v7571_v24, %v7607_v27 }
0x15cf   : > { %3100 = vrot.lane.b32.xlu1 %v3079_v56, %s8307_s20  ;;  %3098 = vrot.lane.b32.xlu0 %v3078_v19, %s8307_s20 }
0x15d3   : > { %3161 = vrot.lane.b32.xlu1 %v3144_v23, %s8308_s15  ;;  %3159 = vrot.lane.b32.xlu0 %v3143_v45, %s8308_s15 }
0x15d7   : > { %3165 = vrot.lane.b32.xlu1 %v3146_v26, %s8308_s15  ;;  %3163 = vrot.lane.b32.xlu0 %v3145_v30, %s8308_s15 }
0x15d8   : > { %v7657_v15 = vpop.permute.xlu1 %3337  ;;  %v7659_v0 = vpop.permute.xlu0 %3342 }
0x15db   : > { %3104 = vrot.lane.b32.xlu1 %v3081_v35, %s8307_s20  ;;  %3102 = vrot.lane.b32.xlu0 %v3080_v36, %s8307_s20 }
0x15dc   : > { %v7661_v1 = vpop.permute.xlu1 %3347 }
0x15df   : > { %3169 = vrot.lane.b32.xlu1 %v3148_v46, %s8308_s15  ;;  %3167 = vrot.lane.b32.xlu0 %v3147_v7, %s8308_s15  ;;  %v3046_v46 = vmul.f32 %v7575_v17, %v7587_v48  ;;  %v3047_v17 = vmul.f32 %v7573_v25, %v7594_v50  ;;  %v3048_v25 = vmul.f32 %v7579_v28, %v7607_v27 }
0x15e3   : > { %3230 = vrot.lane.b32.xlu1 %v3213_v32, %s8315_s21  ;;  %3228 = vrot.lane.b32.xlu0 %v3212_v37, %s8315_s21  ;;  %v3045_v37 = vmul.f32 %v7569_v54, %v7582_v22 }
0x15e7   : > { %3234 = vrot.lane.b32.xlu1 %v3215_v31, %s8315_s21  ;;  %3232 = vrot.lane.b32.xlu0 %v3214_v53, %s8315_s21 }
0x15eb   : > { %3171 = vrot.lane.b32.xlu1 %v3149_v51, %s8308_s15  ;;  %3173 = vrot.lane.b32.xlu0 %v3150_v29, %s8308_s15 }
0x15ef   : > { %3236 = vrot.lane.b32.xlu1 %v3216_v52, %s8315_s21  ;;  %3238 = vrot.lane.b32.xlu0 %v3217_v13, %s8315_s21 }
0x15f3   : > { %3297 = vrot.lane.b32.xlu1 %v3281_v16, %s8324_s1  ;;  %3299 = vrot.lane.b32.xlu0 %v3282_v62, %s8324_s1 }
0x15f7   : > { %3301 = vrot.lane.b32.xlu1 %v3283_v9, %s8324_s1  ;;  %3303 = vrot.lane.b32.xlu0 %v3284_v60, %s8324_s1 }
0x15fb   : > { %3242 = vrot.lane.b32.xlu1 %v3219_v47, %s8315_s21  ;;  %3240 = vrot.lane.b32.xlu0 %v3218_v44, %s8315_s21 }
0x15ff   : > { %3307 = vrot.lane.b32.xlu1 %v3286_v42, %s8324_s1  ;;  %3305 = vrot.lane.b32.xlu0 %v3285_v14, %s8324_s1 }
0x1603   : > { %3311 = vrot.lane.b32.xlu1 %v3288_v58, %s8324_s1  ;;  %3309 = vrot.lane.b32.xlu0 %v3287_v18, %s8324_s1 }
0x1639   : > { %v3093_v3 = vpop.permute.xlu1 %3092  ;;  %v3091_v49 = vpop.permute.xlu0 %3090 }
0x163a   : > { %v3106_v7 = vsel %vm8362_vm15, %v3091_v49, %v3093_v3  ;;  %vm8374_vm15 = vmmov %vm8368_vm0 }
0x163b   : > { %v3114_v16 = vadd.f32 %v3106_v7, %v3045_v37  ;;  %v5230_v7 = vld [vmem:[%s8249_s6 + $0x300] sm:$0xff]  ;;  %v5228_v37 = vld [vmem:[%s8249_s6 + $0x2f0] sm:$0xff] }
0x163d   : > { %v3097_v5 = vpop.permute.xlu1 %3096  ;;  %v3095_v4 = vpop.permute.xlu0 %3094 }
0x163e   : > { %v3107_v36 = vsel %vm8361_vm13, %v3095_v4, %v3097_v5  ;;  %vm8373_vm13 = vmmov %vm8367_vm2 }
0x163f   : > { %v3115_v31 = vadd.f32 %v3107_v36, %v3046_v46  ;;  %v5220_v36 = vld [vmem:[%s8249_s6 + $0x2b0] sm:$0xff]  ;;  %v5221_v46 = vld [vmem:[%s8249_s6 + $0x2b8] sm:$0xff] }
0x1641   : > { %v3101_v38 = vpop.permute.xlu1 %3100  ;;  %v3099_v40 = vpop.permute.xlu0 %3098 }
0x1642   : > { %v3108_v29 = vsel %vm8364_vm11, %v3099_v40, %v3101_v38 }
0x1643   : > { %v3116_v22 = vadd.f32 %v3108_v29, %v3047_v17 }
0x1645   : > { %v3162_v10 = vpop.permute.xlu1 %3161  ;;  %v3160_v43 = vpop.permute.xlu0 %3159 }
0x1646   : > { %v3175_v52 = vsel %vm8365_vm9, %v3160_v43, %v3162_v10  ;;  %vm8377_vm9 = vcmask 15360  }
0x1647   : > { %v3183_v60 = vadd.f32 %v3175_v52, %v3114_v16 }
0x1649   : > { %v3166_v33 = vpop.permute.xlu1 %3165  ;;  %v3164_v24 = vpop.permute.xlu0 %3163 }
0x164a   : > { %v3176_v32 = vsel %vm8363_vm3, %v3164_v24, %v3166_v33  ;;  %vm8375_vm3 = vmmov %vm8372_vm5 }
0x164b   : > { %v3184_v48 = vadd.f32 %v3176_v32, %v3115_v31  ;;  %vm8376_vm11 = vmmov %vm8375_vm3  ;;  %v5225_v32 = vld [vmem:[%s8249_s6 + $0x2d8] sm:$0xff]  ;;  %v5214_v31 = vld [vmem:[%s8249_s6 + $0x280] sm:$0xff] }
0x164d   : > { %v3105_v21 = vpop.permute.xlu1 %3104  ;;  %v3103_v57 = vpop.permute.xlu0 %3102 }
0x164e   : > { %v3109_v14 = vsel %vm8370_vm4, %v3103_v57, %v3105_v21 }
0x164f   : > { %v3117_v4 = vadd.f32 %v3109_v14, %v3048_v25  ;;  %v5207_v25 = vld [vmem:[%s8251_s8 + $0x68] sm:$0xff] }
0x1651   : > { %v3170_v39 = vpop.permute.xlu1 %3169  ;;  %v3168_v59 = vpop.permute.xlu0 %3167 }
0x1652   : > { %v3177_v62 = vsel %vm8367_vm2, %v3168_v59, %v3170_v39  ;;  %vm8379_vm2 = vmmov %vm8377_vm9 }
0x1653   : > { %v3185_v50 = vadd.f32 %v3177_v62, %v3116_v22 }
0x1655   : > { %v3231_v55 = vpop.permute.xlu1 %3230  ;;  %v3229_v56 = vpop.permute.xlu0 %3228 }
0x1656   : > { %v3244_v9 = vsel %vm8368_vm0, %v3229_v56, %v3231_v55  ;;  %vm8380_vm0 = vmmov %vm8379_vm2 }
0x1657   : > { %v3252_v3 = vadd.f32 %v3244_v9, %v3183_v60  ;;  %vm8382_vm4 = vmmov %vm8380_vm0 }
0x1659   : > { %v3235_v19 = vpop.permute.xlu1 %3234  ;;  %v3233_v23 = vpop.permute.xlu0 %3232 }
0x165a   : > { %v3245_v13 = vsel %vm8366_vm10, %v3233_v23, %v3235_v19  ;;  %vm8378_vm10 = vmmov %vm8377_vm9 }
0x165b   : > { %v3253_v47 = vadd.f32 %v3245_v13, %v3184_v48 }
0x165d   : > { %v3172_v45 = vpop.permute.xlu1 %3171  ;;  %v3174_v11 = vpop.permute.xlu0 %3173 }
0x165e   : > { %v3178_v5 = vsel %vm8373_vm13, %v3172_v45, %v3174_v11  ;;  %vm8385_vm13 = vcmask 1039360  }
0x165f   : > { %v3186_v21 = vadd.f32 %v3178_v5, %v3117_v4  ;;  %v5219_v5 = vld [vmem:[%s8249_s6 + $0x2a8] sm:$0xff] }
0x1660   : > { %v5223_v4 = vld [vmem:[%s8249_s6 + $0x2c8] sm:$0xff] }
0x1661   : > { %v3237_v26 = vpop.permute.xlu1 %3236  ;;  %v3239_v30 = vpop.permute.xlu0 %3238 }
0x1662   : > { %v3246_v58 = vsel %vm8371_vm7, %v3237_v26, %v3239_v30  ;;  %vm8383_vm7 = vmmov %vm8380_vm0 }
0x1663   : > { %v3254_v38 = vadd.f32 %v3246_v58, %v3185_v50  ;;  %v5211_v50 = vld [vmem:[%s8252_s9 + $0x68] sm:$0xff] }
0x1665   : > { %v3298_v34 = vpop.permute.xlu1 %3297  ;;  %v3300_v35 = vpop.permute.xlu0 %3299 }
0x1666   : > { %v3313_v18 = vsel %vm8372_vm5, %v3298_v34, %v3300_v35  ;;  %v5218_v34 = vld [vmem:[%s8249_s6 + $0x2a0] sm:$0xff]  ;;  %vm8384_vm5 = vmmov %vm8380_vm0 }
0x1667   : > { %v3321_v40 = vadd.f32 %v3313_v18, %v3252_v3  ;;  %v5222_v35 = vld [vmem:[%s8249_s6 + $0x2c0] sm:$0xff]  ;;  %v5209_v3 = vld [vmem:[%s8251_s8 + $0x78] sm:$0xff] }
0x1669   : > { %v3302_v53 = vpop.permute.xlu1 %3301  ;;  %v3304_v51 = vpop.permute.xlu0 %3303  ;;  %v3350_v28 = vadd.f32 %v7577_v20, %v3321_v40  ;;  %v5210_v20 = vld [vmem:[%s8252_s9 + $0x60] sm:$0xff]  ;;  %v5227_v40 = vld [vmem:[%s8249_s6 + $0x2e8] sm:$0xff] }
0x166a   : > { %v3314_v54 = vsel %vm8369_vm14, %v3302_v53, %v3304_v51  ;;  %vm8381_vm14 = vmmov %vm8380_vm0 }
0x166b   : > { %v3322_v49 = vadd.f32 %v3314_v54, %v3253_v47 }
0x166d   : > { %v3243_v44 = vpop.permute.xlu1 %3242  ;;  %v3241_v42 = vpop.permute.xlu0 %3240  ;;  %v3351_v57 = vadd.f32 %v7657_v15, %v3322_v49  ;;  %v5206_v15 = vld [vmem:[%s8251_s8 + $0x60] sm:$0xff]  ;;  %v5213_v49 = vld [vmem:[%s8252_s9 + $0x78] sm:$0xff] }
0x166e   : > { %v3247_v33 = vsel %vm8374_vm15, %v3241_v42, %v3243_v44  ;;  %vm8386_vm15 = vcmask 1031168  }
0x166f   : > { %v3255_v27 = vadd.f32 %v3247_v33, %v3186_v21  ;;  %v3364_v23 = vadd.f32 %v3351_v57, %v3350_v28  ;;  %v5229_v33 = vld [vmem:[%s8249_s6 + $0x2f8] sm:$0xff] }
0x1670   : > { %v5233_v21 = vld [vmem:[%s8249_s6 + $0x318] sm:$0xff] }
0x1671   : > { %v3308_v10 = vpop.permute.xlu1 %3307  ;;  %v3306_v43 = vpop.permute.xlu0 %3305 }
0x1672   : > { %v3315_v24 = vsel %vm8375_vm3, %v3306_v43, %v3308_v10  ;;  %v5224_v10 = vld [vmem:[%s8249_s6 + $0x2d0] sm:$0xff]  ;;  %v5231_v43 = vld [vmem:[%s8249_s6 + $0x308] sm:$0xff]  ;;  %vm8387_vm3 = vcmask 1022976  }
0x1673   : > { %v3323_v39 = vadd.f32 %v3315_v24, %v3254_v38  ;;  %v5226_v38 = vld [vmem:[%s8249_s6 + $0x2e0] sm:$0xff]  ;;  %v5232_v24 = vld [vmem:[%s8249_s6 + $0x310] sm:$0xff] }
0x1675   : > { %v3352_v59 = vadd.f32 %v7659_v0, %v3323_v39  ;;  %v3312_v55 = vpop.permute.xlu1 %3311  ;;  %v3310_v56 = vpop.permute.xlu0 %3309  ;;  %v5208_v0 = vld [vmem:[%s8251_s8 + $0x70] sm:$0xff] }
0x1676   : > { %v3316_v19 = vsel %vm8376_vm11, %v3310_v56, %v3312_v55  ;;  %vm8388_vm11 = vmmov %vm8385_vm13 }
0x1677   : > { %v3324_v45 = vadd.f32 %v3316_v19, %v3255_v27  ;;  %v3365_v26 = vadd.f32 %v3364_v23, %v3352_v59 }
0x1679   : > { %v3353_v11 = vadd.f32 %v7661_v1, %v3324_v45  ;;  %v5212_v1 = vld [vmem:[%s8252_s9 + $0x70] sm:$0xff] }
0x167b   : > { %v3366_v30 = vadd.f32 %v3365_v26, %v3353_v11 }
0x167d   : > { %3367 = vadd.xlane.f32.xlu0 %v3366_v30 }
0x1693   : > { %3410 = vperm.xlu0 %5997, %v5206_v15  }
0x1697   : > { %3434 = vperm.xlu0 %5997, %v5210_v20  }
0x169b   : > { %3420 = vperm.xlu0 %5997, %v5208_v0  }
0x169f   : > { %3444 = vperm.xlu0 %5997, %v5212_v1  }
0x16a3   : > { %3516 = vperm.xlu0 %5997, %v5218_v34  }
0x16a7   : > { %3585 = vperm.xlu0 %5997, %v5222_v35  }
0x16ab   : > { %3526 = vperm.xlu0 %5997, %v5220_v36  }
0x16af   : > { %3531 = vperm.xlu0 %5997, %v5221_v46  }
0x16b3   : > { %3723 = vperm.xlu0 %5997, %v5230_v7  }
0x16b7   : > { %3600 = vperm.xlu0 %5997, %v5225_v32  }
0x16bb   : > { %3664 = vperm.xlu0 %5997, %v5228_v37  }
0x16bf   : > { %3487 = vperm.xlu0 %5997, %v5214_v31  }
0x170a   : > { %v3368_v53 = vpop.xlane.xlu0 %3367 }
0x170b   : > { %v3369_v51 = vrot.slane %v3368_v53, 4 }
0x170d   : > { %v3370_v29 = vadd.f32 %v3369_v51, %v3368_v53  ;;  %v5215_v51 = vld [vmem:[%s8249_s6 + $0x288] sm:$0xff] }
0x170f   : > { %v3371_v52 = vrot.slane %v3370_v29, 2 }
0x1711   : > { %v3372_v13 = vadd.f32 %v3371_v52, %v3370_v29 }
0x1712   : > { %v3411_v45 = vpop.permute.xlu0 %3410 }
0x1713   : > { %v3373_v16 = vrot.slane %v3372_v13, 1 }
0x1715   : > { %v3374_v17 = vadd.f32 %v3373_v16, %v3372_v13  ;;  %v5217_v16 = vld [vmem:[%s8249_s6 + $0x298] sm:$0xff] }
0x1716   : > { %v3435_v26 = vpop.permute.xlu0 %3434 }
0x1717   : > { %5914 = vpush %v3374_v17 }
0x171a   : > { %v3421_v34 = vpop.permute.xlu0 %3420 }
0x171e   : > { %v3445_v53 = vpop.permute.xlu0 %3444 }
0x1748   : > { %s5915_s22 = spop %5914 }
0x1749   : > { %s3376_s19 = smul.f32 0.00024414063, %s5915_s22 }
0x174b   : > { %v3377_v48 = vstv %s3376_s19 }
0x174c   : > { %v3378_v62 = vsub.f32 %v3350_v28, %v3377_v48  ;;  %v3379_v9 = vsub.f32 %v3351_v57, %v3377_v48  ;;  %v3380_v54 = vsub.f32 %v3352_v59, %v3377_v48  ;;  %v3381_v22 = vsub.f32 %v3353_v11, %v3377_v48  ;;  %v5216_v48 = vld [vmem:[%s8249_s6 + $0x290] sm:$0xff] }
0x174e   : > { %v3382_v60 = vmul.f32 %v3378_v62, %v3378_v62  ;;  %v3383_v47 = vmul.f32 %v3379_v9, %v3379_v9  ;;  %v3384_v44 = vmul.f32 %v3380_v54, %v3380_v54  ;;  %v3385_v14 = vmul.f32 %v3381_v22, %v3381_v22 }
0x1750   : > { %v3386_v42 = vadd.f32 %v3383_v47, %v3382_v60 }
0x1752   : > { %v3387_v58 = vadd.f32 %v3386_v42, %v3384_v44 }
0x1754   : > { %v3388_v18 = vadd.f32 %v3387_v58, %v3385_v14 }
0x1756   : > { %3389 = vadd.xlane.f32.xlu1 %v3388_v18 }
0x1767   : > { %3415 = vperm.xlu1 %5998, %v5207_v25  }
0x176b   : > { %3439 = vperm.xlu1 %5998, %v5211_v50  }
0x176f   : > { %3425 = vperm.xlu1 %5998, %v5209_v3  }
0x1773   : > { %3449 = vperm.xlu1 %5998, %v5213_v49  }
0x1777   : > { %3521 = vperm.xlu1 %5998, %v5219_v5  }
0x177b   : > { %3590 = vperm.xlu1 %5998, %v5223_v4  }
0x177f   : > { %3654 = vperm.xlu1 %5998, %v5226_v38  }
0x1783   : > { %3659 = vperm.xlu1 %5998, %v5227_v40  }
0x1787   : > { %3595 = vperm.xlu1 %5998, %v5224_v10  }
0x178b   : > { %3728 = vperm.xlu1 %5998, %v5231_v43  }
0x178f   : > { %3669 = vperm.xlu1 %5998, %v5229_v33  }
0x1793   : > { %3733 = vperm.xlu1 %5998, %v5232_v24  }
0x1797   : > { %3738 = vperm.xlu1 %5998, %v5233_v21  }
0x17e3   : > { %v3390_v57 = vpop.xlane.xlu1 %3389 }
0x17e4   : > { %v3391_v39 = vrot.slane %v3390_v57, 4 }
0x17e6   : > { %v3392_v28 = vadd.f32 %v3391_v39, %v3390_v57 }
0x17e7   : > { %v3416_v11 = vpop.permute.xlu1 %3415 }
0x17e8   : > { %v3393_v27 = vrot.slane %v3392_v28, 2 }
0x17ea   : > { %v3394_v59 = vadd.f32 %v3393_v27, %v3392_v28 }
0x17eb   : > { %v3440_v30 = vpop.permute.xlu1 %3439 }
0x17ec   : > { %v3395_v55 = vrot.slane %v3394_v59, 1 }
0x17ee   : > { %v3396_v56 = vadd.f32 %v3395_v55, %v3394_v59 }
0x17ef   : > { %v3426_v31 = vpop.permute.xlu1 %3425 }
0x17f0   : > { %5916 = vpush %v3396_v56 }
0x17f3   : > { %v3450_v13 = vpop.permute.xlu1 %3449 }
0x1821   : > { %s5917_s0 = spop %5916 }
0x1822   : > { %s3398_s29 = smul.f32 0.00024414063, %s5917_s0 }
0x1824   : > { %s3399_s24 = sadd.f32 1e-08, %s3398_s29 }
0x1826   : > { %v3400_v19 = vstv %s3399_s24 }
0x1827   : > { %6011 = vrsqrt.f32 %v3400_v19 }
0x1831   : > { %v6012_v23 = vpop.eup %6011 }
0x1832   : > { %5918 = vpush %v6012_v23 }
0x1863   : > { %s5919_s28 = spop %5918 }
0x1864   : > { %v3403_v15 = vstv %s5919_s28 }
0x1865   : > { %v3404_v20 = vmul.f32 %v3403_v15, %v3378_v62  ;;  %v3405_v0 = vmul.f32 %v3403_v15, %v3379_v9  ;;  %v3406_v1 = vmul.f32 %v3403_v15, %v3380_v54  ;;  %v3407_v46 = vmul.f32 %v3403_v15, %v3381_v22  ;;  %v3522_v62 = vpop.permute.xlu1 %3521  ;;  %v3517_v9 = vpop.permute.xlu0 %3516 }
0x1867   : > { %v3428_v35 = vmul.f32 %v3411_v45, %v3404_v20  ;;  %v3429_v36 = vmul.f32 %v3416_v11, %v3405_v0  ;;  %v3430_v7 = vmul.f32 %v3421_v34, %v3406_v1  ;;  %v3431_v29 = vmul.f32 %v3426_v31, %v3407_v46 }
0x1869   : > { %v7766_v32 = vadd.f32 %v3440_v30, %v3429_v36  ;;  %v7768_v37 = vadd.f32 %v3435_v26, %v3428_v35  ;;  %v7777_v52 = vadd.f32 %v3445_v53, %v3430_v7  ;;  %v7784_v17 = vadd.f32 %v3450_v13, %v3431_v29  ;;  %v3591_v54 = vpop.permute.xlu1 %3590  ;;  %v3586_v22 = vpop.permute.xlu0 %3585 }
0x186b   : > { %3462 = vrot.lane.b32.xlu1 %v7766_v32, %s8306_s25  ;;  %3460 = vrot.lane.b32.xlu0 %v7768_v37, %s8306_s25 }
0x186d   : > { %v3655_v60 = vpop.permute.xlu1 %3654  ;;  %v3527_v47 = vpop.permute.xlu0 %3526 }
0x186f   : > { %3492 = vperm.xlu1 %5998, %v5215_v51   ;;  %3464 = vrot.lane.b32.xlu0 %v7777_v52, %s8306_s25 }
0x1871   : > { %v3660_v44 = vpop.permute.xlu1 %3659  ;;  %v3532_v42 = vpop.permute.xlu0 %3531 }
0x1873   : > { %3502 = vperm.xlu1 %5998, %v5217_v16   ;;  %3466 = vrot.lane.b32.xlu0 %v7784_v17, %s8306_s25 }
0x1875   : > { %v3596_v14 = vpop.permute.xlu1 %3595  ;;  %v3724_v58 = vpop.permute.xlu0 %3723 }
0x1877   : > { %3497 = vperm.xlu0 %5997, %v5216_v48  }
0x1879   : > { %v7791_v18 = vpop.permute.xlu1 %3728  ;;  %v3601_v25 = vpop.permute.xlu0 %3600 }
0x187d   : > { %v7793_v50 = vpop.permute.xlu1 %3669  ;;  %v7795_v3 = vpop.permute.xlu0 %3664 }
0x1881   : > { %v7797_v49 = vpop.permute.xlu1 %3733  ;;  %v7799_v5 = vpop.permute.xlu0 %3487 }
0x1885   : > { %v7801_v4 = vpop.permute.xlu1 %3738 }
0x18dd   : > { %v3463_v38 = vpop.permute.xlu1 %3462  ;;  %v3461_v40 = vpop.permute.xlu0 %3460 }
0x18de   : > { %v7804_v10 = vsel %vm8377_vm9, 0.0, %v3461_v40  ;;  %v3476_v43 = vsel %vm8378_vm10, %v3461_v40, 0.0  ;;  %v7809_v21 = vsel %vm8379_vm2, 0.0, %v3463_v38  ;;  %v3477_v57 = vsel %vm8380_vm0, %v3463_v38, 0.0  ;;  %vm8390_vm10 = vmmov %vm8386_vm15 }
0x18df   : > { %v3535_v33 = vmul.f32 %v3517_v9, %v3476_v43  ;;  %v3534_v24 = vmul.f32 %v3517_v9, %v7804_v10  ;;  %v3537_v39 = vmul.f32 %v3522_v62, %v3477_v57  ;;  %v3536_v28 = vmul.f32 %v3522_v62, %v7809_v21  ;;  %vm8391_vm2 = vmmov %vm8387_vm3 }
0x18e0   : > { %v3604_v27 = vmul.f32 %v3586_v22, %v3476_v43  ;;  %v3603_v59 = vmul.f32 %v3586_v22, %v7804_v10  ;;  %v3606_v56 = vmul.f32 %v3591_v54, %v3477_v57  ;;  %v3605_v19 = vmul.f32 %v3591_v54, %v7809_v21 }
0x18e1   : > { %3552 = vrot.lane.b32.xlu1 %v3535_v33, %s8307_s20  ;;  %3550 = vrot.lane.b32.xlu0 %v3534_v24, %s8307_s20  ;;  %v3465_v55 = vpop.permute.xlu0 %3464  ;;  %v3673_v15 = vmul.f32 %v3655_v60, %v3476_v43  ;;  %v3672_v20 = vmul.f32 %v3655_v60, %v7804_v10  ;;  %v3675_v36 = vmul.f32 %v3660_v44, %v3477_v57  ;;  %vm8389_vm9 = vcmask 1014784  }
0x18e2   : > { %v7822_v23 = vsel %vm8381_vm14, 0.0, %v3465_v55  ;;  %v3478_v45 = vsel %vm8382_vm4, %v3465_v55, 0.0  ;;  %v3674_v46 = vmul.f32 %v3660_v44, %v7809_v21  ;;  %v3742_v53 = vmul.f32 %v3724_v58, %v3476_v43  ;;  %vm8392_vm0 = vmmov %vm8389_vm9 }
0x18e3   : > { %v3539_v11 = vmul.f32 %v3527_v47, %v3478_v45  ;;  %v3538_v26 = vmul.f32 %v3527_v47, %v7822_v23  ;;  %v3608_v7 = vmul.f32 %v3596_v14, %v3478_v45  ;;  %v3607_v31 = vmul.f32 %v3596_v14, %v7822_v23  ;;  %v5235_v14 = vld [vmem:[%s8250_s7 + $0x88] sm:$0xff]  ;;  %vm8393_vm14 = vmmov %vm8388_vm11 }
0x18e4   : > { %v3741_v51 = vmul.f32 %v3724_v58, %v7804_v10  ;;  %v3744_v16 = vmul.f32 %v7791_v18, %v3477_v57  ;;  %v3743_v48 = vmul.f32 %v7791_v18, %v7809_v21  ;;  %v3677_v62 = vmul.f32 %v7795_v3, %v3478_v45  ;;  %v5234_v58 = vld [vmem:[%s8250_s7 + $0x80] sm:$0xff]  ;;  %v5237_v18 = vld [vmem:[%s8250_s7 + $0x98] sm:$0xff]  ;;  %vm8394_vm4 = vmmov %vm8390_vm10 }
0x18e5   : > { %3556 = vrot.lane.b32.xlu1 %v3537_v39, %s8307_s20  ;;  %3554 = vrot.lane.b32.xlu0 %v3536_v28, %s8307_s20  ;;  %v3467_v30 = vpop.permute.xlu0 %3466  ;;  %v3676_v9 = vmul.f32 %v7795_v3, %v7822_v23  ;;  %v3746_v60 = vmul.f32 %v7797_v49, %v3478_v45  ;;  %v3745_v47 = vmul.f32 %v7797_v49, %v7822_v23 }
0x18e6   : > { %v7832_v0 = vsel %vm8383_vm7, 0.0, %v3467_v30  ;;  %v3479_v1 = vsel %vm8384_vm5, %v3467_v30, 0.0  ;;  %v3505_v30 = vmul.f32 %v7799_v5, %v7804_v10  ;;  %vm8395_vm7 = vmmov %vm8388_vm11 }
0x18e7   : > { %v3541_v34 = vmul.f32 %v3532_v42, %v3479_v1  ;;  %v3540_v35 = vmul.f32 %v3532_v42, %v7832_v0  ;;  %v3610_v29 = vmul.f32 %v3601_v25, %v3479_v1  ;;  %v3609_v13 = vmul.f32 %v3601_v25, %v7832_v0  ;;  %v5236_v25 = vld [vmem:[%s8250_s7 + $0x90] sm:$0xff]  ;;  %vm8396_vm5 = vmmov %vm8391_vm2 }
0x18e8   : > { %v3679_v54 = vmul.f32 %v7793_v50, %v3479_v1  ;;  %v3678_v22 = vmul.f32 %v7793_v50, %v7832_v0  ;;  %v3748_v44 = vmul.f32 %v7801_v4, %v3479_v1  ;;  %v3747_v42 = vmul.f32 %v7801_v4, %v7832_v0 }
0x18e9   : > { %3621 = vrot.lane.b32.xlu1 %v3604_v27, %s8308_s15  ;;  %3619 = vrot.lane.b32.xlu0 %v3603_v59, %s8308_s15 }
0x18ed   : > { %3625 = vrot.lane.b32.xlu1 %v3606_v56, %s8308_s15  ;;  %3623 = vrot.lane.b32.xlu0 %v3605_v19, %s8308_s15 }
0x18ee   : > { %v3493_v50 = vpop.permute.xlu1 %3492 }
0x18f1   : > { %3560 = vrot.lane.b32.xlu1 %v3539_v11, %s8307_s20  ;;  %3558 = vrot.lane.b32.xlu0 %v3538_v26, %s8307_s20 }
0x18f2   : > { %v3503_v3 = vpop.permute.xlu1 %3502 }
0x18f5   : > { %3690 = vrot.lane.b32.xlu1 %v3673_v15, %s8315_s21  ;;  %3688 = vrot.lane.b32.xlu0 %v3672_v20, %s8315_s21 }
0x18f6   : > { %v3498_v49 = vpop.permute.xlu0 %3497 }
0x18f9   : > { %3564 = vrot.lane.b32.xlu1 %v3541_v34, %s8307_s20  ;;  %3562 = vrot.lane.b32.xlu0 %v3540_v35, %s8307_s20 }
0x18fd   : > { %3694 = vrot.lane.b32.xlu1 %v3675_v36, %s8315_s21  ;;  %3692 = vrot.lane.b32.xlu0 %v3674_v46, %s8315_s21 }
0x1901   : > { %3629 = vrot.lane.b32.xlu1 %v3608_v7, %s8308_s15  ;;  %3627 = vrot.lane.b32.xlu0 %v3607_v31, %s8308_s15 }
0x1905   : > { %3759 = vrot.lane.b32.xlu1 %v3742_v53, %s8324_s1  ;;  %3757 = vrot.lane.b32.xlu0 %v3741_v51, %s8324_s1 }
0x1909   : > { %3633 = vrot.lane.b32.xlu1 %v3610_v29, %s8308_s15  ;;  %3631 = vrot.lane.b32.xlu0 %v3609_v13, %s8308_s15  ;;  %v3506_v29 = vmul.f32 %v3493_v50, %v7809_v21 }
0x190d   : > { %3763 = vrot.lane.b32.xlu1 %v3744_v16, %s8324_s1  ;;  %3761 = vrot.lane.b32.xlu0 %v3743_v48, %s8324_s1 }
0x1911   : > { %3698 = vrot.lane.b32.xlu1 %v3677_v62, %s8315_s21  ;;  %3696 = vrot.lane.b32.xlu0 %v3676_v9, %s8315_s21 }
0x1915   : > { %3702 = vrot.lane.b32.xlu1 %v3679_v54, %s8315_s21  ;;  %3700 = vrot.lane.b32.xlu0 %v3678_v22, %s8315_s21 }
0x1919   : > { %3767 = vrot.lane.b32.xlu1 %v3746_v60, %s8324_s1  ;;  %3765 = vrot.lane.b32.xlu0 %v3745_v47, %s8324_s1 }
0x191d   : > { %3771 = vrot.lane.b32.xlu1 %v3748_v44, %s8324_s1  ;;  %3769 = vrot.lane.b32.xlu0 %v3747_v42, %s8324_s1 }
0x1921   : > { %3797 = vperm.xlu1 %5998, %v5235_v14   ;;  %3792 = vperm.xlu0 %5997, %v5234_v58   ;;  %v3507_v58 = vmul.f32 %v3498_v49, %v7822_v23 }
0x1925   : > { %3807 = vperm.xlu1 %5998, %v5237_v18   ;;  %3802 = vperm.xlu0 %5997, %v5236_v25  }
0x1953   : > { %v3553_v4 = vpop.permute.xlu1 %3552  ;;  %v3551_v38 = vpop.permute.xlu0 %3550 }
0x1954   : > { %v3566_v26 = vsel %vm8385_vm13, %v3551_v38, %v3553_v4  ;;  %vm8397_vm13 = vmmov %vm8394_vm4 }
0x1955   : > { %v3574_v20 = vadd.f32 %v3566_v26, %v3505_v30 }
0x1957   : > { %v3557_v40 = vpop.permute.xlu1 %3556  ;;  %v3555_v43 = vpop.permute.xlu0 %3554 }
0x1958   : > { %v3567_v53 = vsel %vm8388_vm11, %v3555_v43, %v3557_v40  ;;  %v3508_v43 = vmul.f32 %v3503_v3, %v7832_v0  ;;  %vm8400_vm11 = vmmov %vm8392_vm0 }
0x1959   : > { %v3575_v10 = vadd.f32 %v3567_v53, %v3506_v29 }
0x195b   : > { %v3622_v33 = vpop.permute.xlu1 %3621  ;;  %v3620_v24 = vpop.permute.xlu0 %3619 }
0x195c   : > { %v3635_v15 = vsel %vm8386_vm15, %v3620_v24, %v3622_v33  ;;  %vm8398_vm15 = vmmov %vm8391_vm2 }
0x195d   : > { %v3643_v36 = vadd.f32 %v3635_v15, %v3574_v20 }
0x195f   : > { %v3626_v57 = vpop.permute.xlu1 %3625  ;;  %v3624_v39 = vpop.permute.xlu0 %3623 }
0x1960   : > { %v3636_v5 = vsel %vm8390_vm10, %v3624_v39, %v3626_v57 }
0x1961   : > { %v3644_v9 = vadd.f32 %v3636_v5, %v3575_v10 }
0x1963   : > { %v3561_v28 = vpop.permute.xlu1 %3560  ;;  %v3559_v27 = vpop.permute.xlu0 %3558 }
0x1964   : > { %v3568_v21 = vsel %vm8393_vm14, %v3559_v27, %v3561_v28 }
0x1965   : > { %v3576_v25 = vadd.f32 %v3568_v21, %v3507_v58  ;;  %v5276_v21 = vld [vmem:[%s8249_s6 + $0x390] sm:$0xff] }
0x1967   : > { %v3691_v59 = vpop.permute.xlu1 %3690  ;;  %v3689_v55 = vpop.permute.xlu0 %3688 }
0x1968   : > { %v3704_v35 = vsel %vm8387_vm3, %v3689_v55, %v3691_v59  ;;  %vm8399_vm3 = vmmov %vm8392_vm0 }
0x1969   : > { %v3712_v46 = vadd.f32 %v3704_v35, %v3643_v36 }
0x196b   : > { %v3565_v56 = vpop.permute.xlu1 %3564  ;;  %v3563_v19 = vpop.permute.xlu0 %3562 }
0x196c   : > { %v3569_v38 = vsel %vm8395_vm7, %v3563_v19, %v3565_v56 }
0x196d   : > { %v3577_v57 = vadd.f32 %v3569_v38, %v3508_v43 }
0x196f   : > { %v3695_v45 = vpop.permute.xlu1 %3694  ;;  %v3693_v11 = vpop.permute.xlu0 %3692 }
0x1970   : > { %v3705_v62 = vsel %vm8391_vm2, %v3693_v11, %v3695_v45 }
0x1971   : > { %v3713_v54 = vadd.f32 %v3705_v62, %v3644_v9  ;;  %v5258_v62 = vld [vmem:[%s8252_s9 + $0x80] sm:$0xff]  ;;  %v5256_v9 = vld [vmem:[%s8251_s8 + $0x90] sm:$0xff] }
0x1973   : > { %v3630_v1 = vpop.permute.xlu1 %3629  ;;  %v3628_v34 = vpop.permute.xlu0 %3627 }
0x1974   : > { %v3637_v18 = vsel %vm8394_vm4, %v3628_v34, %v3630_v1 }
0x1975   : > { %v3645_v33 = vadd.f32 %v3637_v18, %v3576_v25 }
0x1977   : > { %v3760_v7 = vpop.permute.xlu1 %3759  ;;  %v3758_v31 = vpop.permute.xlu0 %3757 }
0x1978   : > { %v3773_v51 = vsel %vm8389_vm9, %v3758_v31, %v3760_v7  ;;  %vm8401_vm9 = vcmask 523264  }
0x1979   : > { %v3781_v13 = vadd.f32 %v3773_v51, %v3712_v46  ;;  %vm8402_vm10 = vmmov %vm8401_vm9 }
0x197a   : > { %vm8403_vm2 = vmmov %vm8401_vm9 }
0x197b   : > { %v3634_v16 = vpop.permute.xlu1 %3633  ;;  %5635 = vmatprep.mubr.f32.mxu0 %v3781_v13  ;;  %v3632_v48 = vpop.permute.xlu0 %3631 }
0x197c   : > { %v3638_v24 = vsel %vm8397_vm13, %v3632_v48, %v3634_v16  ;;  %v5254_v48 = vld [vmem:[%s8251_s8 + $0x80] sm:$0xff]  ;;  %vm8409_vm13 = vcmask 15360  }
0x197d   : > { %v3646_v27 = vadd.f32 %v3638_v24, %v3577_v57 }
0x197f   : > { %v3764_v22 = vpop.permute.xlu1 %3763  ;;  %v3762_v60 = vpop.permute.xlu0 %3761 }
0x1980   : > { %v3774_v47 = vsel %vm8392_vm0, %v3762_v60, %v3764_v22  ;;  %vm8404_vm0 = vmmov %vm8403_vm2  ;;  %v5266_v22 = vld [vmem:[%s8249_s6 + $0x340] sm:$0xff] }
0x1981   : > { %v3782_v44 = vadd.f32 %v3774_v47, %v3713_v54  ;;  %v5260_v54 = vld [vmem:[%s8252_s9 + $0x90] sm:$0xff]  ;;  %v5270_v60 = vld [vmem:[%s8249_s6 + $0x360] sm:$0xff]  ;;  %vm8405_vm14 = vmmov %vm8404_vm0 }
0x1982   : > { %v5268_v47 = vld [vmem:[%s8249_s6 + $0x350] sm:$0xff]  ;;  %vm8406_vm4 = vmmov %vm8404_vm0 }
0x1983   : > { %v3699_v42 = vpop.permute.xlu1 %3698  ;;  %5636 = vmatmul.mubr.f32.vlgmr.msra.gmra.mrb[16].mxu0 %v3782_v44  ;;  %v3697_v14 = vpop.permute.xlu0 %3696  ;;  %v5275_v44 = vld [vmem:[%s8249_s6 + $0x388] sm:$0xff]  ;;  %vm8407_vm7 = vmmov %vm8404_vm0 }
0x1984   : > { %v3706_v40 = vsel %vm8396_vm5, %v3697_v14, %v3699_v42  ;;  %v5272_v42 = vld [vmem:[%s8249_s6 + $0x370] sm:$0xff]  ;;  %v5273_v14 = vld [vmem:[%s8249_s6 + $0x378] sm:$0xff]  ;;  %vm8408_vm5 = vmmov %vm8404_vm0 }
0x1985   : > { %v3714_v39 = vadd.f32 %v3706_v40, %v3645_v33 }
0x1987   : > { %v3703_v50 = vpop.permute.xlu1 %3702  ;;  %v3701_v4 = vpop.permute.xlu0 %3700 }
0x1988   : > { %v3707_v23 = vsel %vm8398_vm15, %v3701_v4, %v3703_v50  ;;  %vm8410_vm15 = vmmov %vm8409_vm13 }
0x1989   : > { %v3715_v45 = vadd.f32 %v3707_v23, %v3646_v27 }
0x198b   : > { %v3768_v59 = vpop.permute.xlu1 %3767  ;;  %v3766_v28 = vpop.permute.xlu0 %3765 }
0x198c   : > { %v3775_v49 = vsel %vm8399_vm3, %v3766_v28, %v3768_v59  ;;  %vm8411_vm3 = vcmask 539648  }
0x198d   : > { %v3783_v55 = vadd.f32 %v3775_v49, %v3714_v39 }
0x198f   : > { %v3772_v11 = vpop.permute.xlu1 %3771  ;;  %5638 = vmatprep.mubr.f32.mxu0 %v3783_v55  ;;  %v3770_v56 = vpop.permute.xlu0 %3769 }
0x1990   : > { %v3776_v19 = vsel %vm8400_vm11, %v3770_v56, %v3772_v11  ;;  %vm8412_vm11 = vmmov %vm8411_vm3 }
0x1991   : > { %v3784_v0 = vadd.f32 %v3776_v19, %v3715_v45 }
0x1993   : > { %5639 = vmatmul.mubr.f32.gmra.mrb[18].mxu0 %v3784_v0 }
0x19a0   : > { %v3798_v30 = vpop.permute.xlu1 %3797  ;;  %v3793_v15 = vpop.permute.xlu0 %3792 }
0x19a4   : > { %v3808_v34 = vpop.permute.xlu1 %3807  ;;  %v3803_v7 = vpop.permute.xlu0 %3802 }
0x1a56   : > { %v5637_v3 = vpop.f32.mrb[16].mxu0 }
0x1a57   : > { %v3876_v26 = vpop.f32.mrb[17].mxu0  ;;  %v3882_v20 = vadd.f32 %v5637_v3, %v3798_v30  ;;  %v5255_v3 = vld [vmem:[%s8251_s8 + $0x88] sm:$0xff]  ;;  %v5257_v30 = vld [vmem:[%s8251_s8 + $0x98] sm:$0xff] }
0x1a58   : > { %v3877_v1 = vadd.f32 %v3876_v26, %v3793_v15  ;;  %v5259_v26 = vld [vmem:[%s8252_s9 + $0x88] sm:$0xff]  ;;  %v5261_v15 = vld [vmem:[%s8252_s9 + $0x98] sm:$0xff] }
0x1a59   : > { %v3906_v35 = vsel %vm8401_vm9, %v3882_v20, 0.0  ;;  %vm8413_vm9 = vmmov %vm8409_vm13 }
0x1a5a   : > { %v3905_v36 = vsel %vm8402_vm10, %v3877_v1, 0.0  ;;  %vm8414_vm10 = vmmov %vm8411_vm3 }
0x1a5b   : > { %v3907_v29 = vadd.f32 %v3906_v35, %v3905_v36  ;;  %v5269_v35 = vld [vmem:[%s8249_s6 + $0x358] sm:$0xff]  ;;  %v5278_v36 = vld [vmem:[%s8249_s6 + $0x3a0] sm:$0xff] }
0x1a66   : > { %v5640_v46 = vpop.f32.mrb[18].mxu0 }
0x1a67   : > { %v3886_v31 = vpop.f32.mrb[19].mxu0  ;;  %v3892_v53 = vadd.f32 %v5640_v46, %v3808_v34  ;;  %v5274_v34 = vld [vmem:[%s8249_s6 + $0x380] sm:$0xff]  ;;  %v5279_v46 = vld [vmem:[%s8249_s6 + $0x3a8] sm:$0xff] }
0x1a68   : > { %v3887_v51 = vadd.f32 %v3886_v31, %v3803_v7 }
0x1a69   : > { %v3910_v10 = vsel %vm8404_vm0, %v3892_v53, 0.0  ;;  %vm8416_vm0 = vmmov %vm8411_vm3 }
0x1a6a   : > { %v3908_v13 = vsel %vm8403_vm2, %v3887_v51, 0.0  ;;  %vm8415_vm2 = vmmov %vm8413_vm9 }
0x1a6b   : > { %v3909_v5 = vadd.f32 %v3908_v13, %v3907_v29 }
0x1a6d   : > { %v3911_v16 = vadd.f32 %v3910_v10, %v3909_v5 }
0x1a6f   : > { %3912 = vadd.xlane.f32.xlu0 %v3911_v16 }
0x1a85   : > { %3959 = vperm.xlu0 %5997, %v5254_v48  }
0x1a89   : > { %3983 = vperm.xlu0 %5997, %v5258_v62  }
0x1a8d   : > { %3969 = vperm.xlu0 %5997, %v5256_v9  }
0x1a91   : > { %3993 = vperm.xlu0 %5997, %v5260_v54  }
0x1a95   : > { %4065 = vperm.xlu0 %5997, %v5266_v22  }
0x1a99   : > { %4114 = vperm.xlu0 %5997, %v5270_v60  }
0x1a9d   : > { %4075 = vperm.xlu0 %5997, %v5268_v47  }
0x1aa1   : > { %4168 = vperm.xlu0 %5997, %v5275_v44  }
0x1aa5   : > { %4124 = vperm.xlu0 %5997, %v5272_v42  }
0x1aa9   : > { %4129 = vperm.xlu0 %5997, %v5273_v14  }
0x1aad   : > { %4173 = vperm.xlu0 %5997, %v5276_v21  }
0x1afc   : > { %v3913_v58 = vpop.xlane.xlu0 %3912 }
0x1afd   : > { %v3914_v18 = vrot.slane %v3913_v58, 4 }
0x1aff   : > { %v3915_v25 = vadd.f32 %v3914_v18, %v3913_v58 }
0x1b01   : > { %v3916_v50 = vrot.slane %v3915_v25, 2 }
0x1b03   : > { %v3917_v4 = vadd.f32 %v3916_v50, %v3915_v25 }
0x1b04   : > { %v3960_v48 = vpop.permute.xlu0 %3959 }
0x1b05   : > { %v3918_v38 = vrot.slane %v3917_v4, 1 }
0x1b07   : > { %v3919_v40 = vadd.f32 %v3918_v38, %v3917_v4 }
0x1b08   : > { %v3984_v9 = vpop.permute.xlu0 %3983 }
0x1b09   : > { %5920 = vpush %v3919_v40  ;;  %v5277_v40 = vld [vmem:[%s8249_s6 + $0x398] sm:$0xff] }
0x1b0c   : > { %v3970_v42 = vpop.permute.xlu0 %3969 }
0x1b10   : > { %v3994_v38 = vpop.permute.xlu0 %3993 }
0x1b3a   : > { %s5921_s27 = spop %5920 }
0x1b3b   : > { %s3921_s18 = smul.f32 0.00048828125, %s5921_s27 }
0x1b3d   : > { %v3922_v43 = vstv %s3921_s18 }
0x1b3e   : > { %v3923_v33 = vsub.f32 %v3877_v1, %v3922_v43  ;;  %v3924_v24 = vsub.f32 %v3882_v20, %v3922_v43  ;;  %v3925_v57 = vsub.f32 %v3887_v51, %v3922_v43  ;;  %v3926_v39 = vsub.f32 %v3892_v53, %v3922_v43  ;;  %v5267_v20 = vld [vmem:[%s8249_s6 + $0x348] sm:$0xff] }
0x1b3f   : > { %v5271_v1 = vld [vmem:[%s8249_s6 + $0x368] sm:$0xff] }
0x1b40   : > { %v3927_v59 = vmul.f32 %v3923_v33, %v3923_v33  ;;  %v3928_v28 = vmul.f32 %v3924_v24, %v3924_v24  ;;  %v3929_v23 = vmul.f32 %v3925_v57, %v3925_v57  ;;  %v3930_v49 = vmul.f32 %v3926_v39, %v3926_v39 }
0x1b42   : > { %v3931_v27 = vsel %vm8405_vm14, %v3927_v59, 0.0  ;;  %v3932_v55 = vsel %vm8406_vm4, %v3928_v28, 0.0  ;;  %v3934_v11 = vsel %vm8407_vm7, %v3929_v23, 0.0  ;;  %v3936_v19 = vsel %vm8408_vm5, %v3930_v49, 0.0  ;;  %v5262_v59 = vld [vmem:[%s8249_s6 + $0x320] sm:$0xff]  ;;  %v5281_v28 = vld [vmem:[%s8249_s6 + $0x3b8] sm:$0xff]  ;;  %vm8417_vm14 = vmmov %vm8406_vm4 }
0x1b43   : > { %v3933_v45 = vadd.f32 %v3932_v55, %v3931_v27  ;;  %v5264_v23 = vld [vmem:[%s8249_s6 + $0x330] sm:$0xff]  ;;  %v5263_v49 = vld [vmem:[%s8249_s6 + $0x328] sm:$0xff]  ;;  %v5265_v27 = vld [vmem:[%s8249_s6 + $0x338] sm:$0xff]  ;;  %v4066_v55 = vpop.permute.xlu0 %4065 }
0x1b44   : > { %vm8418_vm7 = vmmov %vm8406_vm4 }
0x1b45   : > { %v3935_v56 = vadd.f32 %v3934_v11, %v3933_v45  ;;  %vm8419_vm5 = vmmov %vm8406_vm4 }
0x1b47   : > { %v3937_v0 = vadd.f32 %v3936_v19, %v3935_v56  ;;  %v4115_v45 = vpop.permute.xlu0 %4114 }
0x1b49   : > { %3938 = vadd.xlane.f32.xlu1 %v3937_v0 }
0x1b4b   : > { %v4076_v56 = vpop.permute.xlu0 %4075 }
0x1b4f   : > { %v4169_v0 = vpop.permute.xlu0 %4168 }
0x1b5a   : > { %3964 = vperm.xlu1 %5998, %v5255_v3  }
0x1b5e   : > { %3988 = vperm.xlu1 %5998, %v5259_v26   ;;  %v4125_v26 = vpop.permute.xlu0 %4124 }
0x1b62   : > { %3974 = vperm.xlu1 %5998, %v5257_v30  }
0x1b66   : > { %3998 = vperm.xlu1 %5998, %v5261_v15   ;;  %v4130_v15 = vpop.permute.xlu0 %4129 }
0x1b6a   : > { %4070 = vperm.xlu1 %5998, %v5267_v20  }
0x1b6e   : > { %4119 = vperm.xlu1 %5998, %v5271_v1   ;;  %v4174_v1 = vpop.permute.xlu0 %4173 }
0x1b72   : > { %4163 = vperm.xlu1 %5998, %v5274_v34  }
0x1b76   : > { %4080 = vperm.xlu1 %5998, %v5269_v35  }
0x1b7a   : > { %4212 = vperm.xlu1 %5998, %v5278_v36  }
0x1b7e   : > { %4217 = vperm.xlu1 %5998, %v5279_v46  }
0x1bd6   : > { %v3939_v7 = vpop.xlane.xlu1 %3938 }
0x1bd7   : > { %v3940_v31 = vrot.slane %v3939_v7, 4 }
0x1bd9   : > { %v3941_v53 = vadd.f32 %v3940_v31, %v3939_v7 }
0x1bda   : > { %v3965_v62 = vpop.permute.xlu1 %3964 }
0x1bdb   : > { %v3942_v51 = vrot.slane %v3941_v53, 2 }
0x1bdd   : > { %v3943_v29 = vadd.f32 %v3942_v51, %v3941_v53 }
0x1bde   : > { %v3989_v54 = vpop.permute.xlu1 %3988 }
0x1bdf   : > { %v3944_v13 = vrot.slane %v3943_v29, 1 }
0x1be1   : > { %v3945_v5 = vadd.f32 %v3944_v13, %v3943_v29 }
0x1be2   : > { %v3975_v4 = vpop.permute.xlu1 %3974 }
0x1be3   : > { %5922 = vpush %v3945_v5 }
0x1c14   : > { %s5923_s27 = spop %5922 }
0x1c15   : > { %s3947_s18 = smul.f32 0.00048828125, %s5923_s27 }
0x1c17   : > { %s3948_s14 = sadd.f32 1e-08, %s3947_s18 }
0x1c19   : > { %v3949_v10 = vstv %s3948_s14 }
0x1c1a   : > { %6013 = vrsqrt.f32 %v3949_v10 }
0x1c24   : > { %v6014_v16 = vpop.eup %6013 }
0x1c25   : > { %5924 = vpush %v6014_v16 }
0x1c56   : > { %s5925_s16 = spop %5924 }
0x1c57   : > { %v3952_v22 = vstv %s5925_s16 }
0x1c58   : > { %v3953_v60 = vmul.f32 %v3952_v22, %v3923_v33  ;;  %v3954_v47 = vmul.f32 %v3952_v22, %v3924_v24  ;;  %v3955_v44 = vmul.f32 %v3952_v22, %v3925_v57  ;;  %v3956_v58 = vmul.f32 %v3952_v22, %v3926_v39  ;;  %v3999_v24 = vpop.permute.xlu1 %3998  ;;  %v5280_v57 = vld [vmem:[%s8249_s6 + $0x3b0] sm:$0xff] }
0x1c5a   : > { %v3977_v14 = vmul.f32 %v3960_v48, %v3953_v60  ;;  %v3978_v21 = vmul.f32 %v3965_v62, %v3954_v47  ;;  %v3979_v18 = vmul.f32 %v3970_v42, %v3955_v44  ;;  %v3980_v43 = vmul.f32 %v3975_v4, %v3956_v58 }
0x1c5c   : > { %v7981_v25 = vadd.f32 %v3989_v54, %v3978_v21  ;;  %v7983_v50 = vadd.f32 %v3984_v9, %v3977_v14  ;;  %v7992_v33 = vadd.f32 %v3994_v38, %v3979_v18  ;;  %v7999_v39 = vadd.f32 %v3999_v24, %v3980_v43  ;;  %v4071_v11 = vpop.permute.xlu1 %4070 }
0x1c5e   : > { %4011 = vrot.lane.b32.xlu1 %v7981_v25, %s8306_s25  ;;  %4009 = vrot.lane.b32.xlu0 %v7983_v50, %s8306_s25 }
0x1c60   : > { %v4120_v19 = vpop.permute.xlu1 %4119 }
0x1c62   : > { %4178 = vperm.xlu0 %5997, %v5277_v40   ;;  %4013 = vrot.lane.b32.xlu1 %v7992_v33, %s8306_s25 }
0x1c64   : > { %v4164_v3 = vpop.permute.xlu1 %4163 }
0x1c66   : > { %4222 = vperm.xlu0 %5997, %v5280_v57   ;;  %4015 = vrot.lane.b32.xlu1 %v7999_v39, %s8306_s25 }
0x1c68   : > { %v4081_v30 = vpop.permute.xlu1 %4080 }
0x1c6a   : > { %4036 = vperm.xlu0 %5997, %v5262_v59   ;;  %4227 = vperm.xlu1 %5998, %v5281_v28   ;;  %v5283_v59 = vld [vmem:[%s8250_s7 + $0xa8] sm:$0xff]  ;;  %v5282_v28 = vld [vmem:[%s8250_s7 + $0xa0] sm:$0xff] }
0x1c6c   : > { %v4213_v20 = vpop.permute.xlu1 %4212 }
0x1c6e   : > { %4046 = vperm.xlu0 %5997, %v5264_v23   ;;  %4041 = vperm.xlu1 %5998, %v5263_v49   ;;  %v5285_v23 = vld [vmem:[%s8250_s7 + $0xb8] sm:$0xff]  ;;  %v5284_v49 = vld [vmem:[%s8250_s7 + $0xb0] sm:$0xff] }
0x1c70   : > { %v4218_v34 = vpop.permute.xlu1 %4217 }
0x1c72   : > { %4051 = vperm.xlu1 %5998, %v5265_v27  }
0x1cd0   : > { %v4012_v35 = vpop.permute.xlu1 %4011  ;;  %v4010_v36 = vpop.permute.xlu0 %4009 }
0x1cd1   : > { %v4022_v46 = vsel %vm8409_vm13, 0.0, %v4012_v35  ;;  %v4021_v7 = vsel %vm8410_vm15, 0.0, %v4010_v36  ;;  %vm8420_vm13 = vcmask 261120  }
0x1cd2   : > { %v8021_v31 = vsel %vm8411_vm3, %v4022_v46, 0.0  ;;  %v4025_v53 = vsel %vm8412_vm11, %v4021_v7, 0.0  ;;  %vm8421_vm15 = vmmov %vm8420_vm13 }
0x1cd3   : > { %v4084_v51 = vmul.f32 %v4071_v11, %v8021_v31  ;;  %v4083_v29 = vmul.f32 %v4066_v55, %v4025_v53  ;;  %v4133_v10 = vmul.f32 %v4120_v19, %v8021_v31  ;;  %v4132_v16 = vmul.f32 %v4115_v45, %v4025_v53  ;;  %vm8422_vm3 = vmmov %vm8420_vm13 }
0x1cd4   : > { %v4014_v13 = vpop.permute.xlu1 %4013  ;;  %v4181_v54 = vmul.f32 %v4164_v3, %v4025_v53  ;;  %v4182_v47 = vmul.f32 %v4169_v0, %v8021_v31  ;;  %v4230_v42 = vmul.f32 %v4213_v20, %v4025_v53  ;;  %v4231_v58 = vmul.f32 %v4218_v34, %v8021_v31  ;;  %vm8423_vm11 = vmmov %vm8422_vm3 }
0x1cd5   : > { %v4023_v5 = vsel %vm8413_vm9, 0.0, %v4014_v13  ;;  %4093 = vrot.lane.b32.xlu1 %v4084_v51, %s8307_s20  ;;  %4091 = vrot.lane.b32.xlu0 %v4083_v29, %s8307_s20  ;;  %vm8424_vm9 = vmmov %vm8422_vm3 }
0x1cd6   : > { %v8030_v48 = vsel %vm8414_vm10, %v4023_v5, 0.0  ;;  %vm8425_vm10 = vmmov %vm8422_vm3 }
0x1cd7   : > { %v4085_v22 = vmul.f32 %v4076_v56, %v8030_v48  ;;  %v4134_v14 = vmul.f32 %v4125_v26, %v8030_v48  ;;  %v4183_v38 = vmul.f32 %v4174_v1, %v8030_v48 }
0x1cd8   : > { %v4016_v62 = vpop.permute.xlu1 %4015 }
0x1cd9   : > { %v4024_v9 = vsel %vm8415_vm2, 0.0, %v4016_v62  ;;  %4142 = vrot.lane.b32.xlu1 %v4133_v10, %s8308_s15  ;;  %4140 = vrot.lane.b32.xlu0 %v4132_v16, %s8308_s15  ;;  %vm8426_vm2 = vmmov %vm8422_vm3 }
0x1cda   : > { %v4028_v60 = vsel %vm8416_vm0, %v4024_v9, 0.0  ;;  %vm8427_vm0 = vmmov %vm8426_vm2 }
0x1cdb   : > { %v4086_v44 = vmul.f32 %v4081_v30, %v4028_v60  ;;  %v4135_v18 = vmul.f32 %v4130_v15, %v4028_v60 }
0x1cdd   : > { %4189 = vrot.lane.b32.xlu1 %v4181_v54, %s8315_s21  ;;  %4095 = vrot.lane.b32.xlu0 %v4085_v22, %s8307_s20 }
0x1ce1   : > { %4191 = vrot.lane.b32.xlu1 %v4182_v47, %s8315_s21  ;;  %4097 = vrot.lane.b32.xlu0 %v4086_v44, %s8307_s20  ;;  %v4179_v21 = vpop.permute.xlu0 %4178 }
0x1ce2   : > { %v4184_v4 = vmul.f32 %v4179_v21, %v4028_v60 }
0x1ce5   : > { %4238 = vrot.lane.b32.xlu1 %v4230_v42, %s8324_s1  ;;  %4144 = vrot.lane.b32.xlu0 %v4134_v14, %s8308_s15  ;;  %v4223_v40 = vpop.permute.xlu0 %4222 }
0x1ce6   : > { %v4232_v24 = vmul.f32 %v4223_v40, %v8030_v48 }
0x1ce9   : > { %4240 = vrot.lane.b32.xlu1 %v4231_v58, %s8324_s1  ;;  %4146 = vrot.lane.b32.xlu0 %v4135_v18, %s8308_s15  ;;  %v4228_v43 = vpop.permute.xlu1 %4227  ;;  %v4037_v27 = vpop.permute.xlu0 %4036 }
0x1cea   : > { %v4233_v57 = vmul.f32 %v4228_v43, %v4028_v60  ;;  %v4054_v15 = vmul.f32 %v4037_v27, %v4025_v53 }
0x1ced   : > { %4193 = vrot.lane.b32.xlu0 %v4183_v38, %s8315_s21  ;;  %4195 = vrot.lane.b32.xlu1 %v4184_v4, %s8315_s21  ;;  %v4042_v55 = vpop.permute.xlu1 %4041  ;;  %v4047_v45 = vpop.permute.xlu0 %4046 }
0x1cee   : > { %v4055_v35 = vmul.f32 %v4042_v55, %v8021_v31  ;;  %v4056_v9 = vmul.f32 %v4047_v45, %v8030_v48 }
0x1cf1   : > { %4244 = vrot.lane.b32.xlu1 %v4233_v57, %s8324_s1  ;;  %4242 = vrot.lane.b32.xlu0 %v4232_v24, %s8324_s1  ;;  %v4052_v11 = vpop.permute.xlu1 %4051 }
0x1cf2   : > { %v4057_v53 = vmul.f32 %v4052_v11, %v4028_v60 }
0x1cf5   : > { %4266 = vperm.xlu1 %5998, %v5283_v59   ;;  %4261 = vperm.xlu0 %5997, %v5282_v28  }
0x1cf9   : > { %4276 = vperm.xlu1 %5998, %v5285_v23   ;;  %4271 = vperm.xlu0 %5997, %v5284_v49  }
0x1d47   : > { %v4094_v56 = vpop.permute.xlu1 %4093  ;;  %v4092_v19 = vpop.permute.xlu0 %4091 }
0x1d48   : > { %v4103_v20 = vadd.f32 %v4092_v19, %v4054_v15  ;;  %v4104_v46 = vadd.f32 %v4094_v56, %v4055_v35  ;;  %v5298_v15 = vld [vmem:[%s8251_s8 + $0xa0] sm:$0xff] }
0x1d4b   : > { %v4143_v0 = vpop.permute.xlu1 %4142  ;;  %v4141_v3 = vpop.permute.xlu0 %4140 }
0x1d4c   : > { %v4152_v36 = vadd.f32 %v4141_v3, %v4103_v20  ;;  %v4153_v13 = vadd.f32 %v4143_v0, %v4104_v46  ;;  %v5302_v20 = vld [vmem:[%s8252_s9 + $0xa0] sm:$0xff] }
0x1d4f   : > { %v4190_v26 = vpop.permute.xlu1 %4189  ;;  %v4096_v30 = vpop.permute.xlu0 %4095 }
0x1d50   : > { %v4201_v7 = vadd.f32 %v4190_v26, %v4152_v36  ;;  %v4105_v22 = vadd.f32 %v4096_v30, %v4056_v9 }
0x1d53   : > { %v4192_v1 = vpop.permute.xlu1 %4191  ;;  %v4098_v34 = vpop.permute.xlu0 %4097 }
0x1d54   : > { %v4202_v10 = vadd.f32 %v4192_v1, %v4153_v13  ;;  %v4106_v47 = vadd.f32 %v4098_v34, %v4057_v53  ;;  %v5300_v1 = vld [vmem:[%s8251_s8 + $0xb0] sm:$0xff] }
0x1d55   : > { %v5304_v34 = vld [vmem:[%s8252_s9 + $0xb0] sm:$0xff] }
0x1d57   : > { %v4239_v51 = vpop.permute.xlu1 %4238  ;;  %v4145_v29 = vpop.permute.xlu0 %4144 }
0x1d58   : > { %v4250_v5 = vadd.f32 %v4239_v51, %v4201_v7  ;;  %v4154_v42 = vadd.f32 %v4145_v29, %v4105_v22 }
0x1d5a   : > { %5657 = vmatprep.mubr.msk.f32.mxu1 %vm8417_vm14, %v4250_v5  ;;  %vm8428_vm14 = vmmov %vm8427_vm0 }
0x1d5b   : > { %v4241_v16 = vpop.permute.xlu1 %4240  ;;  %v4147_v62 = vpop.permute.xlu0 %4146 }
0x1d5c   : > { %v4251_v54 = vadd.f32 %v4241_v16, %v4202_v10  ;;  %v4155_v14 = vadd.f32 %v4147_v62, %v4106_v47 }
0x1d5e   : > { %5658 = vmatmul.mubr.msk.f32.vlgmr.msra.gmra.mrb[10].mxu1 %vm8406_vm4, %v4251_v54  ;;  %vm8429_vm4 = vmmov %vm8427_vm0 }
0x1d5f   : > { %v4196_v31 = vpop.permute.xlu1 %4195  ;;  %v4194_v44 = vpop.permute.xlu0 %4193  ;;  %5849 = vmatpush3.bf16.msk.msra.mxu1 %vm7204_vm12, %v6111_v2 }
0x1d60   : > { %5851 = vmatprep.subr.msk.bf16.mxu1 %vm7216_vm6, %v6111_v2  ;;  %v4204_v21 = vadd.f32 %v4196_v31, %v4155_v14  ;;  %v4203_v48 = vadd.f32 %v4194_v44, %v4154_v42 }
0x1d63   : > { %v4245_v60 = vpop.permute.xlu1 %4244  ;;  %v4243_v58 = vpop.permute.xlu0 %4242  ;;  %5853 = vmatpush3.bf16.msk.msra.mxu1 %vm7216_vm6, %v6111_v2 }
0x1d64   : > { %v4253_v18 = vadd.f32 %v4245_v60, %v4204_v21  ;;  %v4252_v4 = vadd.f32 %v4243_v58, %v4203_v48  ;;  %5855 = vmatprep.subr.msk.bf16.mxu1 %vm7204_vm12, %v6111_v2  ;;  %v5299_v58 = vld [vmem:[%s8251_s8 + $0xa8] sm:$0xff] }
0x1d66   : > { %5660 = vmatprep.mubr.msk.f32.mxu1 %vm8418_vm7, %v4252_v4  ;;  %v5301_v4 = vld [vmem:[%s8251_s8 + $0xb8] sm:$0xff]  ;;  %vm8430_vm7 = vmmov %vm8427_vm0 }
0x1d67   : > { %5661 = vmatmul.mubr.msk.f32.gmra.mrb[12].mxu1 %vm8419_vm5, %v4253_v18  ;;  %v5303_v18 = vld [vmem:[%s8252_s9 + $0xa8] sm:$0xff]  ;;  %vm8431_vm5 = vmmov %vm8427_vm0 }
0x1d74   : > { %v4267_v43 = vpop.permute.xlu1 %4266  ;;  %v4262_v24 = vpop.permute.xlu0 %4261 }
0x1d78   : > { %v4277_v28 = vpop.permute.xlu1 %4276  ;;  %v4272_v55 = vpop.permute.xlu0 %4271 }
0x1e31   : > { %v5659_v38 = vpop.f32.mrb[10].mxu1 }
0x1e32   : > { %v4357_v40 = vpop.f32.mrb[11].mxu1  ;;  %v4363_v57 = vadd.f32 %v5659_v38, %v4267_v43  ;;  %v5305_v38 = vld [vmem:[%s8252_s9 + $0xb8] sm:$0xff] }
0x1e33   : > { %v4358_v59 = vadd.f32 %v4357_v40, %v4262_v24 }
0x1e34   : > { %v4387_v23 = vsel %vm8420_vm13, %v4363_v57, 0.0 }
0x1e35   : > { %v4386_v49 = vsel %vm8421_vm15, %v4358_v59, 0.0 }
0x1e36   : > { %v4388_v19 = vadd.f32 %v4387_v23, %v4386_v49 }
0x1e3a   : > { %v5662_v27 = vpop.f32.mrb[12].mxu1 }
0x1e3b   : > { %v4367_v45 = vpop.f32.mrb[13].mxu1  ;;  %v4373_v11 = vadd.f32 %v5662_v27, %v4277_v28 }
0x1e3c   : > { %v4368_v56 = vadd.f32 %v4367_v45, %v4272_v55 }
0x1e3d   : > { %v4391_v26 = vsel %vm8423_vm11, %v4373_v11, 0.0 }
0x1e3e   : > { %v4389_v0 = vsel %vm8422_vm3, %v4368_v56, 0.0 }
0x1e3f   : > { %v4390_v3 = vadd.f32 %v4389_v0, %v4388_v19 }
0x1e41   : > { %v4392_v30 = vadd.f32 %v4391_v26, %v4390_v3 }
0x1e43   : > { %4393 = vadd.xlane.f32.xlu0 %v4392_v30 }
0x1e59   : > { %4440 = vperm.xlu0 %5997, %v5298_v15  }
0x1e5d   : > { %4464 = vperm.xlu0 %5997, %v5302_v20  }
0x1e61   : > { %4450 = vperm.xlu0 %5997, %v5300_v1  }
0x1e65   : > { %4474 = vperm.xlu0 %5997, %v5304_v34  }
0x1ed0   : > { %v4394_v35 = vpop.xlane.xlu0 %4393 }
0x1ed1   : > { %v4395_v36 = vrot.slane %v4394_v35, 4 }
0x1ed3   : > { %v4396_v46 = vadd.f32 %v4395_v36, %v4394_v35 }
0x1ed5   : > { %v4397_v7 = vrot.slane %v4396_v46, 2 }
0x1ed7   : > { %v4398_v51 = vadd.f32 %v4397_v7, %v4396_v46 }
0x1ed8   : > { %v4441_v55 = vpop.permute.xlu0 %4440 }
0x1ed9   : > { %v4399_v29 = vrot.slane %v4398_v51, 1 }
0x1edb   : > { %v4400_v13 = vadd.f32 %v4399_v29, %v4398_v51 }
0x1edd   : > { %5926 = vpush %v4400_v13 }
0x1f0e   : > { %s5927_s20 = spop %5926 }
0x1f0f   : > { %s4402_s24 = smul.f32 0.0009765625, %s5927_s20 }
0x1f11   : > { %v4403_v5 = vstv %s4402_s24  ;;  %s5347_s24 = sshll.u32 %s6211_s17, 8 }
0x1f12   : > { %v4404_v10 = vsub.f32 %v4358_v59, %v4403_v5  ;;  %v4405_v16 = vsub.f32 %v4363_v57, %v4403_v5  ;;  %v4406_v62 = vsub.f32 %v4368_v56, %v4403_v5  ;;  %v4407_v9 = vsub.f32 %v4373_v11, %v4403_v5  ;;  %v4465_v11 = vpop.permute.xlu0 %4464  ;;  %s8199_s22 = scalar_lea.hbm %s8438_s26, %s5347_s24 }
0x1f14   : > { %v4408_v53 = vmul.f32 %v4404_v10, %v4404_v10  ;;  %v4409_v54 = vmul.f32 %v4405_v16, %v4405_v16  ;;  %v4410_v22 = vmul.f32 %v4406_v62, %v4406_v62  ;;  %v4411_v47 = vmul.f32 %v4407_v9, %v4407_v9 }
0x1f16   : > { %v4412_v31 = vsel %vm8424_vm9, %v4408_v53, 0.0  ;;  %v4413_v44 = vsel %vm8425_vm10, %v4409_v54, 0.0  ;;  %v4415_v14 = vsel %vm8426_vm2, %v4410_v22, 0.0  ;;  %v4417_v48 = vsel %vm8427_vm0, %v4411_v47, 0.0  ;;  %v4451_v19 = vpop.permute.xlu0 %4450  ;;  %vm8437_vm10 = vmmov %vm8427_vm0 }
0x1f17   : > { %v4414_v42 = vadd.f32 %v4413_v44, %v4412_v31 }
0x1f19   : > { %v4416_v21 = vadd.f32 %v4415_v14, %v4414_v42 }
0x1f1a   : > { %v4475_v7 = vpop.permute.xlu0 %4474 }
0x1f1b   : > { %v4418_v60 = vadd.f32 %v4417_v48, %v4416_v21 }
0x1f1d   : > { %4419 = vadd.xlane.f32.xlu1 %v4418_v60 }
0x1f2e   : > { %4445 = vperm.xlu1 %5998, %v5299_v58  }
0x1f32   : > { %4469 = vperm.xlu1 %5998, %v5303_v18  }
0x1f36   : > { %4455 = vperm.xlu1 %5998, %v5301_v4  }
0x1f3a   : > { %4479 = vperm.xlu1 %5998, %v5305_v38  }
0x1faa   : > { %v4420_v40 = vpop.xlane.xlu1 %4419 }
0x1fab   : > { %v4421_v43 = vrot.slane %v4420_v40, 4 }
0x1fad   : > { %v4422_v24 = vadd.f32 %v4421_v43, %v4420_v40 }
0x1fae   : > { %v4446_v45 = vpop.permute.xlu1 %4445 }
0x1faf   : > { %v4423_v57 = vrot.slane %v4422_v24, 2 }
0x1fb1   : > { %v4424_v59 = vadd.f32 %v4423_v57, %v4422_v24 }
0x1fb2   : > { %v4470_v56 = vpop.permute.xlu1 %4469 }
0x1fb3   : > { %v4425_v28 = vrot.slane %v4424_v59, 1 }
0x1fb5   : > { %v4426_v23 = vadd.f32 %v4425_v28, %v4424_v59 }
0x1fb6   : > { %v4456_v20 = vpop.permute.xlu1 %4455 }
0x1fb7   : > { %5928 = vpush %v4426_v23 }
0x1fba   : > { %v4480_v13 = vpop.permute.xlu1 %4479 }
0x1fe8   : > { %s5929_s18 = spop %5928 }
0x1fe9   : > { %s4428_s14 = smul.f32 0.0009765625, %s5929_s18 }
0x1feb   : > { %s4429_s16 = sadd.f32 1e-08, %s4428_s14 }
0x1fed   : > { %v4430_v49 = vstv %s4429_s16 }
0x1fee   : > { %6015 = vrsqrt.f32 %v4430_v49 }
0x1ff8   : > { %v6016_v27 = vpop.eup %6015 }
0x1ff9   : > { %5930 = vpush %v6016_v27 }
0x202a   : > { %s5931_s0 = spop %5930 }
0x202b   : > { %v4433_v0 = vstv %s5931_s0  ;;  %s472_s0 = sand.u32 1, %s6094_s30  }
0x202c   : > { %v4434_v3 = vmul.f32 %v4433_v0, %v4404_v10  ;;  %v4435_v26 = vmul.f32 %v4433_v0, %v4405_v16  ;;  %v4436_v30 = vmul.f32 %v4433_v0, %v4406_v62  ;;  %v4437_v15 = vmul.f32 %v4433_v0, %v4407_v9  ;;  %v5333_v0 = vld [vmem:[%s8254_s11 + $0x38] sm:$0xff]  ;;  %s4999_s25 = sshll.u32 %s472_s0, 4  ;;  %s8202_s17 = scalar_lea.sflag [#allocation3], %s472_s0 }
0x202d   : > { %s474_s29 = scalar_lea.vmem [#allocation5], %s4999_s25 }
0x202e   : > { %v4458_v1 = vmul.f32 %v4441_v55, %v4434_v3  ;;  %v4459_v34 = vmul.f32 %v4446_v45, %v4435_v26  ;;  %v4460_v35 = vmul.f32 %v4451_v19, %v4436_v30  ;;  %v4461_v51 = vmul.f32 %v4456_v20, %v4437_v15  ;;  %v5329_v19 = vld [vmem:[%s8253_s10 + $0x38] sm:$0xff]  ;;  %s4919_s20 = sshll.u32 %s474_s29, 4  ;;  %s8194_s20 = int_to_ptr.vmem [resolvable:$true] %s4919_s20 }
0x202f   : > { %v5338_v3 = vld [vmem:[%s8256_s13 + $0x18] sm:$0xff] }
0x2030   : > { %v4483_v36 = vadd.f32 %v4470_v56, %v4459_v34  ;;  %v4482_v46 = vadd.f32 %v4465_v11, %v4458_v1  ;;  %v4484_v29 = vadd.f32 %v4475_v7, %v4460_v35  ;;  %v4485_v5 = vadd.f32 %v4480_v13, %v4461_v51  ;;  %v5327_v11 = vld [vmem:[%s8253_s10 + $0x28] sm:$0xff] }
0x2031   : > { %v5331_v56 = vld [vmem:[%s8254_s11 + $0x28] sm:$0xff] }
0x2032   : > { %5671 = vmatprep.mubr.msk.f32.mxu1 %vm8428_vm14, %v4482_v46 }
0x2033   : > { %5672 = vmatmul.mubr.msk.f32.vlgmr.msra.gmra.mrb[14].mxu1 %vm8429_vm4, %v4483_v36  ;;  %v5335_v36 = vld [vmem:[%s8255_s12 + $0x10] sm:$0xff] }
0x2034   : > { %5674 = vmatprep.mubr.msk.f32.mxu1 %vm8430_vm7, %v4484_v29  ;;  %5857 = vmatpush3.bf16.msk.msra.mxu1 %vm7204_vm12, %v6111_v2  ;;  %vm8432_vm12 = vcmask 523264  }
0x2035   : > { %5859 = vmatprep.subr.msk.bf16.mxu1 %vm7216_vm6, %v6111_v2 }
0x2037   : > { %5675 = vmatmul.mubr.msk.f32.gmra.mrb[16].mxu1 %vm8431_vm5, %v4485_v5 }
0x2038   : > { %5861 = vmatpush3.bf16.msk.msra.mxu1 %vm7216_vm6, %v6111_v2  ;;  %vm8433_vm6 = vmmov %vm8432_vm12 }
0x2039   : > { %5863 = vmatprep.subr.msk.bf16.mxu1 %vm7248_vm1, %v6111_v2 }
0x203c   : > { %5865 = vmatpush3.bf16.msk.msra.mxu1 %vm7248_vm1, %v6111_v2  ;;  %vm8434_vm1 = vmmov %vm8433_vm6 }
0x203d   : > { %5867 = vmatprep.subr.msk.bf16.mxu1 %vm7268_vm8, %v6111_v2  ;;  %vm8435_vm13 = vmmov %vm8434_vm1 }
0x2040   : > { %5869 = vmatpush3.bf16.msk.msra.mxu1 %vm7268_vm8, %v6111_v2  ;;  %vm8436_vm8 = vmmov %vm8427_vm0 }
0x2041   : > { %5707 = vmatprep.mubr.msk.f32.mxu0 %vm8436_vm8, %v5335_v36 }
0x2106   : > { %v5673_v8 = vpop.f32.mrb[14].mxu1 }
0x2107   : > { %v4564_v10 = vpop.f32.mrb[15].mxu1  ;;  %v4584_v16 = vadd.f32 %v5673_v8, %v7981_v25 }
0x2108   : > { %v4583_v61 = vadd.f32 %v4564_v10, %v7983_v50 }
0x210a   : > { %v5676_v62 = vpop.f32.mrb[16].mxu1  ;;  %5693 = vmatprep.mubr.msk.f32.mxu1 %vm8432_vm12, %v4583_v61 }
0x210b   : > { %v4574_v9 = vpop.f32.mrb[17].mxu1  ;;  %5694 = vmatmul.mubr.msk.f32.vlgmr.msra.gmra.mrb[18].mxu1 %vm8433_vm6, %v4584_v16  ;;  %v4586_v53 = vadd.f32 %v5676_v62, %v7999_v39  ;;  %v5326_v39 = vld [vmem:[%s8253_s10 + $0x20] sm:$0xff] }
0x210c   : > { %v4585_v12 = vadd.f32 %v4574_v9, %v7992_v33 }
0x210e   : > { %5696 = vmatprep.mubr.msk.f32.mxu1 %vm8434_vm1, %v4585_v12 }
0x210f   : > { %5697 = vmatmul.mubr.msk.f32.gmra.mrb[20].mxu1 %vm8435_vm13, %v4586_v53 }
0x21de   : > { %v5695_v2 = vpop.f32.mrb[18].mxu1 }
0x21df   : > { %v4665_v63 = vpop.f32.mrb[19].mxu1  ;;  %v4685_v50 = vadd.f32 %v5695_v2, %v7766_v32  ;;  %v5330_v32 = vld [vmem:[%s8254_s11 + $0x20] sm:$0xff] }
0x21e0   : > { %v4684_v25 = vadd.f32 %v4665_v63, %v7768_v37  ;;  %v5328_v37 = vld [vmem:[%s8253_s10 + $0x30] sm:$0xff] }
0x21e2   : > { %v5698_v54 = vpop.f32.mrb[20].mxu1  ;;  %v4698_v47 = vadd.f32 %v4685_v50, %v4684_v25 }
0x21e3   : > { %v4675_v22 = vpop.f32.mrb[21].mxu1  ;;  %v4687_v44 = vadd.f32 %v5698_v54, %v7784_v17  ;;  %v5337_v17 = vld [vmem:[%s8256_s13 + $0x10] sm:$0xff] }
0x21e4   : > { %v4686_v31 = vadd.f32 %v4675_v22, %v7777_v52  ;;  %v5332_v52 = vld [vmem:[%s8254_s11 + $0x30] sm:$0xff] }
0x21e6   : > { %v4699_v33 = vadd.f32 %v4698_v47, %v4686_v31 }
0x21e8   : > { %v4700_v42 = vadd.f32 %v4699_v33, %v4687_v44 }
0x21ea   : > { %4701 = vadd.xlane.f32.xlu0 %v4700_v42 }
0x2200   : > { %4744 = vperm.xlu0 %5997, %v5326_v39  }
0x2204   : > { %4768 = vperm.xlu0 %5997, %v5330_v32  }
0x2208   : > { %4754 = vperm.xlu0 %5997, %v5328_v37  }
0x220c   : > { %4778 = vperm.xlu0 %5997, %v5332_v52  }
0x2210   : > { %4812 = vperm.xlu0 %5997, %v5337_v17  }
0x2277   : > { %v4702_v14 = vpop.xlane.xlu0 %4701 }
0x2278   : > { %v4703_v21 = vrot.slane %v4702_v14, 4 }
0x227a   : > { %v4704_v48 = vadd.f32 %v4703_v21, %v4702_v14 }
0x227c   : > { %v4705_v60 = vrot.slane %v4704_v48, 2 }
0x227e   : > { %v4706_v58 = vadd.f32 %v4705_v60, %v4704_v48 }
0x227f   : > { %v4745_v51 = vpop.permute.xlu0 %4744 }
0x2280   : > { %v4707_v18 = vrot.slane %v4706_v58, 1 }
0x2282   : > { %v4708_v4 = vadd.f32 %v4707_v18, %v4706_v58  ;;  %v5336_v58 = vld [vmem:[%s8255_s12 + $0x18] sm:$0xff] }
0x2283   : > { %v4769_v13 = vpop.permute.xlu0 %4768 }
0x2284   : > { %5932 = vpush %v4708_v4 }
0x2287   : > { %v4755_v8 = vpop.permute.xlu0 %4754 }
0x22b5   : > { %s5933_s1 = spop %5932 }
0x22b6   : > { %s4710_s27 = smul.f32 0.00024414063, %s5933_s1 }
0x22b8   : > { %v4711_v38 = vstv %s4710_s27  ;;  %s5334_s27 = sld [smem:[#allocation2 + $0x81]] }
0x22b9   : > { %v4712_v40 = vsub.f32 %v4684_v25, %v4711_v38  ;;  %v4713_v43 = vsub.f32 %v4685_v50, %v4711_v38  ;;  %v4714_v24 = vsub.f32 %v4686_v31, %v4711_v38  ;;  %v4715_v57 = vsub.f32 %v4687_v44, %v4711_v38  ;;  %v4779_v25 = vpop.permute.xlu0 %4778 }
0x22bb   : > { %v4716_v59 = vmul.f32 %v4712_v40, %v4712_v40  ;;  %v4717_v28 = vmul.f32 %v4713_v43, %v4713_v43  ;;  %v4718_v23 = vmul.f32 %v4714_v24, %v4714_v24  ;;  %v4719_v27 = vmul.f32 %v4715_v57, %v4715_v57 }
0x22bd   : > { %v4720_v49 = vadd.f32 %v4717_v28, %v4716_v59  ;;  %v4813_v38 = vpop.permute.xlu0 %4812 }
0x22be   : > { %v4795_v22 = vstv %s5334_s27 }
0x22bf   : > { %v4721_v55 = vadd.f32 %v4720_v49, %v4718_v23 }
0x22c1   : > { %v4722_v45 = vadd.f32 %v4721_v55, %v4719_v27 }
0x22c3   : > { %4723 = vadd.xlane.f32.xlu1 %v4722_v45 }
0x22d4   : > { %4749 = vperm.xlu1 %5998, %v5327_v11  }
0x22d8   : > { %4773 = vperm.xlu1 %5998, %v5331_v56  }
0x22dc   : > { %4759 = vperm.xlu1 %5998, %v5329_v19  }
0x22e0   : > { %4783 = vperm.xlu1 %5998, %v5333_v0  }
0x22e4   : > { %4817 = vperm.xlu1 %5998, %v5338_v3  }
0x2350   : > { %v4724_v26 = vpop.xlane.xlu1 %4723 }
0x2351   : > { %v4725_v30 = vrot.slane %v4724_v26, 4 }
0x2353   : > { %v4726_v15 = vadd.f32 %v4725_v30, %v4724_v26 }
0x2354   : > { %v4750_v29 = vpop.permute.xlu1 %4749 }
0x2355   : > { %v4727_v20 = vrot.slane %v4726_v15, 2 }
0x2357   : > { %v4728_v1 = vadd.f32 %v4727_v20, %v4726_v15 }
0x2358   : > { %v4774_v5 = vpop.permute.xlu1 %4773 }
0x2359   : > { %v4729_v34 = vrot.slane %v4728_v1, 1 }
0x235b   : > { %v4730_v35 = vadd.f32 %v4729_v34, %v4728_v1 }
0x235c   : > { %v4760_v10 = vpop.permute.xlu1 %4759 }
0x235d   : > { %5934 = vpush %v4730_v35 }
0x2360   : > { %v4784_v54 = vpop.permute.xlu1 %4783 }
0x2364   : > { %v4818_v18 = vpop.permute.xlu1 %4817 }
0x238e   : > { %s5935_s21 = spop %5934 }
0x238f   : > { %s4732_s19 = smul.f32 0.00024414063, %s5935_s21  ;;  %s6036_s21 = scalar_lea.vmem %s8194_s20, 256 }
0x2390   : > { %p6037_p9 = scmp.ne.s32.totalorder %s8194_s20, %s6036_s21 }
0x2391   : > { %s4733_s1 = sadd.f32 1e-08, %s4732_s19  ;;  %s6112_s19 = smov [#allocation5]  }
0x2392   : > { %p6038_p10 = pnand %p6037_p9, %p6228_p5 }
0x2393   : > { %v4734_v46 = vstv %s4733_s1  ;;  %s6040_s1 = sshll.u32 %s6112_s19, 4  ;;  %s6041_s1 = int_to_ptr.vmem [resolvable:$false] %s6040_s1 }
0x2394   : > { %6017 = vrsqrt.f32 %v4734_v46  ;;  %p6039_p12 = pneg %p6038_p10  ;;  %s6042_s27 = scalar_lea.vmem %s6041_s1, 512 }
0x2395   : > { %p6043_p13 = scmp.lt.s32.totalorder %s8194_s20, %s6041_s1  ;;  %p6044_p0 = scmp.lt.s32.totalorder %s6042_s27, %s6036_s21 }
0x2397   : > { %p6045_p1 = por %p6044_p0, %p6043_p13 }
0x2399   : > { %p6046_p2 = pnand %p6045_p1, %p6039_p12 }
0x239e   : > { %v6018_v7 = vpop.eup %6017 }
0x239f   : > { %5936 = vpush %v6018_v7 }
0x23d0   : > { %s5937_s18 = spop %5936 }
0x23d1   : > { %v4737_v61 = vstv %s5937_s18 }
0x23d2   : > { %v4738_v16 = vmul.f32 %v4737_v61, %v4712_v40  ;;  %v4739_v62 = vmul.f32 %v4737_v61, %v4713_v43  ;;  %v4740_v9 = vmul.f32 %v4737_v61, %v4714_v24  ;;  %v4741_v12 = vmul.f32 %v4737_v61, %v4715_v57 }
0x23d4   : > { %v4762_v53 = vmul.f32 %v4745_v51, %v4738_v16  ;;  %v4763_v2 = vmul.f32 %v4750_v29, %v4739_v62  ;;  %v4764_v63 = vmul.f32 %v4755_v8, %v4740_v9  ;;  %v4765_v50 = vmul.f32 %v4760_v10, %v4741_v12 }
0x23d6   : > { %v4786_v47 = vadd.f32 %v4769_v13, %v4762_v53  ;;  %v4787_v31 = vadd.f32 %v4774_v5, %v4763_v2  ;;  %v4788_v44 = vadd.f32 %v4779_v25, %v4764_v63  ;;  %v4789_v33 = vadd.f32 %v4784_v54, %v4765_v50 }
0x23d8   : > { %vm4791_vm15 = vcmp.ge.f32.partialorder %v4786_v47, 0.0  ;;  %vm4792_vm3 = vcmp.ge.f32.partialorder %v4787_v31, 0.0  ;;  %v4796_v42 = vmul.f32 %v4795_v22, %v4786_v47  ;;  %v4797_v39 = vmul.f32 %v4795_v22, %v4787_v31 }
0x23d9   : > { %vm4793_vm11 = vcmp.ge.f32.partialorder %v4788_v44, 0.0  ;;  %vm4794_vm9 = vcmp.ge.f32.partialorder %v4789_v33, 0.0  ;;  %v4798_v32 = vmul.f32 %v4795_v22, %v4788_v44  ;;  %v4799_v37 = vmul.f32 %v4795_v22, %v4789_v33 }
0x23da   : > { %v4800_v52 = vsel %vm4791_vm15, %v4786_v47, %v4796_v42  ;;  %v4801_v17 = vsel %vm4792_vm3, %v4787_v31, %v4797_v39 }
0x23db   : > { %v5870_v14 = vpack.c.bf16 %v4801_v17, %v4800_v52  ;;  %v4802_v21 = vsel %vm4793_vm11, %v4788_v44, %v4798_v32  ;;  %v4803_v48 = vsel %vm4794_vm9, %v4789_v33, %v4799_v37 }
0x23dc   : > { %v5874_v60 = vpack.c.bf16 %v4803_v48, %v4802_v21 }
0x23dd   : > { %5871 = vmatprep.subr.bf16.mxu0 %v5870_v14 }
0x23de   : > { %5873 = vmatpush3.bf16.msra.mxu0 %v5870_v14 }
0x23df   : > { %5875 = vmatprep.subr.bf16.mxu0 %v5874_v60 }
0x23e2   : > { %5877 = vmatpush3.bf16.msra.mxu0 %v5874_v60 }
0x23e5   : > { %5708 = vmatmul.mubr.msk.f32.vlgmr.msra.gmra.mrb[20].mxu0 %vm8437_vm10, %v5336_v58 }
0x24b8   : > { %v5709_v4 = vpop.f32.mrb[20].mxu0 }
0x24b9   : > { %v4898_v40 = vadd.f32 %v5709_v4, %v4818_v18  ;;  %v4892_v43 = vpop.f32.mrb[21].mxu0 }
0x24ba   : > { %v4893_v24 = vadd.f32 %v4892_v43, %v4813_v38 }
0x24bb   : > { %v4902_v57 = vadd.f32 %v4898_v40, %v7393_v6 }
0x24bc   : > { %v4901_v59 = vadd.f32 %v4893_v24, %v7396_v41 }
0x24bd   : > { %4904 = vst [vmem:[%s474_s29 + $0x8] sm:$0xff] %v4902_v57 }
0x24be   : > { %4903 = vst [vmem:[%s474_s29] sm:$0xff] %v4901_v59 }
0x24bf   : > { %6049 = shalt.err (!%p6046_p2)
}
0x24c0   : > { %s6050_s18 = scalar_lea.hbm %s8199_s22, 256  ;;  %s6054_s0 = scalar_lea.hbm %s8438_s26, 512 }
0x24c1   : > { %p6051_p3 = scmp.ne.s32.totalorder %s8199_s22, %s6050_s18  ;;  %p6055_p8 = scmp.lt.u32.totalorder %s8199_s22, %s8438_s26 }
0x24c2   : > { %p6056_p11 = scmp.lt.u32.totalorder %s6054_s0, %s6050_s18  ;;  %p6058_p10 = scmp.lt.u32.totalorder %s6050_s18, %s8199_s22 }
0x24c3   : > { %p6052_p4 = pnand %p6051_p3, %p6228_p5 }
0x24c4   : > { %p6057_p9 = por %p6056_p11, %p6055_p8 }
0x24c5   : > { %p6053_p7 = pneg %p6052_p4 }
0x24c6   : > { %p6059_p12 = por %p6058_p10, %p6057_p9 }
0x24c8   : > { %p6060_p13 = pnand %p6059_p12, %p6053_p7 }
0x24ca   : > { %6063 = shalt.err (!%p6060_p13)
}
0x24cb   : > { %s6113_s24 = smov 128   ;;  %s6114_s15 = smov 8  }
0x24cc   : > { %5942 = dma.vmem_to_hbm [thread:$0]  (%p6228_p5), %s8194_s20, 256, %s8199_s22, %s8202_s17, %s6113_s24, %s6113_s24, %s6114_s15  }
0x24cd PF: > { %s8439_s28 = sld [smem:[#allocation10_spill]]  ;;  %s8440_s21 = sld [smem:[#allocation8_spill]] }
0x24d3   : > { %p5954_p0 = scmp.ge.s32.totalorder %s8439_s28, 2  ;;  %s4934_s1 = sand.u32 1, %s8440_s21  }
0x24d4   : > { %s4935_s27 = scalar_lea.sflag [#allocation3], %s4934_s1 }
0x24d5   : > { %p5949_p1 = pnand %p5954_p0, %p6232_p6 }
0x24d7   : > { %6085 = dma.done.wait (!%p5949_p1), %s4935_s27, 256  }
0x24d8   : > { %6087 = vsyncadd (!%p5949_p1), %s4935_s27, 4294967040  ;;  %s8442_s16 = sld [smem:[#allocation11_spill]]  ;;  %s8443_s18 = sld [smem:[#allocation9_spill]] }
0x24d9   : > { %s8444_s15 = sld [smem:[#allocation12_spill]]  ;;  %s8445_s29 = smov %s6094_s30 }
0x24de   : > { %p25_p2 = scmp.ge.s32.totalorder %s8442_s16, 4   ;;  %s8446_s30 = smov %s8443_s18 }
0x24e0   :  { %27 = sbr.rel (!%p25_p2) target bundleno = 8 (0x8), region = 168 }
0x24e7   :  { %4940 = vsyncpa [#allocation3], 1 }
0x24e8   :  { %4942 = vsyncpa [#allocation3 + $0x1], 1 }
0x24e9   :  { %4943 = vsyncpa [#allocation4], 1 }
0x24ea   :  { %4945 = vsyncpa [#allocation4 + $0x1], 1 }

</bundles_post_ra>
